<compile_context>
chip_gen: v6e
topology: v6e:2x2x1
jax: 0.10.0
libtpu: 0.0.40
codegen_flags: <defaults>
</compile_context>

<pallas_src>
import jax
import jax.numpy as jnp
from jax import lax
from jax.experimental import pallas as pl
from jax.experimental.pallas import tpu as pltpu


# ---------------------------------------------------------------------------
# Kernel
# ---------------------------------------------------------------------------
def _conv_relu_pool(get_window, t_ref, brow_ref, rp_ref, cp_ref, out_ref, *, k):
    """One conv layer on channel-stacked activations.

    get_window(ki) -> (H_out, Cin*W_in) slice of the input activations.
    t_ref[ki]      -> (Cin*W_in, Cout*W_out) stacked banded Toeplitz matrix.
    brow_ref       -> (1, Cout*W_out) per-column bias.
    rp_ref/cp_ref  -> 0/1 stride-2 row/column pick matrices.
    out_ref        -> (H_out//2, Cout*W_out//2) pooled output (VMEM scratch).
    """
    acc = None
    for ki in range(k):
        term = jnp.dot(get_window(ki), t_ref[ki],
                       preferred_element_type=jnp.float32)
        acc = term if acc is None else acc + term
    y = jnp.maximum(acc + brow_ref[...], 0.0)          # (H_out, C*W_out)
    a = jnp.maximum(y[:, :-1], y[:, 1:])               # horizontal pair max
    m = jnp.maximum(a[:-1, :], a[1:, :])               # full 2x2 window max
    out_ref[...] = jnp.dot(
        jnp.dot(rp_ref[...], m, preferred_element_type=jnp.float32),
        cp_ref[...], preferred_element_type=jnp.float32)


def _lenet_kernel(x_ref,
                  t1_ref, b1_ref, rp1_ref, cp1_ref,
                  t2_ref, b2_ref, rp2_ref, cp2_ref,
                  t3_ref, b3_ref, rp3_ref, cp3_ref,
                  w1_ref, bf1_ref, w2_ref, bf2_ref,
                  out_ref,
                  x1_ref, x2_ref, x3_ref):
    # conv1: (1,100,100) -> (96, 2*96) -> pool -> (48, 2*48)
    _conv_relu_pool(lambda ki: x_ref[0, 0, ki:ki + 96, :],
                    t1_ref, b1_ref, rp1_ref, cp1_ref, x1_ref, k=5)
    # conv2: (48, 2*48) -> (44, 4*44) -> pool -> (22, 4*22)
    _conv_relu_pool(lambda ki: x1_ref[ki:ki + 44, :],
                    t2_ref, b2_ref, rp2_ref, cp2_ref, x2_ref, k=5)
    # conv3: (22, 4*22) -> (18, 8*18) -> pool -> (9, 8*9)
    _conv_relu_pool(lambda ki: x2_ref[ki:ki + 18, :],
                    t3_ref, b3_ref, rp3_ref, cp3_ref, x3_ref, k=5)

    # fc1: flatten(8*9*9=648) @ W1^T + b, ReLU -- row-by-row against a
    # pre-permuted weight, so no in-kernel reshape of the activations.
    acc = None
    for i in range(9):
        term = jnp.dot(x3_ref[i:i + 1, :], w1_ref[i],
                       preferred_element_type=jnp.float32)
        acc = term if acc is None else acc + term
    hidden = jnp.maximum(acc + bf1_ref[...], 0.0)                  # (1, 240)

    # fc2: (1,240) @ (240,100) + b
    out_ref[0] = jnp.dot(hidden, w2_ref[...],
                         preferred_element_type=jnp.float32) + bf2_ref[...]


# ---------------------------------------------------------------------------
# Wrapper-side weight preprocessing (pure layout/algebra, done once)
# ---------------------------------------------------------------------------
def _stacked_toeplitz(w, w_in):
    """(Cout,Cin,K,K) conv weight -> (K, Cin*w_in, Cout*w_out) stacked banded
    matrices with T[ki, ci*w_in + m, co*w_out + j] = w[co, ci, ki, m - j]."""
    cout, cin, k, _ = w.shape
    w_out = w_in - k + 1
    m = jnp.arange(w_in)[:, None]
    j = jnp.arange(w_out)[None, :]
    masks = jnp.stack([(m == j + kj) for kj in range(k)], axis=0).astype(w.dtype)
    # T[ki, ci, m, co, n] = sum_kj w[co, ci, ki, kj] * masks[kj, m, n]
    t = jnp.einsum('oikl,lmn->kimon', w, masks)
    return t.reshape(k, cin * w_in, cout * w_out)


def _pool_picks(h_out, wcols, dtype=jnp.float32):
    """0/1 matrices selecting every other row / column of the 2x2-max map."""
    hp, wp = h_out // 2, wcols // 2
    rp = (jnp.arange(h_out - 1)[None, :] ==
          2 * jnp.arange(hp)[:, None]).astype(dtype)          # (hp, h_out-1)
    cp = (jnp.arange(wcols - 1)[:, None] ==
          2 * jnp.arange(wp)[None, :]).astype(dtype)          # (wcols-1, wp)
    return rp, cp


def _const_spec(shape):
    n = len(shape)
    return pl.BlockSpec(shape, lambda i, _n=n: (0,) * _n)


def lenet_forward(x, params):
    """x: (B, 1, 100, 100) float32.  Returns (B, 100) float32 logits."""
    (wc1, bc1, wc2, bc2, wc3, bc3, wf1, bf1, wf2, bf2) = params
    bsz = x.shape[0]
    assert x.shape[1:] == (1, 100, 100)
    f32 = jnp.float32

    # Conv weights -> stacked Toeplitz matrices; biases -> per-column rows.
    t1 = _stacked_toeplitz(wc1, 100)        # (5, 100, 192)
    t2 = _stacked_toeplitz(wc2, 48)         # (5,  96, 176)
    t3 = _stacked_toeplitz(wc3, 22)         # (5,  88, 144)
    b1r = jnp.repeat(bc1, 96)[None, :]      # (1, 192)
    b2r = jnp.repeat(bc2, 44)[None, :]      # (1, 176)
    b3r = jnp.repeat(bc3, 18)[None, :]      # (1, 144)
    rp1, cp1 = _pool_picks(96, 192)         # (48,95), (191,96)
    rp2, cp2 = _pool_picks(44, 176)         # (22,43), (175,88)
    rp3, cp3 = _pool_picks(18, 144)         # (9,17),  (143,72)

    # fc1 weight so that w1r[i] is the (72,240) block multiplying the pooled
    # row i in (c*9 + j) column order (matches torch's x.view(-1, 648)).
    w1r = jnp.transpose(wf1.reshape(240, 8, 9, 9), (2, 1, 3, 0)).reshape(9, 72, 240)
    w2t = wf2.T                             # (240, 100)
    bf1_2d = bf1.reshape(1, 240)
    bf2_2d = bf2.reshape(1, 100)

    out = pl.pallas_call(
        _lenet_kernel,
        out_shape=jax.ShapeDtypeStruct((bsz, 1, 100), f32),
        grid_spec=pltpu.PrefetchScalarGridSpec(
            num_scalar_prefetch=0,
            grid=(bsz,),
            in_specs=[
                pl.BlockSpec((1, 1, 100, 100), lambda i: (i, 0, 0, 0)),   # x
                _const_spec((5, 100, 192)),                               # t1
                _const_spec((1, 192)),                                    # b1
                _const_spec((48, 95)),                                    # rp1
                _const_spec((191, 96)),                                   # cp1
                _const_spec((5, 96, 176)),                                # t2
                _const_spec((1, 176)),                                    # b2
                _const_spec((22, 43)),                                    # rp2
                _const_spec((175, 88)),                                   # cp2
                _const_spec((5, 88, 144)),                                # t3
                _const_spec((1, 144)),                                    # b3
                _const_spec((9, 17)),                                     # rp3
                _const_spec((143, 72)),                                   # cp3
                _const_spec((9, 72, 240)),                                # fc1 W
                _const_spec((1, 240)),                                    # fc1 b
                _const_spec((240, 100)),                                  # fc2 W^T
                _const_spec((1, 100)),                                    # fc2 b
            ],
            out_specs=pl.BlockSpec((1, 1, 100), lambda i: (i, 0, 0)),
            scratch_shapes=[
                pltpu.VMEM((48, 96), f32),   # pooled conv1 (channel-stacked)
                pltpu.VMEM((22, 88), f32),   # pooled conv2
                pltpu.VMEM((9, 72), f32),    # pooled conv3
            ],
        ),
        compiler_params=pltpu.CompilerParams(
            dimension_semantics=("parallel",),
            vmem_limit_bytes=32 * 1024 * 1024,
        ),
    )(x, t1, b1r, rp1, cp1, t2, b2r, rp2, cp2, t3, b3r, rp3, cp3,
      w1r, bf1_2d, w2t, bf2_2d)

    return out.reshape(bsz, 100)


# ---------------------------------------------------------------------------
# Pure-JAX reference
# ---------------------------------------------------------------------------
def _lenet_reference(x, params):
    (wc1, bc1, wc2, bc2, wc3, bc3, wf1, bf1, wf2, bf2) = params

    def conv(y, w, b):
        o = lax.conv_general_dilated(y, w, (1, 1), 'VALID',
                                     dimension_numbers=('NCHW', 'OIHW', 'NCHW'))
        return o + b[None, :, None, None]

    def pool(y):
        return lax.reduce_window(y, -jnp.inf, lax.max,
                                 (1, 1, 2, 2), (1, 1, 2, 2), 'VALID')

    y = pool(jax.nn.relu(conv(x, wc1, bc1)))
    y = pool(jax.nn.relu(conv(y, wc2, bc2)))
    y = pool(jax.nn.relu(conv(y, wc3, bc3)))
    y = y.reshape(y.shape[0], -1)
    y = jax.nn.relu(y @ wf1.T + bf1)
    return y @ wf2.T + bf2


if __name__ == "__main__":
    B = 2
    key = jax.random.PRNGKey(0)
    ks = jax.random.split(key, 11)
    f32 = jnp.float32

    # LeNet's fc1 = Linear(8*9*9, 240) implies a (1, 100, 100) input image.
    x = jax.random.normal(ks[0], (B, 1, 100, 100), dtype=f32)
    params = (
        jax.random.normal(ks[1], (2, 1, 5, 5), dtype=f32) * 0.1,    # conv1 W
        jax.random.normal(ks[2], (2,), dtype=f32) * 0.1,            # conv1 b
        jax.random.normal(ks[3], (4, 2, 5, 5), dtype=f32) * 0.1,    # conv2 W
        jax.random.normal(ks[4], (4,), dtype=f32) * 0.1,            # conv2 b
        jax.random.normal(ks[5], (8, 4, 5, 5), dtype=f32) * 0.1,    # conv3 W
        jax.random.normal(ks[6], (8,), dtype=f32) * 0.1,            # conv3 b
        jax.random.normal(ks[7], (240, 648), dtype=f32) * 0.05,     # fc1 W
        jax.random.normal(ks[8], (240,), dtype=f32) * 0.05,         # fc1 b
        jax.random.normal(ks[9], (100, 240), dtype=f32) * 0.05,     # fc2 W
        jax.random.normal(ks[10], (100,), dtype=f32) * 0.05,        # fc2 b
    )

    out = lenet_forward(x, params)
    out = jax.block_until_ready(out)

    ref = _lenet_reference(x, params)
    assert out.shape == (B, 100), out.shape
    max_err = float(jnp.max(jnp.abs(out - ref)))
    assert jnp.allclose(out, ref, atol=2e-2, rtol=2e-2), f"max abs err {max_err}"

    print("KERNEL_OK")
</pallas_src>

<mosaic_0001>
module attributes {stable_mosaic.version = 11 : i64} {
  func.func @_lenet_kernel(%arg0: i32, %arg1: memref<1x1x100x100xf32, #tpu.memory_space<vmem>>, %arg2: memref<5x100x192xf32, #tpu.memory_space<vmem>>, %arg3: memref<1x192xf32, #tpu.memory_space<vmem>>, %arg4: memref<48x95xf32, #tpu.memory_space<vmem>>, %arg5: memref<191x96xf32, #tpu.memory_space<vmem>>, %arg6: memref<5x96x176xf32, #tpu.memory_space<vmem>>, %arg7: memref<1x176xf32, #tpu.memory_space<vmem>>, %arg8: memref<22x43xf32, #tpu.memory_space<vmem>>, %arg9: memref<175x88xf32, #tpu.memory_space<vmem>>, %arg10: memref<5x88x144xf32, #tpu.memory_space<vmem>>, %arg11: memref<1x144xf32, #tpu.memory_space<vmem>>, %arg12: memref<9x17xf32, #tpu.memory_space<vmem>>, %arg13: memref<143x72xf32, #tpu.memory_space<vmem>>, %arg14: memref<9x72x240xf32, #tpu.memory_space<vmem>>, %arg15: memref<1x240xf32, #tpu.memory_space<vmem>>, %arg16: memref<240x100xf32, #tpu.memory_space<vmem>>, %arg17: memref<1x100xf32, #tpu.memory_space<vmem>>, %arg18: memref<1x1x100xf32, #tpu.memory_space<vmem>>, %arg19: memref<48x96xf32, #tpu.memory_space<vmem>>, %arg20: memref<22x88xf32, #tpu.memory_space<vmem>>, %arg21: memref<9x72xf32, #tpu.memory_space<vmem>>) attributes {dimension_semantics = [#tpu.dimension_semantics<parallel>], iteration_bounds = array<i64: 2>, scalar_prefetch = 0 : i64, scratch_operands = 3 : i64, tpu.core_type = #tpu.core_type<tc>, window_params = [{transform_indices = @transform_0, window_bounds = array<i64: 1, 1, 100, 100>}, {pipeline_mode = #tpu.pipeline_mode<synchronous>, transform_indices = @transform_1, window_bounds = array<i64: 5, 100, 192>}, {pipeline_mode = #tpu.pipeline_mode<synchronous>, transform_indices = @transform_2, window_bounds = array<i64: 1, 192>}, {pipeline_mode = #tpu.pipeline_mode<synchronous>, transform_indices = @transform_3, window_bounds = array<i64: 48, 95>}, {pipeline_mode = #tpu.pipeline_mode<synchronous>, transform_indices = @transform_4, window_bounds = array<i64: 191, 96>}, {pipeline_mode = #tpu.pipeline_mode<synchronous>, transform_indices = @transform_5, window_bounds = array<i64: 5, 96, 176>}, {pipeline_mode = #tpu.pipeline_mode<synchronous>, transform_indices = @transform_6, window_bounds = array<i64: 1, 176>}, {pipeline_mode = #tpu.pipeline_mode<synchronous>, transform_indices = @transform_7, window_bounds = array<i64: 22, 43>}, {pipeline_mode = #tpu.pipeline_mode<synchronous>, transform_indices = @transform_8, window_bounds = array<i64: 175, 88>}, {pipeline_mode = #tpu.pipeline_mode<synchronous>, transform_indices = @transform_9, window_bounds = array<i64: 5, 88, 144>}, {pipeline_mode = #tpu.pipeline_mode<synchronous>, transform_indices = @transform_10, window_bounds = array<i64: 1, 144>}, {pipeline_mode = #tpu.pipeline_mode<synchronous>, transform_indices = @transform_11, window_bounds = array<i64: 9, 17>}, {pipeline_mode = #tpu.pipeline_mode<synchronous>, transform_indices = @transform_12, window_bounds = array<i64: 143, 72>}, {pipeline_mode = #tpu.pipeline_mode<synchronous>, transform_indices = @transform_13, window_bounds = array<i64: 9, 72, 240>}, {pipeline_mode = #tpu.pipeline_mode<synchronous>, transform_indices = @transform_14, window_bounds = array<i64: 1, 240>}, {pipeline_mode = #tpu.pipeline_mode<synchronous>, transform_indices = @transform_15, window_bounds = array<i64: 240, 100>}, {pipeline_mode = #tpu.pipeline_mode<synchronous>, transform_indices = @transform_16, window_bounds = array<i64: 1, 100>}, {transform_indices = @transform_17, window_bounds = array<i64: 1, 1, 100>}]} {
    %c0 = arith.constant 0 : index
    %c0_0 = arith.constant 0 : index
    %c0_1 = arith.constant 0 : index
    %c0_2 = arith.constant 0 : index
    %0 = vector.load %arg1[%c0, %c0_0, %c0_1, %c0_2] : memref<1x1x100x100xf32, #tpu.memory_space<vmem>>, vector<1x1x96x100xf32>
    %1 = vector.shape_cast %0 : vector<1x1x96x100xf32> to vector<96x100xf32>
    %c0_3 = arith.constant 0 : index
    %c0_4 = arith.constant 0 : index
    %c0_5 = arith.constant 0 : index
    %2 = vector.load %arg2[%c0_3, %c0_4, %c0_5] : memref<5x100x192xf32, #tpu.memory_space<vmem>>, vector<1x100x192xf32>
    %3 = vector.shape_cast %2 : vector<1x100x192xf32> to vector<100x192xf32>
    %cst = arith.constant dense<0.000000e+00> : vector<96x192xf32>
    %4 = tpu.matmul %1, %3, %cst {dimension_numbers = #tpu.dot_dimension_numbers<[1], [0], [0], [1], [0, 0, 1, 1], [], []>} : vector<96x100xf32>, vector<100x192xf32>, vector<96x192xf32> -> vector<96x192xf32>
    %c0_6 = arith.constant 0 : index
    %c0_7 = arith.constant 0 : index
    %c1 = arith.constant 1 : index
    %c0_8 = arith.constant 0 : index
    %5 = vector.load %arg1[%c0_6, %c0_7, %c1, %c0_8] : memref<1x1x100x100xf32, #tpu.memory_space<vmem>>, vector<1x1x96x100xf32>
    %6 = vector.shape_cast %5 : vector<1x1x96x100xf32> to vector<96x100xf32>
    %c1_9 = arith.constant 1 : index
    %c0_10 = arith.constant 0 : index
    %c0_11 = arith.constant 0 : index
    %7 = vector.load %arg2[%c1_9, %c0_10, %c0_11] : memref<5x100x192xf32, #tpu.memory_space<vmem>>, vector<1x100x192xf32>
    %8 = vector.shape_cast %7 : vector<1x100x192xf32> to vector<100x192xf32>
    %cst_12 = arith.constant dense<0.000000e+00> : vector<96x192xf32>
    %9 = tpu.matmul %6, %8, %cst_12 {dimension_numbers = #tpu.dot_dimension_numbers<[1], [0], [0], [1], [0, 0, 1, 1], [], []>} : vector<96x100xf32>, vector<100x192xf32>, vector<96x192xf32> -> vector<96x192xf32>
    %10 = arith.addf %4, %9 : vector<96x192xf32>
    %c0_13 = arith.constant 0 : index
    %c0_14 = arith.constant 0 : index
    %c2 = arith.constant 2 : index
    %c0_15 = arith.constant 0 : index
    %11 = vector.load %arg1[%c0_13, %c0_14, %c2, %c0_15] : memref<1x1x100x100xf32, #tpu.memory_space<vmem>>, vector<1x1x96x100xf32>
    %12 = vector.shape_cast %11 : vector<1x1x96x100xf32> to vector<96x100xf32>
    %c2_16 = arith.constant 2 : index
    %c0_17 = arith.constant 0 : index
    %c0_18 = arith.constant 0 : index
    %13 = vector.load %arg2[%c2_16, %c0_17, %c0_18] : memref<5x100x192xf32, #tpu.memory_space<vmem>>, vector<1x100x192xf32>
    %14 = vector.shape_cast %13 : vector<1x100x192xf32> to vector<100x192xf32>
    %cst_19 = arith.constant dense<0.000000e+00> : vector<96x192xf32>
    %15 = tpu.matmul %12, %14, %cst_19 {dimension_numbers = #tpu.dot_dimension_numbers<[1], [0], [0], [1], [0, 0, 1, 1], [], []>} : vector<96x100xf32>, vector<100x192xf32>, vector<96x192xf32> -> vector<96x192xf32>
    %16 = arith.addf %10, %15 : vector<96x192xf32>
    %c0_20 = arith.constant 0 : index
    %c0_21 = arith.constant 0 : index
    %c3 = arith.constant 3 : index
    %c0_22 = arith.constant 0 : index
    %17 = vector.load %arg1[%c0_20, %c0_21, %c3, %c0_22] : memref<1x1x100x100xf32, #tpu.memory_space<vmem>>, vector<1x1x96x100xf32>
    %18 = vector.shape_cast %17 : vector<1x1x96x100xf32> to vector<96x100xf32>
    %c3_23 = arith.constant 3 : index
    %c0_24 = arith.constant 0 : index
    %c0_25 = arith.constant 0 : index
    %19 = vector.load %arg2[%c3_23, %c0_24, %c0_25] : memref<5x100x192xf32, #tpu.memory_space<vmem>>, vector<1x100x192xf32>
    %20 = vector.shape_cast %19 : vector<1x100x192xf32> to vector<100x192xf32>
    %cst_26 = arith.constant dense<0.000000e+00> : vector<96x192xf32>
    %21 = tpu.matmul %18, %20, %cst_26 {dimension_numbers = #tpu.dot_dimension_numbers<[1], [0], [0], [1], [0, 0, 1, 1], [], []>} : vector<96x100xf32>, vector<100x192xf32>, vector<96x192xf32> -> vector<96x192xf32>
    %22 = arith.addf %16, %21 : vector<96x192xf32>
    %c0_27 = arith.constant 0 : index
    %c0_28 = arith.constant 0 : index
    %c4 = arith.constant 4 : index
    %c0_29 = arith.constant 0 : index
    %23 = vector.load %arg1[%c0_27, %c0_28, %c4, %c0_29] : memref<1x1x100x100xf32, #tpu.memory_space<vmem>>, vector<1x1x96x100xf32>
    %24 = vector.shape_cast %23 : vector<1x1x96x100xf32> to vector<96x100xf32>
    %c4_30 = arith.constant 4 : index
    %c0_31 = arith.constant 0 : index
    %c0_32 = arith.constant 0 : index
    %25 = vector.load %arg2[%c4_30, %c0_31, %c0_32] : memref<5x100x192xf32, #tpu.memory_space<vmem>>, vector<1x100x192xf32>
    %26 = vector.shape_cast %25 : vector<1x100x192xf32> to vector<100x192xf32>
    %cst_33 = arith.constant dense<0.000000e+00> : vector<96x192xf32>
    %27 = tpu.matmul %24, %26, %cst_33 {dimension_numbers = #tpu.dot_dimension_numbers<[1], [0], [0], [1], [0, 0, 1, 1], [], []>} : vector<96x100xf32>, vector<100x192xf32>, vector<96x192xf32> -> vector<96x192xf32>
    %28 = arith.addf %22, %27 : vector<96x192xf32>
    %c0_34 = arith.constant 0 : index
    %c0_35 = arith.constant 0 : index
    %29 = vector.load %arg3[%c0_34, %c0_35] : memref<1x192xf32, #tpu.memory_space<vmem>>, vector<1x192xf32>
    %30 = vector.broadcast %29 : vector<1x192xf32> to vector<96x192xf32>
    %31 = arith.addf %28, %30 : vector<96x192xf32>
    %cst_36 = arith.constant 0.000000e+00 : f32
    %32 = vector.broadcast %cst_36 : f32 to vector<96x192xf32>
    %33 = arith.maximumf %31, %32 : vector<96x192xf32>
    %34 = vector.extract_strided_slice %33 {offsets = [0, 0], sizes = [96, 191], strides = [1, 1]} : vector<96x192xf32> to vector<96x191xf32>
    %35 = vector.extract_strided_slice %33 {offsets = [0, 1], sizes = [96, 191], strides = [1, 1]} : vector<96x192xf32> to vector<96x191xf32>
    %36 = arith.maximumf %34, %35 : vector<96x191xf32>
    %37 = vector.extract_strided_slice %36 {offsets = [0, 0], sizes = [95, 191], strides = [1, 1]} : vector<96x191xf32> to vector<95x191xf32>
    %38 = vector.extract_strided_slice %36 {offsets = [1, 0], sizes = [95, 191], strides = [1, 1]} : vector<96x191xf32> to vector<95x191xf32>
    %39 = arith.maximumf %37, %38 : vector<95x191xf32>
    %c0_37 = arith.constant 0 : index
    %c0_38 = arith.constant 0 : index
    %40 = vector.load %arg4[%c0_37, %c0_38] : memref<48x95xf32, #tpu.memory_space<vmem>>, vector<48x95xf32>
    %cst_39 = arith.constant dense<0.000000e+00> : vector<48x191xf32>
    %41 = tpu.matmul %40, %39, %cst_39 {dimension_numbers = #tpu.dot_dimension_numbers<[1], [0], [0], [1], [0, 0, 1, 1], [], []>} : vector<48x95xf32>, vector<95x191xf32>, vector<48x191xf32> -> vector<48x191xf32>
    %c0_40 = arith.constant 0 : index
    %c0_41 = arith.constant 0 : index
    %42 = vector.load %arg5[%c0_40, %c0_41] : memref<191x96xf32, #tpu.memory_space<vmem>>, vector<191x96xf32>
    %cst_42 = arith.constant dense<0.000000e+00> : vector<48x96xf32>
    %43 = tpu.matmul %41, %42, %cst_42 {dimension_numbers = #tpu.dot_dimension_numbers<[1], [0], [0], [1], [0, 0, 1, 1], [], []>} : vector<48x191xf32>, vector<191x96xf32>, vector<48x96xf32> -> vector<48x96xf32>
    %c0_43 = arith.constant 0 : index
    %c0_44 = arith.constant 0 : index
    %44 = vector.load %arg19[%c0_43, %c0_44] : memref<48x96xf32, #tpu.memory_space<vmem>>, vector<48x96xf32>
    tpu.vector_store %arg19[%c0_43, %c0_44], %43 {strides = array<i32>} : memref<48x96xf32, #tpu.memory_space<vmem>>, vector<48x96xf32>,
    %c0_45 = arith.constant 0 : index
    %c0_46 = arith.constant 0 : index
    %45 = vector.load %arg19[%c0_45, %c0_46] : memref<48x96xf32, #tpu.memory_space<vmem>>, vector<44x96xf32>
    %c0_47 = arith.constant 0 : index
    %c0_48 = arith.constant 0 : index
    %c0_49 = arith.constant 0 : index
    %46 = vector.load %arg6[%c0_47, %c0_48, %c0_49] : memref<5x96x176xf32, #tpu.memory_space<vmem>>, vector<1x96x176xf32>
    %47 = vector.shape_cast %46 : vector<1x96x176xf32> to vector<96x176xf32>
    %cst_50 = arith.constant dense<0.000000e+00> : vector<44x176xf32>
    %48 = tpu.matmul %45, %47, %cst_50 {dimension_numbers = #tpu.dot_dimension_numbers<[1], [0], [0], [1], [0, 0, 1, 1], [], []>} : vector<44x96xf32>, vector<96x176xf32>, vector<44x176xf32> -> vector<44x176xf32>
    %c1_51 = arith.constant 1 : index
    %c0_52 = arith.constant 0 : index
    %49 = vector.load %arg19[%c1_51, %c0_52] : memref<48x96xf32, #tpu.memory_space<vmem>>, vector<44x96xf32>
    %c1_53 = arith.constant 1 : index
    %c0_54 = arith.constant 0 : index
    %c0_55 = arith.constant 0 : index
    %50 = vector.load %arg6[%c1_53, %c0_54, %c0_55] : memref<5x96x176xf32, #tpu.memory_space<vmem>>, vector<1x96x176xf32>
    %51 = vector.shape_cast %50 : vector<1x96x176xf32> to vector<96x176xf32>
    %cst_56 = arith.constant dense<0.000000e+00> : vector<44x176xf32>
    %52 = tpu.matmul %49, %51, %cst_56 {dimension_numbers = #tpu.dot_dimension_numbers<[1], [0], [0], [1], [0, 0, 1, 1], [], []>} : vector<44x96xf32>, vector<96x176xf32>, vector<44x176xf32> -> vector<44x176xf32>
    %53 = arith.addf %48, %52 : vector<44x176xf32>
    %c2_57 = arith.constant 2 : index
    %c0_58 = arith.constant 0 : index
    %54 = vector.load %arg19[%c2_57, %c0_58] : memref<48x96xf32, #tpu.memory_space<vmem>>, vector<44x96xf32>
    %c2_59 = arith.constant 2 : index
    %c0_60 = arith.constant 0 : index
    %c0_61 = arith.constant 0 : index
    %55 = vector.load %arg6[%c2_59, %c0_60, %c0_61] : memref<5x96x176xf32, #tpu.memory_space<vmem>>, vector<1x96x176xf32>
    %56 = vector.shape_cast %55 : vector<1x96x176xf32> to vector<96x176xf32>
    %cst_62 = arith.constant dense<0.000000e+00> : vector<44x176xf32>
    %57 = tpu.matmul %54, %56, %cst_62 {dimension_numbers = #tpu.dot_dimension_numbers<[1], [0], [0], [1], [0, 0, 1, 1], [], []>} : vector<44x96xf32>, vector<96x176xf32>, vector<44x176xf32> -> vector<44x176xf32>
    %58 = arith.addf %53, %57 : vector<44x176xf32>
    %c3_63 = arith.constant 3 : index
    %c0_64 = arith.constant 0 : index
    %59 = vector.load %arg19[%c3_63, %c0_64] : memref<48x96xf32, #tpu.memory_space<vmem>>, vector<44x96xf32>
    %c3_65 = arith.constant 3 : index
    %c0_66 = arith.constant 0 : index
    %c0_67 = arith.constant 0 : index
    %60 = vector.load %arg6[%c3_65, %c0_66, %c0_67] : memref<5x96x176xf32, #tpu.memory_space<vmem>>, vector<1x96x176xf32>
    %61 = vector.shape_cast %60 : vector<1x96x176xf32> to vector<96x176xf32>
    %cst_68 = arith.constant dense<0.000000e+00> : vector<44x176xf32>
    %62 = tpu.matmul %59, %61, %cst_68 {dimension_numbers = #tpu.dot_dimension_numbers<[1], [0], [0], [1], [0, 0, 1, 1], [], []>} : vector<44x96xf32>, vector<96x176xf32>, vector<44x176xf32> -> vector<44x176xf32>
    %63 = arith.addf %58, %62 : vector<44x176xf32>
    %c4_69 = arith.constant 4 : index
    %c0_70 = arith.constant 0 : index
    %64 = vector.load %arg19[%c4_69, %c0_70] : memref<48x96xf32, #tpu.memory_space<vmem>>, vector<44x96xf32>
    %c4_71 = arith.constant 4 : index
    %c0_72 = arith.constant 0 : index
    %c0_73 = arith.constant 0 : index
    %65 = vector.load %arg6[%c4_71, %c0_72, %c0_73] : memref<5x96x176xf32, #tpu.memory_space<vmem>>, vector<1x96x176xf32>
    %66 = vector.shape_cast %65 : vector<1x96x176xf32> to vector<96x176xf32>
    %cst_74 = arith.constant dense<0.000000e+00> : vector<44x176xf32>
    %67 = tpu.matmul %64, %66, %cst_74 {dimension_numbers = #tpu.dot_dimension_numbers<[1], [0], [0], [1], [0, 0, 1, 1], [], []>} : vector<44x96xf32>, vector<96x176xf32>, vector<44x176xf32> -> vector<44x176xf32>
    %68 = arith.addf %63, %67 : vector<44x176xf32>
    %c0_75 = arith.constant 0 : index
    %c0_76 = arith.constant 0 : index
    %69 = vector.load %arg7[%c0_75, %c0_76] : memref<1x176xf32, #tpu.memory_space<vmem>>, vector<1x176xf32>
    %70 = vector.broadcast %69 : vector<1x176xf32> to vector<44x176xf32>
    %71 = arith.addf %68, %70 : vector<44x176xf32>
    %cst_77 = arith.constant 0.000000e+00 : f32
    %72 = vector.broadcast %cst_77 : f32 to vector<44x176xf32>
    %73 = arith.maximumf %71, %72 : vector<44x176xf32>
    %74 = vector.extract_strided_slice %73 {offsets = [0, 0], sizes = [44, 175], strides = [1, 1]} : vector<44x176xf32> to vector<44x175xf32>
    %75 = vector.extract_strided_slice %73 {offsets = [0, 1], sizes = [44, 175], strides = [1, 1]} : vector<44x176xf32> to vector<44x175xf32>
    %76 = arith.maximumf %74, %75 : vector<44x175xf32>
    %77 = vector.extract_strided_slice %76 {offsets = [0, 0], sizes = [43, 175], strides = [1, 1]} : vector<44x175xf32> to vector<43x175xf32>
    %78 = vector.extract_strided_slice %76 {offsets = [1, 0], sizes = [43, 175], strides = [1, 1]} : vector<44x175xf32> to vector<43x175xf32>
    %79 = arith.maximumf %77, %78 : vector<43x175xf32>
    %c0_78 = arith.constant 0 : index
    %c0_79 = arith.constant 0 : index
    %80 = vector.load %arg8[%c0_78, %c0_79] : memref<22x43xf32, #tpu.memory_space<vmem>>, vector<22x43xf32>
    %cst_80 = arith.constant dense<0.000000e+00> : vector<22x175xf32>
    %81 = tpu.matmul %80, %79, %cst_80 {dimension_numbers = #tpu.dot_dimension_numbers<[1], [0], [0], [1], [0, 0, 1, 1], [], []>} : vector<22x43xf32>, vector<43x175xf32>, vector<22x175xf32> -> vector<22x175xf32>
    %c0_81 = arith.constant 0 : index
    %c0_82 = arith.constant 0 : index
    %82 = vector.load %arg9[%c0_81, %c0_82] : memref<175x88xf32, #tpu.memory_space<vmem>>, vector<175x88xf32>
    %cst_83 = arith.constant dense<0.000000e+00> : vector<22x88xf32>
    %83 = tpu.matmul %81, %82, %cst_83 {dimension_numbers = #tpu.dot_dimension_numbers<[1], [0], [0], [1], [0, 0, 1, 1], [], []>} : vector<22x175xf32>, vector<175x88xf32>, vector<22x88xf32> -> vector<22x88xf32>
    %c0_84 = arith.constant 0 : index
    %c0_85 = arith.constant 0 : index
    %84 = vector.load %arg20[%c0_84, %c0_85] : memref<22x88xf32, #tpu.memory_space<vmem>>, vector<22x88xf32>
    tpu.vector_store %arg20[%c0_84, %c0_85], %83 {strides = array<i32>} : memref<22x88xf32, #tpu.memory_space<vmem>>, vector<22x88xf32>,
    %c0_86 = arith.constant 0 : index
    %c0_87 = arith.constant 0 : index
    %85 = vector.load %arg20[%c0_86, %c0_87] : memref<22x88xf32, #tpu.memory_space<vmem>>, vector<18x88xf32>
    %c0_88 = arith.constant 0 : index
    %c0_89 = arith.constant 0 : index
    %c0_90 = arith.constant 0 : index
    %86 = vector.load %arg10[%c0_88, %c0_89, %c0_90] : memref<5x88x144xf32, #tpu.memory_space<vmem>>, vector<1x88x144xf32>
    %87 = vector.shape_cast %86 : vector<1x88x144xf32> to vector<88x144xf32>
    %cst_91 = arith.constant dense<0.000000e+00> : vector<18x144xf32>
    %88 = tpu.matmul %85, %87, %cst_91 {dimension_numbers = #tpu.dot_dimension_numbers<[1], [0], [0], [1], [0, 0, 1, 1], [], []>} : vector<18x88xf32>, vector<88x144xf32>, vector<18x144xf32> -> vector<18x144xf32>
    %c1_92 = arith.constant 1 : index
    %c0_93 = arith.constant 0 : index
    %89 = vector.load %arg20[%c1_92, %c0_93] : memref<22x88xf32, #tpu.memory_space<vmem>>, vector<18x88xf32>
    %c1_94 = arith.constant 1 : index
    %c0_95 = arith.constant 0 : index
    %c0_96 = arith.constant 0 : index
    %90 = vector.load %arg10[%c1_94, %c0_95, %c0_96] : memref<5x88x144xf32, #tpu.memory_space<vmem>>, vector<1x88x144xf32>
    %91 = vector.shape_cast %90 : vector<1x88x144xf32> to vector<88x144xf32>
    %cst_97 = arith.constant dense<0.000000e+00> : vector<18x144xf32>
    %92 = tpu.matmul %89, %91, %cst_97 {dimension_numbers = #tpu.dot_dimension_numbers<[1], [0], [0], [1], [0, 0, 1, 1], [], []>} : vector<18x88xf32>, vector<88x144xf32>, vector<18x144xf32> -> vector<18x144xf32>
    %93 = arith.addf %88, %92 : vector<18x144xf32>
    %c2_98 = arith.constant 2 : index
    %c0_99 = arith.constant 0 : index
    %94 = vector.load %arg20[%c2_98, %c0_99] : memref<22x88xf32, #tpu.memory_space<vmem>>, vector<18x88xf32>
    %c2_100 = arith.constant 2 : index
    %c0_101 = arith.constant 0 : index
    %c0_102 = arith.constant 0 : index
    %95 = vector.load %arg10[%c2_100, %c0_101, %c0_102] : memref<5x88x144xf32, #tpu.memory_space<vmem>>, vector<1x88x144xf32>
    %96 = vector.shape_cast %95 : vector<1x88x144xf32> to vector<88x144xf32>
    %cst_103 = arith.constant dense<0.000000e+00> : vector<18x144xf32>
    %97 = tpu.matmul %94, %96, %cst_103 {dimension_numbers = #tpu.dot_dimension_numbers<[1], [0], [0], [1], [0, 0, 1, 1], [], []>} : vector<18x88xf32>, vector<88x144xf32>, vector<18x144xf32> -> vector<18x144xf32>
    %98 = arith.addf %93, %97 : vector<18x144xf32>
    %c3_104 = arith.constant 3 : index
    %c0_105 = arith.constant 0 : index
    %99 = vector.load %arg20[%c3_104, %c0_105] : memref<22x88xf32, #tpu.memory_space<vmem>>, vector<18x88xf32>
    %c3_106 = arith.constant 3 : index
    %c0_107 = arith.constant 0 : index
    %c0_108 = arith.constant 0 : index
    %100 = vector.load %arg10[%c3_106, %c0_107, %c0_108] : memref<5x88x144xf32, #tpu.memory_space<vmem>>, vector<1x88x144xf32>
    %101 = vector.shape_cast %100 : vector<1x88x144xf32> to vector<88x144xf32>
    %cst_109 = arith.constant dense<0.000000e+00> : vector<18x144xf32>
    %102 = tpu.matmul %99, %101, %cst_109 {dimension_numbers = #tpu.dot_dimension_numbers<[1], [0], [0], [1], [0, 0, 1, 1], [], []>} : vector<18x88xf32>, vector<88x144xf32>, vector<18x144xf32> -> vector<18x144xf32>
    %103 = arith.addf %98, %102 : vector<18x144xf32>
    %c4_110 = arith.constant 4 : index
    %c0_111 = arith.constant 0 : index
    %104 = vector.load %arg20[%c4_110, %c0_111] : memref<22x88xf32, #tpu.memory_space<vmem>>, vector<18x88xf32>
    %c4_112 = arith.constant 4 : index
    %c0_113 = arith.constant 0 : index
    %c0_114 = arith.constant 0 : index
    %105 = vector.load %arg10[%c4_112, %c0_113, %c0_114] : memref<5x88x144xf32, #tpu.memory_space<vmem>>, vector<1x88x144xf32>
    %106 = vector.shape_cast %105 : vector<1x88x144xf32> to vector<88x144xf32>
    %cst_115 = arith.constant dense<0.000000e+00> : vector<18x144xf32>
    %107 = tpu.matmul %104, %106, %cst_115 {dimension_numbers = #tpu.dot_dimension_numbers<[1], [0], [0], [1], [0, 0, 1, 1], [], []>} : vector<18x88xf32>, vector<88x144xf32>, vector<18x144xf32> -> vector<18x144xf32>
    %108 = arith.addf %103, %107 : vector<18x144xf32>
    %c0_116 = arith.constant 0 : index
    %c0_117 = arith.constant 0 : index
    %109 = vector.load %arg11[%c0_116, %c0_117] : memref<1x144xf32, #tpu.memory_space<vmem>>, vector<1x144xf32>
    %110 = vector.broadcast %109 : vector<1x144xf32> to vector<18x144xf32>
    %111 = arith.addf %108, %110 : vector<18x144xf32>
    %cst_118 = arith.constant 0.000000e+00 : f32
    %112 = vector.broadcast %cst_118 : f32 to vector<18x144xf32>
    %113 = arith.maximumf %111, %112 : vector<18x144xf32>
    %114 = vector.extract_strided_slice %113 {offsets = [0, 0], sizes = [18, 143], strides = [1, 1]} : vector<18x144xf32> to vector<18x143xf32>
    %115 = vector.extract_strided_slice %113 {offsets = [0, 1], sizes = [18, 143], strides = [1, 1]} : vector<18x144xf32> to vector<18x143xf32>
    %116 = arith.maximumf %114, %115 : vector<18x143xf32>
    %117 = vector.extract_strided_slice %116 {offsets = [0, 0], sizes = [17, 143], strides = [1, 1]} : vector<18x143xf32> to vector<17x143xf32>
    %118 = vector.extract_strided_slice %116 {offsets = [1, 0], sizes = [17, 143], strides = [1, 1]} : vector<18x143xf32> to vector<17x143xf32>
    %119 = arith.maximumf %117, %118 : vector<17x143xf32>
    %c0_119 = arith.constant 0 : index
    %c0_120 = arith.constant 0 : index
    %120 = vector.load %arg12[%c0_119, %c0_120] : memref<9x17xf32, #tpu.memory_space<vmem>>, vector<9x17xf32>
    %cst_121 = arith.constant dense<0.000000e+00> : vector<9x143xf32>
    %121 = tpu.matmul %120, %119, %cst_121 {dimension_numbers = #tpu.dot_dimension_numbers<[1], [0], [0], [1], [0, 0, 1, 1], [], []>} : vector<9x17xf32>, vector<17x143xf32>, vector<9x143xf32> -> vector<9x143xf32>
    %c0_122 = arith.constant 0 : index
    %c0_123 = arith.constant 0 : index
    %122 = vector.load %arg13[%c0_122, %c0_123] : memref<143x72xf32, #tpu.memory_space<vmem>>, vector<143x72xf32>
    %cst_124 = arith.constant dense<0.000000e+00> : vector<9x72xf32>
    %123 = tpu.matmul %121, %122, %cst_124 {dimension_numbers = #tpu.dot_dimension_numbers<[1], [0], [0], [1], [0, 0, 1, 1], [], []>} : vector<9x143xf32>, vector<143x72xf32>, vector<9x72xf32> -> vector<9x72xf32>
    %c0_125 = arith.constant 0 : index
    %c0_126 = arith.constant 0 : index
    %124 = vector.load %arg21[%c0_125, %c0_126] : memref<9x72xf32, #tpu.memory_space<vmem>>, vector<9x72xf32>
    tpu.vector_store %arg21[%c0_125, %c0_126], %123 {strides = array<i32>} : memref<9x72xf32, #tpu.memory_space<vmem>>, vector<9x72xf32>,
    %c0_127 = arith.constant 0 : index
    %c0_128 = arith.constant 0 : index
    %125 = vector.load %arg21[%c0_127, %c0_128] : memref<9x72xf32, #tpu.memory_space<vmem>>, vector<1x72xf32>
    %c0_129 = arith.constant 0 : index
    %c0_130 = arith.constant 0 : index
    %c0_131 = arith.constant 0 : index
    %126 = vector.load %arg14[%c0_129, %c0_130, %c0_131] : memref<9x72x240xf32, #tpu.memory_space<vmem>>, vector<1x72x240xf32>
    %127 = vector.shape_cast %126 : vector<1x72x240xf32> to vector<72x240xf32>
    %cst_132 = arith.constant dense<0.000000e+00> : vector<1x240xf32>
    %128 = tpu.matmul %125, %127, %cst_132 {dimension_numbers = #tpu.dot_dimension_numbers<[1], [0], [0], [1], [0, 0, 1, 1], [], []>} : vector<1x72xf32>, vector<72x240xf32>, vector<1x240xf32> -> vector<1x240xf32>
    %c1_133 = arith.constant 1 : index
    %c0_134 = arith.constant 0 : index
    %129 = vector.load %arg21[%c1_133, %c0_134] : memref<9x72xf32, #tpu.memory_space<vmem>>, vector<1x72xf32>
    %c1_135 = arith.constant 1 : index
    %c0_136 = arith.constant 0 : index
    %c0_137 = arith.constant 0 : index
    %130 = vector.load %arg14[%c1_135, %c0_136, %c0_137] : memref<9x72x240xf32, #tpu.memory_space<vmem>>, vector<1x72x240xf32>
    %131 = vector.shape_cast %130 : vector<1x72x240xf32> to vector<72x240xf32>
    %cst_138 = arith.constant dense<0.000000e+00> : vector<1x240xf32>
    %132 = tpu.matmul %129, %131, %cst_138 {dimension_numbers = #tpu.dot_dimension_numbers<[1], [0], [0], [1], [0, 0, 1, 1], [], []>} : vector<1x72xf32>, vector<72x240xf32>, vector<1x240xf32> -> vector<1x240xf32>
    %133 = arith.addf %128, %132 : vector<1x240xf32>
    %c2_139 = arith.constant 2 : index
    %c0_140 = arith.constant 0 : index
    %134 = vector.load %arg21[%c2_139, %c0_140] : memref<9x72xf32, #tpu.memory_space<vmem>>, vector<1x72xf32>
    %c2_141 = arith.constant 2 : index
    %c0_142 = arith.constant 0 : index
    %c0_143 = arith.constant 0 : index
    %135 = vector.load %arg14[%c2_141, %c0_142, %c0_143] : memref<9x72x240xf32, #tpu.memory_space<vmem>>, vector<1x72x240xf32>
    %136 = vector.shape_cast %135 : vector<1x72x240xf32> to vector<72x240xf32>
    %cst_144 = arith.constant dense<0.000000e+00> : vector<1x240xf32>
    %137 = tpu.matmul %134, %136, %cst_144 {dimension_numbers = #tpu.dot_dimension_numbers<[1], [0], [0], [1], [0, 0, 1, 1], [], []>} : vector<1x72xf32>, vector<72x240xf32>, vector<1x240xf32> -> vector<1x240xf32>
    %138 = arith.addf %133, %137 : vector<1x240xf32>
    %c3_145 = arith.constant 3 : index
    %c0_146 = arith.constant 0 : index
    %139 = vector.load %arg21[%c3_145, %c0_146] : memref<9x72xf32, #tpu.memory_space<vmem>>, vector<1x72xf32>
    %c3_147 = arith.constant 3 : index
    %c0_148 = arith.constant 0 : index
    %c0_149 = arith.constant 0 : index
    %140 = vector.load %arg14[%c3_147, %c0_148, %c0_149] : memref<9x72x240xf32, #tpu.memory_space<vmem>>, vector<1x72x240xf32>
    %141 = vector.shape_cast %140 : vector<1x72x240xf32> to vector<72x240xf32>
    %cst_150 = arith.constant dense<0.000000e+00> : vector<1x240xf32>
    %142 = tpu.matmul %139, %141, %cst_150 {dimension_numbers = #tpu.dot_dimension_numbers<[1], [0], [0], [1], [0, 0, 1, 1], [], []>} : vector<1x72xf32>, vector<72x240xf32>, vector<1x240xf32> -> vector<1x240xf32>
    %143 = arith.addf %138, %142 : vector<1x240xf32>
    %c4_151 = arith.constant 4 : index
    %c0_152 = arith.constant 0 : index
    %144 = vector.load %arg21[%c4_151, %c0_152] : memref<9x72xf32, #tpu.memory_space<vmem>>, vector<1x72xf32>
    %c4_153 = arith.constant 4 : index
    %c0_154 = arith.constant 0 : index
    %c0_155 = arith.constant 0 : index
    %145 = vector.load %arg14[%c4_153, %c0_154, %c0_155] : memref<9x72x240xf32, #tpu.memory_space<vmem>>, vector<1x72x240xf32>
    %146 = vector.shape_cast %145 : vector<1x72x240xf32> to vector<72x240xf32>
    %cst_156 = arith.constant dense<0.000000e+00> : vector<1x240xf32>
    %147 = tpu.matmul %144, %146, %cst_156 {dimension_numbers = #tpu.dot_dimension_numbers<[1], [0], [0], [1], [0, 0, 1, 1], [], []>} : vector<1x72xf32>, vector<72x240xf32>, vector<1x240xf32> -> vector<1x240xf32>
    %148 = arith.addf %143, %147 : vector<1x240xf32>
    %c5 = arith.constant 5 : index
    %c0_157 = arith.constant 0 : index
    %149 = vector.load %arg21[%c5, %c0_157] : memref<9x72xf32, #tpu.memory_space<vmem>>, vector<1x72xf32>
    %c5_158 = arith.constant 5 : index
    %c0_159 = arith.constant 0 : index
    %c0_160 = arith.constant 0 : index
    %150 = vector.load %arg14[%c5_158, %c0_159, %c0_160] : memref<9x72x240xf32, #tpu.memory_space<vmem>>, vector<1x72x240xf32>
    %151 = vector.shape_cast %150 : vector<1x72x240xf32> to vector<72x240xf32>
    %cst_161 = arith.constant dense<0.000000e+00> : vector<1x240xf32>
    %152 = tpu.matmul %149, %151, %cst_161 {dimension_numbers = #tpu.dot_dimension_numbers<[1], [0], [0], [1], [0, 0, 1, 1], [], []>} : vector<1x72xf32>, vector<72x240xf32>, vector<1x240xf32> -> vector<1x240xf32>
    %153 = arith.addf %148, %152 : vector<1x240xf32>
    %c6 = arith.constant 6 : index
    %c0_162 = arith.constant 0 : index
    %154 = vector.load %arg21[%c6, %c0_162] : memref<9x72xf32, #tpu.memory_space<vmem>>, vector<1x72xf32>
    %c6_163 = arith.constant 6 : index
    %c0_164 = arith.constant 0 : index
    %c0_165 = arith.constant 0 : index
    %155 = vector.load %arg14[%c6_163, %c0_164, %c0_165] : memref<9x72x240xf32, #tpu.memory_space<vmem>>, vector<1x72x240xf32>
    %156 = vector.shape_cast %155 : vector<1x72x240xf32> to vector<72x240xf32>
    %cst_166 = arith.constant dense<0.000000e+00> : vector<1x240xf32>
    %157 = tpu.matmul %154, %156, %cst_166 {dimension_numbers = #tpu.dot_dimension_numbers<[1], [0], [0], [1], [0, 0, 1, 1], [], []>} : vector<1x72xf32>, vector<72x240xf32>, vector<1x240xf32> -> vector<1x240xf32>
    %158 = arith.addf %153, %157 : vector<1x240xf32>
    %c7 = arith.constant 7 : index
    %c0_167 = arith.constant 0 : index
    %159 = vector.load %arg21[%c7, %c0_167] : memref<9x72xf32, #tpu.memory_space<vmem>>, vector<1x72xf32>
    %c7_168 = arith.constant 7 : index
    %c0_169 = arith.constant 0 : index
    %c0_170 = arith.constant 0 : index
    %160 = vector.load %arg14[%c7_168, %c0_169, %c0_170] : memref<9x72x240xf32, #tpu.memory_space<vmem>>, vector<1x72x240xf32>
    %161 = vector.shape_cast %160 : vector<1x72x240xf32> to vector<72x240xf32>
    %cst_171 = arith.constant dense<0.000000e+00> : vector<1x240xf32>
    %162 = tpu.matmul %159, %161, %cst_171 {dimension_numbers = #tpu.dot_dimension_numbers<[1], [0], [0], [1], [0, 0, 1, 1], [], []>} : vector<1x72xf32>, vector<72x240xf32>, vector<1x240xf32> -> vector<1x240xf32>
    %163 = arith.addf %158, %162 : vector<1x240xf32>
    %c8 = arith.constant 8 : index
    %c0_172 = arith.constant 0 : index
    %164 = vector.load %arg21[%c8, %c0_172] : memref<9x72xf32, #tpu.memory_space<vmem>>, vector<1x72xf32>
    %c8_173 = arith.constant 8 : index
    %c0_174 = arith.constant 0 : index
    %c0_175 = arith.constant 0 : index
    %165 = vector.load %arg14[%c8_173, %c0_174, %c0_175] : memref<9x72x240xf32, #tpu.memory_space<vmem>>, vector<1x72x240xf32>
    %166 = vector.shape_cast %165 : vector<1x72x240xf32> to vector<72x240xf32>
    %cst_176 = arith.constant dense<0.000000e+00> : vector<1x240xf32>
    %167 = tpu.matmul %164, %166, %cst_176 {dimension_numbers = #tpu.dot_dimension_numbers<[1], [0], [0], [1], [0, 0, 1, 1], [], []>} : vector<1x72xf32>, vector<72x240xf32>, vector<1x240xf32> -> vector<1x240xf32>
    %168 = arith.addf %163, %167 : vector<1x240xf32>
    %c0_177 = arith.constant 0 : index
    %c0_178 = arith.constant 0 : index
    %169 = vector.load %arg15[%c0_177, %c0_178] : memref<1x240xf32, #tpu.memory_space<vmem>>, vector<1x240xf32>
    %170 = arith.addf %168, %169 : vector<1x240xf32>
    %cst_179 = arith.constant 0.000000e+00 : f32
    %171 = vector.broadcast %cst_179 : f32 to vector<1x240xf32>
    %172 = arith.maximumf %170, %171 : vector<1x240xf32>
    %c0_180 = arith.constant 0 : index
    %c0_181 = arith.constant 0 : index
    %173 = vector.load %arg16[%c0_180, %c0_181] : memref<240x100xf32, #tpu.memory_space<vmem>>, vector<240x100xf32>
    %cst_182 = arith.constant dense<0.000000e+00> : vector<1x100xf32>
    %174 = tpu.matmul %172, %173, %cst_182 {dimension_numbers = #tpu.dot_dimension_numbers<[1], [0], [0], [1], [0, 0, 1, 1], [], []>} : vector<1x240xf32>, vector<240x100xf32>, vector<1x100xf32> -> vector<1x100xf32>
    %c0_183 = arith.constant 0 : index
    %c0_184 = arith.constant 0 : index
    %175 = vector.load %arg17[%c0_183, %c0_184] : memref<1x100xf32, #tpu.memory_space<vmem>>, vector<1x100xf32>
    %176 = arith.addf %174, %175 : vector<1x100xf32>
    %c0_185 = arith.constant 0 : index
    %c0_186 = arith.constant 0 : index
    %c0_187 = arith.constant 0 : index
    %177 = vector.load %arg18[%c0_185, %c0_186, %c0_187] : memref<1x1x100xf32, #tpu.memory_space<vmem>>, vector<1x1x100xf32>
    %178 = vector.shape_cast %177 : vector<1x1x100xf32> to vector<1x100xf32>
    %179 = vector.shape_cast %176 : vector<1x100xf32> to vector<1x1x100xf32>
    tpu.vector_store %arg18[%c0_185, %c0_186, %c0_187], %179 {strides = array<i32>} : memref<1x1x100xf32, #tpu.memory_space<vmem>>, vector<1x1x100xf32>,
    return
  }
  func.func @transform_0(%arg0: i32) -> (i32, i32, i32, i32) {
    %c0_i32 = arith.constant 0 : i32
    %c0_i32_0 = arith.constant 0 : i32
    %c0_i32_1 = arith.constant 0 : i32
    %c0_i32_2 = arith.constant 0 : i32
    return %arg0, %c0_i32, %c0_i32_0, %c0_i32_1 : i32, i32, i32, i32
  }
  func.func @transform_1(%arg0: i32) -> (i32, i32, i32) {
    %c0_i32 = arith.constant 0 : i32
    %c0_i32_0 = arith.constant 0 : i32
    %c0_i32_1 = arith.constant 0 : i32
    %c0_i32_2 = arith.constant 0 : i32
    return %c0_i32, %c0_i32_0, %c0_i32_1 : i32, i32, i32
  }
  func.func @transform_2(%arg0: i32) -> (i32, i32) {
    %c0_i32 = arith.constant 0 : i32
    %c0_i32_0 = arith.constant 0 : i32
    %c0_i32_1 = arith.constant 0 : i32
    return %c0_i32, %c0_i32_0 : i32, i32
  }
  func.func @transform_3(%arg0: i32) -> (i32, i32) {
    %c0_i32 = arith.constant 0 : i32
    %c0_i32_0 = arith.constant 0 : i32
    %c0_i32_1 = arith.constant 0 : i32
    return %c0_i32, %c0_i32_0 : i32, i32
  }
  func.func @transform_4(%arg0: i32) -> (i32, i32) {
    %c0_i32 = arith.constant 0 : i32
    %c0_i32_0 = arith.constant 0 : i32
    %c0_i32_1 = arith.constant 0 : i32
    return %c0_i32, %c0_i32_0 : i32, i32
  }
  func.func @transform_5(%arg0: i32) -> (i32, i32, i32) {
    %c0_i32 = arith.constant 0 : i32
    %c0_i32_0 = arith.constant 0 : i32
    %c0_i32_1 = arith.constant 0 : i32
    %c0_i32_2 = arith.constant 0 : i32
    return %c0_i32, %c0_i32_0, %c0_i32_1 : i32, i32, i32
  }
  func.func @transform_6(%arg0: i32) -> (i32, i32) {
    %c0_i32 = arith.constant 0 : i32
    %c0_i32_0 = arith.constant 0 : i32
    %c0_i32_1 = arith.constant 0 : i32
    return %c0_i32, %c0_i32_0 : i32, i32
  }
  func.func @transform_7(%arg0: i32) -> (i32, i32) {
    %c0_i32 = arith.constant 0 : i32
    %c0_i32_0 = arith.constant 0 : i32
    %c0_i32_1 = arith.constant 0 : i32
    return %c0_i32, %c0_i32_0 : i32, i32
  }
  func.func @transform_8(%arg0: i32) -> (i32, i32) {
    %c0_i32 = arith.constant 0 : i32
    %c0_i32_0 = arith.constant 0 : i32
    %c0_i32_1 = arith.constant 0 : i32
    return %c0_i32, %c0_i32_0 : i32, i32
  }
  func.func @transform_9(%arg0: i32) -> (i32, i32, i32) {
    %c0_i32 = arith.constant 0 : i32
    %c0_i32_0 = arith.constant 0 : i32
    %c0_i32_1 = arith.constant 0 : i32
    %c0_i32_2 = arith.constant 0 : i32
    return %c0_i32, %c0_i32_0, %c0_i32_1 : i32, i32, i32
  }
  func.func @transform_10(%arg0: i32) -> (i32, i32) {
    %c0_i32 = arith.constant 0 : i32
    %c0_i32_0 = arith.constant 0 : i32
    %c0_i32_1 = arith.constant 0 : i32
    return %c0_i32, %c0_i32_0 : i32, i32
  }
  func.func @transform_11(%arg0: i32) -> (i32, i32) {
    %c0_i32 = arith.constant 0 : i32
    %c0_i32_0 = arith.constant 0 : i32
    %c0_i32_1 = arith.constant 0 : i32
    return %c0_i32, %c0_i32_0 : i32, i32
  }
  func.func @transform_12(%arg0: i32) -> (i32, i32) {
    %c0_i32 = arith.constant 0 : i32
    %c0_i32_0 = arith.constant 0 : i32
    %c0_i32_1 = arith.constant 0 : i32
    return %c0_i32, %c0_i32_0 : i32, i32
  }
  func.func @transform_13(%arg0: i32) -> (i32, i32, i32) {
    %c0_i32 = arith.constant 0 : i32
    %c0_i32_0 = arith.constant 0 : i32
    %c0_i32_1 = arith.constant 0 : i32
    %c0_i32_2 = arith.constant 0 : i32
    return %c0_i32, %c0_i32_0, %c0_i32_1 : i32, i32, i32
  }
  func.func @transform_14(%arg0: i32) -> (i32, i32) {
    %c0_i32 = arith.constant 0 : i32
    %c0_i32_0 = arith.constant 0 : i32
    %c0_i32_1 = arith.constant 0 : i32
    return %c0_i32, %c0_i32_0 : i32, i32
  }
  func.func @transform_15(%arg0: i32) -> (i32, i32) {
    %c0_i32 = arith.constant 0 : i32
    %c0_i32_0 = arith.constant 0 : i32
    %c0_i32_1 = arith.constant 0 : i32
    return %c0_i32, %c0_i32_0 : i32, i32
  }
  func.func @transform_16(%arg0: i32) -> (i32, i32) {
    %c0_i32 = arith.constant 0 : i32
    %c0_i32_0 = arith.constant 0 : i32
    %c0_i32_1 = arith.constant 0 : i32
    return %c0_i32, %c0_i32_0 : i32, i32
  }
  func.func @transform_17(%arg0: i32) -> (i32, i32, i32) {
    %c0_i32 = arith.constant 0 : i32
    %c0_i32_0 = arith.constant 0 : i32
    %c0_i32_1 = arith.constant 0 : i32
    return %arg0, %c0_i32, %c0_i32_0 : i32, i32, i32
  }
}

</mosaic_0001>

<bundles_post_ra>
// kernel: tpu_custom_call.1
= control target key start
LH: loop header
LB: loop body
LE: loop exit
PB: predicated region body
PF: predicated region fallthrough
CT: control target
= control target key end

     0   :  { %s9337_s0 = inlined_call_operand.vmem [shape: f32[2,1,100,100], index: 0, kind: input, shape index: {}]   ;;  %s9338_s1 = inlined_call_operand.vmem [shape: f32[5,100,192], index: 1, kind: input, shape index: {}]   ;;  %s9339_s2 = inlined_call_operand.vmem [shape: f32[1,192], index: 2, kind: input, shape index: {}]   ;;  %s9340_s3 = inlined_call_operand.vmem [shape: f32[48,95], index: 3, kind: input, shape index: {}]   ;;  %s9341_s4 = inlined_call_operand.vmem [shape: f32[191,96], index: 4, kind: input, shape index: {}]   ;;  %s9342_s5 = inlined_call_operand.vmem [shape: f32[5,96,176], index: 5, kind: input, shape index: {}]   ;;  %s9343_s6 = inlined_call_operand.vmem [shape: f32[1,176], index: 6, kind: input, shape index: {}]   ;;  %s9344_s7 = inlined_call_operand.vmem [shape: f32[22,43], index: 7, kind: input, shape index: {}]   ;;  %s9345_s8 = inlined_call_operand.vmem [shape: f32[175,88], index: 8, kind: input, shape index: {}]   ;;  %s9346_s9 = inlined_call_operand.vmem [shape: f32[5,88,144], index: 9, kind: input, shape index: {}]   ;;  %s9347_s10 = inlined_call_operand.vmem [shape: f32[1,144], index: 10, kind: input, shape index: {}]   ;;  %s9348_s11 = inlined_call_operand.vmem [shape: f32[9,17], index: 11, kind: input, shape index: {}]   ;;  %s9349_s12 = inlined_call_operand.vmem [shape: f32[143,72], index: 12, kind: input, shape index: {}]   ;;  %s9350_s13 = inlined_call_operand.vmem [shape: f32[9,72,240], index: 13, kind: input, shape index: {}]   ;;  %s9351_s14 = inlined_call_operand.vmem [shape: f32[1,240], index: 14, kind: input, shape index: {}]   ;;  %s9352_s15 = inlined_call_operand.vmem [shape: f32[240,100], index: 15, kind: input, shape index: {}]   ;;  %s9353_s16 = inlined_call_operand.vmem [shape: f32[1,100], index: 16, kind: input, shape index: {}]   ;;  %s9354_s17 = inlined_call_operand.hbm [shape: f32[2,1,100], index: 17, kind: output, shape index: {}]  }
   0x1   :  { %9372 = sst [smem:[#allocation44_spill]] %s9337_s0 }
   0x2   :  { %9373 = sst [smem:[#allocation45_spill]] %s9338_s1 }
   0x3   :  { %9374 = sst [smem:[#allocation46_spill]] %s9353_s16 }
   0x4   :  { %9375 = sst [smem:[#allocation47_spill]] %s9354_s17 }
   0x5   :  { %22 = vsyncpa [#allocation6], 0 }
   0x6   :  { %24 = vsyncpa [#allocation6 + $0x1], 0  ;;  %s6204_s24 = smov 0   ;;  %s6206_s25 = smov 0  }
   0x7   :  { %s6208_s26 = smov 0   ;;  %s6210_s27 = smov 0  }
   0x8 LB: > { %9376 = sst [smem:[#allocation8_spill]] %s6097_s24  ;;  %s6225_s28 = sadd.s32 4294967295, %s6109_s27   ;;  %s6109_s27 = sphi %s6210_s27, %s9459_s27   ;;  %s6105_s26 = sphi %s6208_s26, %s9461_s26   ;;  %s6101_s25 = sphi %s6206_s25, %s9463_s25   ;;  %s6097_s24 = sphi %s6204_s24, %s9462_s24  }
   0x9   : > { %9377 = sst [smem:[#allocation9_spill]] %s6105_s26  ;;  %s5411_s29 = sadd.s32 4294967294, %s6109_s27  }
   0xa   : > { %9378 = sst [smem:[#allocation10_spill]] %s6109_s27  ;;  %s6229_s0 = sadd.s32 1, %s6109_s27  }
   0xb   : > { %9379 = sst [smem:[#allocation11_spill]] %s6229_s0  ;;  %s399_s30 = sadd.s32 1, %s6105_s26 }
   0xc   : > { %s396_s18 = ssub.s32 %s6109_s27, %s6229_s0  ;;  %p409_p0 = scmp.ne.s32.totalorder %s6105_s26, %s6101_s25 }
   0xd   : > { %p397_p1 = scmp.eq.s32.totalorder %s396_s18, 0  ;;  %p410_p2 = scmp.eq.s32.totalorder %s6225_s28, 1 }
   0xe   : > { %p415_p3 = scmp.ne.s32.totalorder %s6101_s25, %s6097_s24  ;;  %p416_p4 = scmp.eq.s32.totalorder %s5411_s29, 1 }
   0xf   : > { %s6240_s19 = scalar_select %p397_p1, %s6105_s26, %s399_s30  }
  0x10   : > { %p6242_p5 = por %p410_p2, %p409_p0  ;;  %p6246_p6 = por %p416_p4, %p415_p3 }
  0x11   : > { %9380 = sst [smem:[#allocation12_spill]] %s6240_s19  ;;  %p5414_p7 = scmp.ge.s32.totalorder %s6109_s27, 1 }
  0x12   : > { %s9382_s20 = scalar_select %p6246_p6, 1, 0 }
  0x13   : > { %p490_p8 = scmp.lt.s32.totalorder %s6109_s27, 3 }
  0x14   : > { %9383 = sst [smem:[#allocation13_spill]] %s9382_s20 }
  0x15   : > { %p491_p9 = pnand %p5414_p7, %p490_p8 }
  0x17   : > { %494 = sbr.rel (%p491_p9) target bundleno = 3058 (0xbf2), region = 88 }
  0x1c   : > { %s9384_s23 = sld [smem:[#allocation45_spill]]  ;;  %vm660_vm0 = vcmask 1043456   ;;  %p541_p10 = scmp.lt.s32.totalorder %s6225_s28, 1  ;;  %vm623_vm1 = vcmask 818176   ;;  %v9363_v54 = vmov 0.0   ;;  %vm1926_vm2 = vcmask 1046528  }
  0x1d   : > { %s9385_s17 = sld [smem:[#allocation44_spill]]  ;;  %731 = vmatprep.mubr.f32.mxu0 %v9363_v54  ;;  %910 = vmatprep.mubr.f32.mxu1 %v9363_v54  ;;  %vm1841_vm3 = vcmask 1039360   ;;  %vm2027_vm4 = vcmask 777216   ;;  %vm2177_vm5 = vcmask 515072   ;;  %vm2294_vm6 = vcmask 785408   ;;  %s539_s30 = sand.u32 1, %s6101_s25  }
  0x1e   : > { %s6362_s24 = scalar_select %p541_p10, %s6225_s28, 1  ;;  %vm3259_vm7 = vcmask 1042432   ;;  %vm3249_vm8 = vcmask 351232   ;;  %vm3371_vm9 = vcmask 384000   ;;  %vm3464_vm10 = vcmask 719872  }
  0x1f   : > { %vm3467_vm11 = vcmask 717824   ;;  %vm4170_vm12 = vcmask 1040384   ;;  %vm4163_vm13 = vcmask 138240   ;;  %vm4272_vm14 = vcmask 121856   ;;  %s9455_s22 = sld [smem:[#allocation47_spill]]  ;;  %s5344_s29 = scalar_lea.sflag [#allocation6], %s539_s30 }
  0x20   : > { %s6007_s18 = smul.u32 104, %s6362_s24  ;;  %vm4357_vm15 = vcmask 588800  }
  0x22   : > { %v5441_v0 = vld [vmem:[%s9384_s23 + $0x198] sm:$0xf]  ;;  %v583_v1 = vld [vmem:[%s9384_s23 + $0xc8] sm:$0xf]  ;;  %v5440_v3 = vld [vmem:[%s9384_s23 + $0x190] sm:$0xf] }
  0x23   : > { %v5439_v2 = vld [vmem:[%s9384_s23 + $0x188] sm:$0xff]  ;;  %5442 = vmatprep.subr.msk.mxu0 %vm660_vm0, %v5441_v0  ;;  %5456 = vmatprep.subr.msk.mxu1 %vm660_vm0, %v583_v1  ;;  %v582_v4 = vld [vmem:[%s9384_s23 + $0xc0] sm:$0xf]  ;;  %v581_v5 = vld [vmem:[%s9384_s23 + $0xb8] sm:$0xff]  ;;  %s6416_s16 = scalar_lea.vmem %s9385_s17, %s6007_s18  ;;  %s6112_s18 = smov 127  }
  0x24   : > { %5443 = vmatpush1.msk.msra.mxu0 %vm660_vm0, %v5440_v3  ;;  %5457 = vmatpush1.msk.msra.mxu1 %vm660_vm0, %v582_v4  ;;  %v5438_v6 = vld [vmem:[%s9384_s23 + $0x180] sm:$0xff]  ;;  %v580_v7 = vld [vmem:[%s9384_s23 + $0xb0] sm:$0xff]  ;;  %v5437_v8 = vld [vmem:[%s9384_s23 + $0x178] sm:$0xff]  ;;  %s540_s17 = scalar_lea.vmem [#allocation5], %s539_s30 }
  0x25   : > { %675 = vmatprep.subr.mxu0 %v5439_v2  ;;  %854 = vmatprep.subr.mxu1 %v581_v5  ;;  %v579_v9 = vld [vmem:[%s9384_s23 + $0xa8] sm:$0xff]  ;;  %v5436_v10 = vld [vmem:[%s9384_s23 + $0x170] sm:$0xff]  ;;  %v578_v11 = vld [vmem:[%s9384_s23 + $0xa0] sm:$0xff]  ;;  %s5356_s0 = sshll.u32 %s540_s17, 4  ;;  %s5357_s0 = int_to_ptr.vmem [resolvable:$true] %s5356_s0 }
  0x26   : > { %676 = vmatpush1.msra.mxu0 %v5438_v6  ;;  %855 = vmatpush1.msra.mxu1 %v580_v7  ;;  %v5435_v12 = vld [vmem:[%s9384_s23 + $0x168] sm:$0xff]  ;;  %v577_v13 = vld [vmem:[%s9384_s23 + $0x98] sm:$0xff]  ;;  %v5434_v14 = vld [vmem:[%s9384_s23 + $0x160] sm:$0xff]  ;;  %s6049_s24 = scalar_lea.vmem %s5357_s0, 16 }
  0x27   : > { %677 = vmatprep.subr.mxu0 %v5437_v8  ;;  %856 = vmatprep.subr.mxu1 %v579_v9  ;;  %v576_v15 = vld [vmem:[%s9384_s23 + $0x90] sm:$0xff]  ;;  %v5433_v16 = vld [vmem:[%s9384_s23 + $0x158] sm:$0xff]  ;;  %v575_v17 = vld [vmem:[%s9384_s23 + $0x88] sm:$0xff]  ;;  %p6050_p11 = scmp.ne.s32.totalorder %s5357_s0, %s6049_s24 }
  0x28   : > { %678 = vmatpush1.msra.mxu0 %v5436_v10  ;;  %857 = vmatpush1.msra.mxu1 %v578_v11  ;;  %v5432_v18 = vld [vmem:[%s9384_s23 + $0x150] sm:$0xff]  ;;  %v574_v19 = vld [vmem:[%s9384_s23 + $0x80] sm:$0xff]  ;;  %v5431_v20 = vld [vmem:[%s9384_s23 + $0x148] sm:$0xff] }
  0x29   : > { %679 = vmatprep.subr.mxu0 %v5435_v12  ;;  %858 = vmatprep.subr.mxu1 %v577_v13  ;;  %v573_v21 = vld [vmem:[%s9384_s23 + $0x78] sm:$0xff]  ;;  %v5430_v22 = vld [vmem:[%s9384_s23 + $0x140] sm:$0xff]  ;;  %v572_v23 = vld [vmem:[%s9384_s23 + $0x70] sm:$0xff]  ;;  %p6051_p12 = pnand %p6050_p11, %p6242_p5 }
  0x2a   : > { %680 = vmatpush1.msra.mxu0 %v5434_v14  ;;  %859 = vmatpush1.msra.mxu1 %v576_v15  ;;  %v5429_v24 = vld [vmem:[%s9384_s23 + $0x138] sm:$0xff]  ;;  %v571_v25 = vld [vmem:[%s9384_s23 + $0x68] sm:$0xff]  ;;  %v5428_v26 = vld [vmem:[%s9384_s23 + $0x130] sm:$0xff] }
  0x2b   : > { %681 = vmatprep.subr.mxu0 %v5433_v16  ;;  %860 = vmatprep.subr.mxu1 %v575_v17  ;;  %v570_v27 = vld [vmem:[%s9384_s23 + $0x60] sm:$0xff]  ;;  %v5427_v28 = vld [vmem:[%s9384_s23 + $0x128] sm:$0xff]  ;;  %v569_v29 = vld [vmem:[%s9384_s23 + $0x58] sm:$0xff]  ;;  %p6052_p13 = pneg %p6051_p12 }
  0x2c   : > { %682 = vmatpush1.msra.mxu0 %v5432_v18  ;;  %861 = vmatpush1.msra.mxu1 %v574_v19  ;;  %v5426_v30 = vld [vmem:[%s9384_s23 + $0x120] sm:$0xff]  ;;  %v568_v31 = vld [vmem:[%s9384_s23 + $0x50] sm:$0xff]  ;;  %v5425_v32 = vld [vmem:[%s9384_s23 + $0x118] sm:$0xff] }
  0x2d   : > { %683 = vmatprep.subr.mxu0 %v5431_v20  ;;  %862 = vmatprep.subr.mxu1 %v573_v21  ;;  %v567_v33 = vld [vmem:[%s9384_s23 + $0x48] sm:$0xff]  ;;  %v5424_v34 = vld [vmem:[%s9384_s23 + $0x110] sm:$0xff]  ;;  %v566_v35 = vld [vmem:[%s9384_s23 + $0x40] sm:$0xff] }
  0x2e   : > { %684 = vmatpush1.msra.mxu0 %v5430_v22  ;;  %863 = vmatpush1.msra.mxu1 %v572_v23  ;;  %v5423_v36 = vld [vmem:[%s9384_s23 + $0x108] sm:$0xff]  ;;  %v565_v37 = vld [vmem:[%s9384_s23 + $0x38] sm:$0xff]  ;;  %v5422_v38 = vld [vmem:[%s9384_s23 + $0x100] sm:$0xff] }
  0x2f   : > { %685 = vmatprep.subr.mxu0 %v5429_v24  ;;  %864 = vmatprep.subr.mxu1 %v571_v25  ;;  %v564_v39 = vld [vmem:[%s9384_s23 + $0x30] sm:$0xff]  ;;  %v5421_v40 = vld [vmem:[%s9384_s23 + $0xf8] sm:$0xff]  ;;  %v563_v41 = vld [vmem:[%s9384_s23 + $0x28] sm:$0xff] }
  0x30   : > { %686 = vmatpush1.msra.mxu0 %v5428_v26  ;;  %865 = vmatpush1.msra.mxu1 %v570_v27  ;;  %v5420_v42 = vld [vmem:[%s9384_s23 + $0xf0] sm:$0xff]  ;;  %v562_v43 = vld [vmem:[%s9384_s23 + $0x20] sm:$0xff]  ;;  %v5419_v44 = vld [vmem:[%s9384_s23 + $0xe8] sm:$0xff] }
  0x31   : > { %687 = vmatprep.subr.mxu0 %v5427_v28  ;;  %866 = vmatprep.subr.mxu1 %v569_v29  ;;  %v561_v45 = vld [vmem:[%s9384_s23 + $0x18] sm:$0xff]  ;;  %v5418_v46 = vld [vmem:[%s9384_s23 + $0xe0] sm:$0xff]  ;;  %v560_v47 = vld [vmem:[%s9384_s23 + $0x10] sm:$0xff] }
  0x32   : > { %688 = vmatpush1.msra.mxu0 %v5426_v30  ;;  %867 = vmatpush1.msra.mxu1 %v568_v31  ;;  %v5417_v48 = vld [vmem:[%s9384_s23 + $0xd8] sm:$0xff]  ;;  %v559_v49 = vld [vmem:[%s9384_s23 + $0x8] sm:$0xff]  ;;  %v5416_v50 = vld [vmem:[%s9384_s23 + $0xd0] sm:$0xff] }
  0x33   : > { %689 = vmatprep.subr.mxu0 %v5425_v32  ;;  %868 = vmatprep.subr.mxu1 %v567_v33  ;;  %v558_v51 = vld [vmem:[%s9384_s23] sm:$0xff]  ;;  %v5495_v55 = vld [vmem:[%s9384_s23 + $0x268] sm:$0xf]  ;;  %v5535_v56 = vld [vmem:[%s9384_s23 + $0x338] sm:$0xf] }
  0x34   : > { %690 = vmatpush1.msra.mxu0 %v5424_v34  ;;  %869 = vmatpush1.msra.mxu1 %v566_v35  ;;  %v584_v52 = vld [vmem:[%s6416_s16 + $0x1] sm:$0xff]  ;;  %v5534_v58 = vld [vmem:[%s9384_s23 + $0x330] sm:$0xf]  ;;  %v5493_v61 = vld [vmem:[%s9384_s23 + $0x258] sm:$0xff] }
  0x35   : > { %691 = vmatprep.subr.mxu0 %v5423_v36  ;;  %870 = vmatprep.subr.mxu1 %v565_v37  ;;  %v546_v53 = vld [vmem:[%s6416_s16] sm:$0xff]  ;;  %v585_v59 = vld [vmem:[%s6416_s16 + $0x9] sm:$0xff]  ;;  %v586_v1 = vld [vmem:[%s6416_s16 + $0x11] sm:$0xff] }
  0x36   : > { %692 = vmatpush1.msra.mxu0 %v5422_v38  ;;  %871 = vmatpush1.msra.mxu1 %v564_v39  ;;  %v5494_v57 = vld [vmem:[%s9384_s23 + $0x260] sm:$0xf]  ;;  %v547_v60 = vld [vmem:[%s6416_s16 + $0x8] sm:$0xff]  ;;  %v5492_v63 = vld [vmem:[%s9384_s23 + $0x250] sm:$0xff] }
  0x37   : > { %693 = vmatprep.subr.mxu0 %v5421_v40  ;;  %872 = vmatprep.subr.mxu1 %v563_v41  ;;  %v5533_v62 = vld [vmem:[%s9384_s23 + $0x328] sm:$0xff]  ;;  %v5532_v0 = vld [vmem:[%s9384_s23 + $0x320] sm:$0xff]  ;;  %v548_v2 = vld [vmem:[%s6416_s16 + $0x10] sm:$0xff] }
  0x38   : > { %694 = vmatpush1.msra.mxu0 %v5420_v42  ;;  %873 = vmatpush1.msra.mxu1 %v562_v43  ;;  %v5491_v3 = vld [vmem:[%s9384_s23 + $0x248] sm:$0xff]  ;;  %v5531_v4 = vld [vmem:[%s9384_s23 + $0x318] sm:$0xff]  ;;  %v5490_v5 = vld [vmem:[%s9384_s23 + $0x240] sm:$0xff] }
  0x39   : > { %695 = vmatprep.subr.mxu0 %v5419_v44  ;;  %874 = vmatprep.subr.mxu1 %v561_v45  ;;  %v5530_v6 = vld [vmem:[%s9384_s23 + $0x310] sm:$0xff]  ;;  %v587_v7 = vld [vmem:[%s6416_s16 + $0x19] sm:$0xff]  ;;  %v5529_v10 = vld [vmem:[%s9384_s23 + $0x308] sm:$0xff] }
  0x3a   : > { %696 = vmatpush1.msra.mxu0 %v5418_v46  ;;  %875 = vmatpush1.msra.mxu1 %v560_v47  ;;  %v549_v8 = vld [vmem:[%s6416_s16 + $0x18] sm:$0xff]  ;;  %v5488_v11 = vld [vmem:[%s9384_s23 + $0x230] sm:$0xff]  ;;  %v5528_v12 = vld [vmem:[%s9384_s23 + $0x300] sm:$0xff] }
  0x3b   : > { %697 = vmatprep.subr.mxu0 %v5417_v48  ;;  %876 = vmatprep.subr.mxu1 %v559_v49  ;;  %v5489_v9 = vld [vmem:[%s9384_s23 + $0x238] sm:$0xff]  ;;  %v588_v13 = vld [vmem:[%s6416_s16 + $0x21] sm:$0xff]  ;;  %v5526_v18 = vld [vmem:[%s9384_s23 + $0x2f0] sm:$0xff] }
  0x3c   : > { %698 = vmatpush1.msra.mxu0 %v5416_v50  ;;  %877 = vmatpush1.msra.mxu1 %v558_v51  ;;  %v550_v14 = vld [vmem:[%s6416_s16 + $0x20] sm:$0xff]  ;;  %v5487_v15 = vld [vmem:[%s9384_s23 + $0x228] sm:$0xff]  ;;  %v5527_v16 = vld [vmem:[%s9384_s23 + $0x2f8] sm:$0xff] }
  0x3d   : > { %5444 = vmatmul.mubr.msk.f32.vlgmr.msra.gmra.mxu0 %vm623_vm1, %v584_v52  ;;  %5458 = vmatmul.mubr.msk.f32.vlgmr.msra.gmra.mxu1 %vm623_vm1, %v546_v53  ;;  %v5486_v17 = vld [vmem:[%s9384_s23 + $0x220] sm:$0xff]  ;;  %v589_v19 = vld [vmem:[%s6416_s16 + $0x29] sm:$0xff]  ;;  %v5485_v21 = vld [vmem:[%s9384_s23 + $0x218] sm:$0xff] }
  0x3e   : > { %737 = vmatprep.mubr.f32.mxu0 %v9363_v54  ;;  %916 = vmatprep.mubr.f32.mxu1 %v9363_v54  ;;  %v551_v20 = vld [vmem:[%s6416_s16 + $0x28] sm:$0xff]  ;;  %v5484_v23 = vld [vmem:[%s9384_s23 + $0x210] sm:$0xff]  ;;  %v5524_v24 = vld [vmem:[%s9384_s23 + $0x2e0] sm:$0xff] }
  0x3f   : > { %5496 = vmatprep.subr.msk.mxu0 %vm660_vm0, %v5495_v55  ;;  %5536 = vmatprep.subr.msk.mxu1 %vm660_vm0, %v5535_v56  ;;  %v5525_v22 = vld [vmem:[%s9384_s23 + $0x2e8] sm:$0xff]  ;;  %v590_v25 = vld [vmem:[%s6416_s16 + $0x31] sm:$0xff]  ;;  %v5482_v29 = vld [vmem:[%s9384_s23 + $0x200] sm:$0xff] }
  0x40   : > { %5497 = vmatpush1.msk.msra.mxu0 %vm660_vm0, %v5494_v57  ;;  %5537 = vmatpush1.msk.msra.mxu1 %vm660_vm0, %v5534_v58  ;;  %v552_v26 = vld [vmem:[%s6416_s16 + $0x30] sm:$0xff]  ;;  %v5483_v27 = vld [vmem:[%s9384_s23 + $0x208] sm:$0xff]  ;;  %v5523_v28 = vld [vmem:[%s9384_s23 + $0x2d8] sm:$0xff] }
  0x41   : > { %5445 = vmatmul.mubr.msk.f32.gmra.mxu0 %vm623_vm1, %v585_v59  ;;  %5459 = vmatmul.mubr.msk.f32.gmra.mxu1 %vm623_vm1, %v547_v60  ;;  %v5522_v30 = vld [vmem:[%s9384_s23 + $0x2d0] sm:$0xff]  ;;  %v591_v31 = vld [vmem:[%s6416_s16 + $0x39] sm:$0xff]  ;;  %v5521_v34 = vld [vmem:[%s9384_s23 + $0x2c8] sm:$0xff] }
  0x42   : > { %743 = vmatprep.mubr.f32.mxu0 %v9363_v54  ;;  %922 = vmatprep.mubr.f32.mxu1 %v9363_v54  ;;  %v553_v32 = vld [vmem:[%s6416_s16 + $0x38] sm:$0xff]  ;;  %v5480_v35 = vld [vmem:[%s9384_s23 + $0x1f0] sm:$0xff]  ;;  %v5520_v36 = vld [vmem:[%s9384_s23 + $0x2c0] sm:$0xff] }
  0x43   : > { %1072 = vmatprep.subr.mxu0 %v5493_v61  ;;  %1314 = vmatprep.subr.mxu1 %v5533_v62  ;;  %v5481_v33 = vld [vmem:[%s9384_s23 + $0x1f8] sm:$0xff]  ;;  %v592_v37 = vld [vmem:[%s6416_s16 + $0x41] sm:$0xff]  ;;  %v5518_v42 = vld [vmem:[%s9384_s23 + $0x2b0] sm:$0xff] }
  0x44   : > { %1073 = vmatpush1.msra.mxu0 %v5492_v63  ;;  %1315 = vmatpush1.msra.mxu1 %v5532_v0  ;;  %v554_v38 = vld [vmem:[%s6416_s16 + $0x40] sm:$0xff]  ;;  %v5479_v39 = vld [vmem:[%s9384_s23 + $0x1e8] sm:$0xff]  ;;  %v5519_v40 = vld [vmem:[%s9384_s23 + $0x2b8] sm:$0xff] }
  0x45   : > { %5446 = vmatmul.mubr.msk.f32.gmra.mxu0 %vm623_vm1, %v586_v1  ;;  %5460 = vmatmul.mubr.msk.f32.gmra.mxu1 %vm623_vm1, %v548_v2  ;;  %v5478_v41 = vld [vmem:[%s9384_s23 + $0x1e0] sm:$0xff]  ;;  %v593_v43 = vld [vmem:[%s6416_s16 + $0x49] sm:$0xff]  ;;  %v5477_v45 = vld [vmem:[%s9384_s23 + $0x1d8] sm:$0xff] }
  0x46   : > { %749 = vmatprep.mubr.f32.mxu0 %v9363_v54  ;;  %928 = vmatprep.mubr.f32.mxu1 %v9363_v54  ;;  %v555_v44 = vld [vmem:[%s6416_s16 + $0x48] sm:$0xff]  ;;  %v5476_v47 = vld [vmem:[%s9384_s23 + $0x1d0] sm:$0xff]  ;;  %v5516_v48 = vld [vmem:[%s9384_s23 + $0x2a0] sm:$0xff] }
  0x47   : > { %1074 = vmatprep.subr.mxu0 %v5491_v3  ;;  %1316 = vmatprep.subr.mxu1 %v5531_v4  ;;  %v5517_v46 = vld [vmem:[%s9384_s23 + $0x2a8] sm:$0xff]  ;;  %v594_v49 = vld [vmem:[%s6416_s16 + $0x51] sm:$0xff]  ;;  %v5474_v52 = vld [vmem:[%s9384_s23 + $0x1c0] sm:$0xff] }
  0x48   : > { %1075 = vmatpush1.msra.mxu0 %v5490_v5  ;;  %1317 = vmatpush1.msra.mxu1 %v5530_v6  ;;  %v556_v50 = vld [vmem:[%s6416_s16 + $0x50] sm:$0xff]  ;;  %v5475_v51 = vld [vmem:[%s9384_s23 + $0x1c8] sm:$0xff]  ;;  %v5473_v53 = vld [vmem:[%s9384_s23 + $0x1b8] sm:$0xff] }
  0x49   : > { %5447 = vmatmul.mubr.msk.f32.gmra.mxu0 %vm623_vm1, %v587_v7  ;;  %5461 = vmatmul.mubr.msk.f32.gmra.mxu1 %vm623_vm1, %v549_v8  ;;  %v5515_v55 = vld [vmem:[%s9384_s23 + $0x298] sm:$0xff]  ;;  %v5472_v58 = vld [vmem:[%s9384_s23 + $0x1b0] sm:$0xff]  ;;  %v5471_v60 = vld [vmem:[%s9384_s23 + $0x1a8] sm:$0xff] }
  0x4a   : > { %755 = vmatprep.mubr.f32.mxu0 %v9363_v54  ;;  %934 = vmatprep.mubr.f32.mxu1 %v9363_v54  ;;  %v595_v56 = vld [vmem:[%s6416_s16 + $0x59] sm:$0xff]  ;;  %v5514_v59 = vld [vmem:[%s9384_s23 + $0x290] sm:$0xff]  ;;  %v5513_v61 = vld [vmem:[%s9384_s23 + $0x288] sm:$0xff] }
  0x4b   : > { %1076 = vmatprep.subr.mxu0 %v5489_v9  ;;  %1318 = vmatprep.subr.mxu1 %v5529_v10  ;;  %v557_v57 = vld [vmem:[%s6416_s16 + $0x58] sm:$0xff]  ;;  %v5470_v62 = vld [vmem:[%s9384_s23 + $0x1a0] sm:$0xff]  ;;  %v5510_v2 = vld [vmem:[%s9384_s23 + $0x270] sm:$0xff] }
  0x4c   : > { %1077 = vmatpush1.msra.mxu0 %v5488_v11  ;;  %1319 = vmatpush1.msra.mxu1 %v5528_v12  ;;  %v5512_v63 = vld [vmem:[%s9384_s23 + $0x280] sm:$0xff]  ;;  %v5511_v1 = vld [vmem:[%s9384_s23 + $0x278] sm:$0xff]  ;;  %v5575_v4 = vld [vmem:[%s9384_s23 + $0x408] sm:$0xf] }
  0x4d   : > { %5448 = vmatmul.mubr.msk.f32.gmra.mxu0 %vm623_vm1, %v588_v13  ;;  %5462 = vmatmul.mubr.msk.f32.gmra.mxu1 %vm623_vm1, %v550_v14  ;;  %v983_v0 = vld [vmem:[%s6416_s16 + $0x2] sm:$0xff]  ;;  %v984_v5 = vld [vmem:[%s6416_s16 + $0xa] sm:$0xff]  ;;  %v5573_v7 = vld [vmem:[%s9384_s23 + $0x3f8] sm:$0xff] }
  0x4e   : > { %761 = vmatprep.mubr.f32.mxu0 %v9363_v54  ;;  %940 = vmatprep.mubr.f32.mxu1 %v9363_v54  ;;  %v1225_v3 = vld [vmem:[%s6416_s16 + $0x3] sm:$0xff]  ;;  %v1226_v8 = vld [vmem:[%s6416_s16 + $0xb] sm:$0xff]  ;;  %v1227_v13 = vld [vmem:[%s6416_s16 + $0x13] sm:$0xff] }
  0x4f   : > { %1078 = vmatprep.subr.mxu0 %v5487_v15  ;;  %1320 = vmatprep.subr.mxu1 %v5527_v16  ;;  %v5574_v6 = vld [vmem:[%s9384_s23 + $0x400] sm:$0xf]  ;;  %v5572_v9 = vld [vmem:[%s9384_s23 + $0x3f0] sm:$0xff]  ;;  %v5571_v11 = vld [vmem:[%s9384_s23 + $0x3e8] sm:$0xff] }
  0x50   : > { %1079 = vmatpush1.msra.mxu0 %v5486_v17  ;;  %1321 = vmatpush1.msra.mxu1 %v5526_v18  ;;  %v985_v10 = vld [vmem:[%s6416_s16 + $0x12] sm:$0xff]  ;;  %v5570_v12 = vld [vmem:[%s9384_s23 + $0x3e0] sm:$0xff]  ;;  %v5567_v17 = vld [vmem:[%s9384_s23 + $0x3c8] sm:$0xff] }
  0x51   : > { %5449 = vmatmul.mubr.msk.f32.gmra.mxu0 %vm623_vm1, %v589_v19  ;;  %5463 = vmatmul.mubr.msk.f32.gmra.mxu1 %vm623_vm1, %v551_v20  ;;  %v5569_v14 = vld [vmem:[%s9384_s23 + $0x3d8] sm:$0xff]  ;;  %v5568_v16 = vld [vmem:[%s9384_s23 + $0x3d0] sm:$0xff]  ;;  %v5566_v19 = vld [vmem:[%s9384_s23 + $0x3c0] sm:$0xff] }
  0x52   : > { %767 = vmatprep.mubr.f32.mxu0 %v9363_v54  ;;  %946 = vmatprep.mubr.f32.mxu1 %v9363_v54  ;;  %v986_v15 = vld [vmem:[%s6416_s16 + $0x1a] sm:$0xff]  ;;  %v987_v20 = vld [vmem:[%s6416_s16 + $0x22] sm:$0xff] }
  0x53   : > { %1080 = vmatprep.subr.mxu0 %v5485_v21  ;;  %1322 = vmatprep.subr.mxu1 %v5525_v22  ;;  %v1228_v18 = vld [vmem:[%s6416_s16 + $0x1b] sm:$0xff]  ;;  %v5564_v22 = vld [vmem:[%s9384_s23 + $0x3b0] sm:$0xff] }
  0x54   : > { %1081 = vmatpush1.msra.mxu0 %v5484_v23  ;;  %1323 = vmatpush1.msra.mxu1 %v5524_v24  ;;  %v5565_v21 = vld [vmem:[%s9384_s23 + $0x3b8] sm:$0xff]  ;;  %v1229_v23 = vld [vmem:[%s6416_s16 + $0x23] sm:$0xff] }
  0x55   : > { %5450 = vmatmul.mubr.msk.f32.gmra.mxu0 %vm623_vm1, %v590_v25  ;;  %5464 = vmatmul.mubr.msk.f32.gmra.mxu1 %vm623_vm1, %v552_v26  ;;  %v5563_v24 = vld [vmem:[%s9384_s23 + $0x3a8] sm:$0xff]  ;;  %v5562_v26 = vld [vmem:[%s9384_s23 + $0x3a0] sm:$0xff] }
  0x56   : > { %773 = vmatprep.mubr.f32.mxu0 %v9363_v54  ;;  %952 = vmatprep.mubr.f32.mxu1 %v9363_v54  ;;  %v988_v25 = vld [vmem:[%s6416_s16 + $0x2a] sm:$0xff] }
  0x57   : > { %1082 = vmatprep.subr.mxu0 %v5483_v27  ;;  %1324 = vmatprep.subr.mxu1 %v5523_v28  ;;  %v5561_v27 = vld [vmem:[%s9384_s23 + $0x398] sm:$0xff]  ;;  %v1230_v28 = vld [vmem:[%s6416_s16 + $0x2b] sm:$0xff] }
  0x58   : > { %1083 = vmatpush1.msra.mxu0 %v5482_v29  ;;  %1325 = vmatpush1.msra.mxu1 %v5522_v30  ;;  %v5560_v29 = vld [vmem:[%s9384_s23 + $0x390] sm:$0xff] }
  0x59   : > { %5451 = vmatmul.mubr.msk.f32.gmra.mxu0 %vm623_vm1, %v591_v31  ;;  %5465 = vmatmul.mubr.msk.f32.gmra.mxu1 %vm623_vm1, %v553_v32  ;;  %v989_v30 = vld [vmem:[%s6416_s16 + $0x32] sm:$0xff]  ;;  %v5559_v31 = vld [vmem:[%s9384_s23 + $0x388] sm:$0xff]  ;;  %v5558_v32 = vld [vmem:[%s9384_s23 + $0x380] sm:$0xff] }
  0x5a   : > { %779 = vmatprep.mubr.f32.mxu0 %v9363_v54  ;;  %958 = vmatprep.mubr.f32.mxu1 %v9363_v54 }
  0x5b   : > { %1084 = vmatprep.subr.mxu0 %v5481_v33  ;;  %1326 = vmatprep.subr.mxu1 %v5521_v34  ;;  %v1231_v33 = vld [vmem:[%s6416_s16 + $0x33] sm:$0xff] }
  0x5c   : > { %1085 = vmatpush1.msra.mxu0 %v5480_v35  ;;  %1327 = vmatpush1.msra.mxu1 %v5520_v36  ;;  %v5557_v34 = vld [vmem:[%s9384_s23 + $0x378] sm:$0xff]  ;;  %v5556_v36 = vld [vmem:[%s9384_s23 + $0x370] sm:$0xff] }
  0x5d   : > { %5452 = vmatmul.mubr.msk.f32.gmra.mxu0 %vm623_vm1, %v592_v37  ;;  %5466 = vmatmul.mubr.msk.f32.gmra.mxu1 %vm623_vm1, %v554_v38  ;;  %v990_v35 = vld [vmem:[%s6416_s16 + $0x3a] sm:$0xff]  ;;  %v5555_v37 = vld [vmem:[%s9384_s23 + $0x368] sm:$0xff] }
  0x5e   : > { %785 = vmatprep.mubr.f32.mxu0 %v9363_v54  ;;  %964 = vmatprep.mubr.f32.mxu1 %v9363_v54  ;;  %v1232_v38 = vld [vmem:[%s6416_s16 + $0x3b] sm:$0xff] }
  0x5f   : > { %1086 = vmatprep.subr.mxu0 %v5479_v39  ;;  %1328 = vmatprep.subr.mxu1 %v5519_v40  ;;  %v5554_v39 = vld [vmem:[%s9384_s23 + $0x360] sm:$0xff] }
  0x60   : > { %1087 = vmatpush1.msra.mxu0 %v5478_v41  ;;  %1329 = vmatpush1.msra.mxu1 %v5518_v42  ;;  %v991_v40 = vld [vmem:[%s6416_s16 + $0x42] sm:$0xff]  ;;  %v5553_v41 = vld [vmem:[%s9384_s23 + $0x358] sm:$0xff]  ;;  %v5552_v42 = vld [vmem:[%s9384_s23 + $0x350] sm:$0xff] }
  0x61   : > { %5453 = vmatmul.mubr.msk.f32.gmra.mxu0 %vm623_vm1, %v593_v43  ;;  %5467 = vmatmul.mubr.msk.f32.gmra.mxu1 %vm623_vm1, %v555_v44  ;;  %v1233_v43 = vld [vmem:[%s6416_s16 + $0x43] sm:$0xff] }
  0x62   : > { %791 = vmatprep.mubr.f32.mxu0 %v9363_v54  ;;  %970 = vmatprep.mubr.f32.mxu1 %v9363_v54  ;;  %v5551_v44 = vld [vmem:[%s9384_s23 + $0x348] sm:$0xff] }
  0x63   : > { %1088 = vmatprep.subr.mxu0 %v5477_v45  ;;  %1330 = vmatprep.subr.mxu1 %v5517_v46  ;;  %v992_v45 = vld [vmem:[%s6416_s16 + $0x4a] sm:$0xff]  ;;  %v5550_v46 = vld [vmem:[%s9384_s23 + $0x340] sm:$0xff] }
  0x64   : > { %1089 = vmatpush1.msra.mxu0 %v5476_v47  ;;  %1331 = vmatpush1.msra.mxu1 %v5516_v48  ;;  %v1234_v47 = vld [vmem:[%s6416_s16 + $0x4b] sm:$0xff] }
  0x65   : > { %5454 = vmatmul.mubr.msk.f32.gmra.mxu0 %vm623_vm1, %v594_v49  ;;  %5468 = vmatmul.mubr.msk.f32.gmra.mxu1 %vm623_vm1, %v556_v50  ;;  %v993_v48 = vld [vmem:[%s6416_s16 + $0x52] sm:$0xff]  ;;  %v994_v50 = vld [vmem:[%s6416_s16 + $0x5a] sm:$0xff] }
  0x66   : > { %1090 = vmatprep.subr.mxu0 %v5475_v51  ;;  %797 = vmatprep.mubr.f32.mxu0 %v9363_v54  ;;  %v1235_v49 = vld [vmem:[%s6416_s16 + $0x53] sm:$0xff]  ;;  %v1236_v51 = vld [vmem:[%s6416_s16 + $0x5b] sm:$0xff] }
  0x67   : > { %976 = vmatprep.mubr.f32.mxu1 %v9363_v54  ;;  %1091 = vmatpush1.msra.mxu0 %v5474_v52  ;;  %v1467_v52 = vld [vmem:[%s6416_s16 + $0x4] sm:$0xff] }
  0x68   : > { %1092 = vmatprep.subr.mxu0 %v5473_v53  ;;  %1332 = vmatprep.subr.mxu1 %v5515_v55  ;;  %v1468_v53 = vld [vmem:[%s6416_s16 + $0xc] sm:$0xff]  ;;  %v1469_v55 = vld [vmem:[%s6416_s16 + $0x14] sm:$0xff] }
  0x69   : > { %5455 = vmatmul.mubr.msk.f32.gmra.mxu0 %vm623_vm1, %v595_v56  ;;  %5469 = vmatmul.mubr.msk.f32.gmra.mxu1 %vm623_vm1, %v557_v57  ;;  %v1470_v56 = vld [vmem:[%s6416_s16 + $0x1c] sm:$0xff]  ;;  %v1471_v57 = vld [vmem:[%s6416_s16 + $0x24] sm:$0xff] }
  0x6a   : > { %1093 = vmatpush1.msra.mxu0 %v5472_v58  ;;  %1333 = vmatpush1.msra.mxu1 %v5514_v59  ;;  %v1472_v58 = vld [vmem:[%s6416_s16 + $0x2c] sm:$0xff]  ;;  %v1473_v59 = vld [vmem:[%s6416_s16 + $0x34] sm:$0xff] }
  0x6b   : > { %1094 = vmatprep.subr.mxu0 %v5471_v60  ;;  %1334 = vmatprep.subr.mxu1 %v5513_v61  ;;  %v1474_v60 = vld [vmem:[%s6416_s16 + $0x3c] sm:$0xff]  ;;  %v1475_v61 = vld [vmem:[%s6416_s16 + $0x44] sm:$0xff] }
  0x6c   : > { %1095 = vmatpush1.msra.mxu0 %v5470_v62  ;;  %1128 = vmatprep.mubr.f32.mxu0 %v9363_v54  ;;  %v1476_v62 = vld [vmem:[%s6416_s16 + $0x4c] sm:$0xff] }
  0x6d   : > { %1335 = vmatpush1.msra.mxu1 %v5512_v63  ;;  %5498 = vmatmul.mubr.msk.f32.vlgmr.msra.gmra.mxu0 %vm623_vm1, %v983_v0  ;;  %v1477_v63 = vld [vmem:[%s6416_s16 + $0x54] sm:$0xff]  ;;  %v1478_v0 = vld [vmem:[%s6416_s16 + $0x5c] sm:$0xff]  ;;  %s6004_s16 = sshll.u32 %s6225_s28, 4  ;;  %s6113_s28 = smov [#allocation5]  }
  0x6e   : > { %1336 = vmatprep.subr.mxu1 %v5511_v1  ;;  %1370 = vmatprep.mubr.f32.mxu1 %v9363_v54  ;;  %s9302_s19 = scalar_lea.hbm %s9455_s22, %s6004_s16  ;;  %s6053_s26 = sshll.u32 %s6113_s28, 4  ;;  %s6054_s26 = int_to_ptr.vmem [resolvable:$false] %s6053_s26 }
  0x6f   : > { %1337 = vmatpush1.msra.mxu1 %v5510_v2  ;;  %1134 = vmatprep.mubr.f32.mxu0 %v9363_v54  ;;  %s6055_s27 = scalar_lea.vmem %s6054_s26, 32  ;;  %p6056_p0 = scmp.lt.s32.totalorder %s5357_s0, %s6054_s26 }
  0x70   : > { %5538 = vmatmul.mubr.msk.f32.vlgmr.msra.gmra.mxu1 %vm623_vm1, %v1225_v3  ;;  %5576 = vmatprep.subr.msk.mxu0 %vm660_vm0, %v5575_v4  ;;  %p6057_p1 = scmp.lt.s32.totalorder %s6055_s27, %s6049_s24 }
  0x71   : > { %5499 = vmatmul.mubr.msk.f32.gmra.mxu0 %vm623_vm1, %v984_v5  ;;  %1376 = vmatprep.mubr.f32.mxu1 %v9363_v54 }
  0x72   : > { %1140 = vmatprep.mubr.f32.mxu0 %v9363_v54  ;;  %5577 = vmatpush1.msk.msra.mxu0 %vm660_vm0, %v5574_v6  ;;  %vm4359_vm0 = vcmask 581632   ;;  %p6058_p2 = por %p6057_p1, %p6056_p0 }
  0x73   : > { %1556 = vmatprep.subr.mxu0 %v5573_v7 }
  0x74   : > { %5539 = vmatmul.mubr.msk.f32.gmra.mxu1 %vm623_vm1, %v1226_v8  ;;  %1557 = vmatpush1.msra.mxu0 %v5572_v9  ;;  %p6059_p3 = pnand %p6058_p2, %p6052_p13 }
  0x75   : > { %5500 = vmatmul.mubr.msk.f32.gmra.mxu0 %vm623_vm1, %v985_v10  ;;  %1382 = vmatprep.mubr.f32.mxu1 %v9363_v54 }
  0x76   : > { %1146 = vmatprep.mubr.f32.mxu0 %v9363_v54  ;;  %1558 = vmatprep.subr.mxu0 %v5571_v11 }
  0x77   : > { %1559 = vmatpush1.msra.mxu0 %v5570_v12 }
  0x78   : > { %5540 = vmatmul.mubr.msk.f32.gmra.mxu1 %vm623_vm1, %v1227_v13  ;;  %1560 = vmatprep.subr.mxu0 %v5569_v14 }
  0x79   : > { %5501 = vmatmul.mubr.msk.f32.gmra.mxu0 %vm623_vm1, %v986_v15  ;;  %1388 = vmatprep.mubr.f32.mxu1 %v9363_v54 }
  0x7a   : > { %1152 = vmatprep.mubr.f32.mxu0 %v9363_v54  ;;  %1561 = vmatpush1.msra.mxu0 %v5568_v16 }
  0x7b   : > { %1562 = vmatprep.subr.mxu0 %v5567_v17 }
  0x7c   : > { %5541 = vmatmul.mubr.msk.f32.gmra.mxu1 %vm623_vm1, %v1228_v18  ;;  %1563 = vmatpush1.msra.mxu0 %v5566_v19 }
  0x7d   : > { %5502 = vmatmul.mubr.msk.f32.gmra.mxu0 %vm623_vm1, %v987_v20  ;;  %1394 = vmatprep.mubr.f32.mxu1 %v9363_v54 }
  0x7e   : > { %1158 = vmatprep.mubr.f32.mxu0 %v9363_v54  ;;  %1564 = vmatprep.subr.mxu0 %v5565_v21 }
  0x7f   : > { %1565 = vmatpush1.msra.mxu0 %v5564_v22 }
  0x80   : > { %5542 = vmatmul.mubr.msk.f32.gmra.mxu1 %vm623_vm1, %v1229_v23  ;;  %1566 = vmatprep.subr.mxu0 %v5563_v24 }
  0x81   : > { %5503 = vmatmul.mubr.msk.f32.gmra.mxu0 %vm623_vm1, %v988_v25  ;;  %1400 = vmatprep.mubr.f32.mxu1 %v9363_v54 }
  0x82   : > { %1164 = vmatprep.mubr.f32.mxu0 %v9363_v54  ;;  %1567 = vmatpush1.msra.mxu0 %v5562_v26 }
  0x83   : > { %1568 = vmatprep.subr.mxu0 %v5561_v27 }
  0x84   : > { %5543 = vmatmul.mubr.msk.f32.gmra.mxu1 %vm623_vm1, %v1230_v28  ;;  %1569 = vmatpush1.msra.mxu0 %v5560_v29 }
  0x85   : > { %5504 = vmatmul.mubr.msk.f32.gmra.mxu0 %vm623_vm1, %v989_v30  ;;  %1406 = vmatprep.mubr.f32.mxu1 %v9363_v54 }
  0x86   : > { %1170 = vmatprep.mubr.f32.mxu0 %v9363_v54  ;;  %1570 = vmatprep.subr.mxu0 %v5559_v31 }
  0x87   : > { %1571 = vmatpush1.msra.mxu0 %v5558_v32 }
  0x88   : > { %5544 = vmatmul.mubr.msk.f32.gmra.mxu1 %vm623_vm1, %v1231_v33  ;;  %1572 = vmatprep.subr.mxu0 %v5557_v34 }
  0x89   : > { %5505 = vmatmul.mubr.msk.f32.gmra.mxu0 %vm623_vm1, %v990_v35  ;;  %1412 = vmatprep.mubr.f32.mxu1 %v9363_v54 }
  0x8a   : > { %1176 = vmatprep.mubr.f32.mxu0 %v9363_v54  ;;  %1573 = vmatpush1.msra.mxu0 %v5556_v36 }
  0x8b   : > { %1574 = vmatprep.subr.mxu0 %v5555_v37 }
  0x8c   : > { %5545 = vmatmul.mubr.msk.f32.gmra.mxu1 %vm623_vm1, %v1232_v38  ;;  %1575 = vmatpush1.msra.mxu0 %v5554_v39 }
  0x8d   : > { %5506 = vmatmul.mubr.msk.f32.gmra.mxu0 %vm623_vm1, %v991_v40  ;;  %1418 = vmatprep.mubr.f32.mxu1 %v9363_v54 }
  0x8e   : > { %1182 = vmatprep.mubr.f32.mxu0 %v9363_v54  ;;  %1576 = vmatprep.subr.mxu0 %v5553_v41 }
  0x8f   : > { %1577 = vmatpush1.msra.mxu0 %v5552_v42 }
  0x90   : > { %5546 = vmatmul.mubr.msk.f32.gmra.mxu1 %vm623_vm1, %v1233_v43  ;;  %1578 = vmatprep.subr.mxu0 %v5551_v44 }
  0x91   : > { %5507 = vmatmul.mubr.msk.f32.gmra.mxu0 %vm623_vm1, %v992_v45  ;;  %1424 = vmatprep.mubr.f32.mxu1 %v9363_v54 }
  0x92   : > { %1188 = vmatprep.mubr.f32.mxu0 %v9363_v54  ;;  %1579 = vmatpush1.msra.mxu0 %v5550_v46 }
  0x93   : > { %2199 = vmatprep.subr.mxu0 %v9363_v54 }
  0x94   : > { %5547 = vmatmul.mubr.msk.f32.gmra.mxu1 %vm623_vm1, %v1234_v47 }
  0x95   : > { %5508 = vmatmul.mubr.msk.f32.gmra.mxu0 %vm623_vm1, %v993_v48  ;;  %1430 = vmatprep.mubr.f32.mxu1 %v9363_v54 }
  0x96   : > { %1194 = vmatprep.mubr.f32.mxu0 %v9363_v54 }
  0x98   : > { %5548 = vmatmul.mubr.msk.f32.gmra.mxu1 %vm623_vm1, %v1235_v49 }
  0x99   : > { %5509 = vmatmul.mubr.msk.f32.gmra.mxu0 %vm623_vm1, %v994_v50  ;;  %1436 = vmatprep.mubr.f32.mxu1 %v9363_v54 }
  0x9a   : > { %1612 = vmatprep.mubr.f32.mxu0 %v9363_v54 }
  0x9c   : > { %5549 = vmatmul.mubr.msk.f32.gmra.mxu1 %vm623_vm1, %v1236_v51 }
  0x9d   : > { %5578 = vmatmul.mubr.msk.f32.vlgmr.msra.gmra.mxu0 %vm623_vm1, %v1467_v52  ;;  %2116 = vmatprep.mubr.f32.mxu1 %v9363_v54 }
  0x9e   : > { %1618 = vmatprep.mubr.f32.mxu0 %v9363_v54 }
  0xa1   : > { %5579 = vmatmul.mubr.msk.f32.gmra.mxu0 %vm623_vm1, %v1468_v53 }
  0xa2   : > { %1624 = vmatprep.mubr.f32.mxu0 %v9363_v54 }
  0xa5   : > { %5580 = vmatmul.mubr.msk.f32.gmra.mxu0 %vm623_vm1, %v1469_v55 }
  0xa6   : > { %1630 = vmatprep.mubr.f32.mxu0 %v9363_v54 }
  0xa9   : > { %5581 = vmatmul.mubr.msk.f32.gmra.mxu0 %vm623_vm1, %v1470_v56 }
  0xaa   : > { %1636 = vmatprep.mubr.f32.mxu0 %v9363_v54 }
  0xad   : > { %5582 = vmatmul.mubr.msk.f32.gmra.mxu0 %vm623_vm1, %v1471_v57 }
  0xae   : > { %1642 = vmatprep.mubr.f32.mxu0 %v9363_v54 }
  0xb1   : > { %5583 = vmatmul.mubr.msk.f32.gmra.mxu0 %vm623_vm1, %v1472_v58 }
  0xb2   : > { %1648 = vmatprep.mubr.f32.mxu0 %v9363_v54 }
  0xb5   : > { %5584 = vmatmul.mubr.msk.f32.gmra.mxu0 %vm623_vm1, %v1473_v59 }
  0xb6   : > { %1654 = vmatprep.mubr.f32.mxu0 %v9363_v54 }
  0xb9   : > { %5585 = vmatmul.mubr.msk.f32.gmra.mxu0 %vm623_vm1, %v1474_v60 }
  0xba   : > { %1660 = vmatprep.mubr.f32.mxu0 %v9363_v54 }
  0xbd   : > { %5586 = vmatmul.mubr.msk.f32.gmra.mxu0 %vm623_vm1, %v1475_v61 }
  0xbe   : > { %1666 = vmatprep.mubr.f32.mxu0 %v9363_v54 }
  0xc1   : > { %5587 = vmatmul.mubr.msk.f32.gmra.mxu0 %vm623_vm1, %v1476_v62 }
  0xc2   : > { %1672 = vmatprep.mubr.f32.mxu0 %v9363_v54 }
  0xc5   : > { %5588 = vmatmul.mubr.msk.f32.gmra.mxu0 %vm623_vm1, %v1477_v63 }
  0xc6   : > { %1678 = vmatprep.mubr.f32.mxu0 %v9363_v54 }
  0xc9   : > { %5589 = vmatmul.mubr.msk.f32.gmra.mxu0 %vm623_vm1, %v1478_v0  ;;  %vm5267_vm1 = vcmask 916480  }
  0xfd   : > { %v733_v1 = vpop.f32.mrf.mxu0  ;;  %v912_v2 = vpop.f32.mrf.mxu1 }
  0xfe   : > { %v913_v3 = vadd.f32 %v912_v2, %v733_v1 }
  0xff   : > { %v6846_v4 = vpop.f32.mrf.mxu0  ;;  %v6848_v5 = vpop.f32.mrf.mxu1 }
 0x101   : > { %v739_v6 = vpop.f32.mrf.mxu0  ;;  %v918_v7 = vpop.f32.mrf.mxu1 }
 0x102   : > { %v919_v8 = vadd.f32 %v918_v7, %v739_v6 }
 0x103   : > { %v6850_v9 = vpop.f32.mrf.mxu0  ;;  %v6852_v10 = vpop.f32.mrf.mxu1 }
 0x104   : > { %9386 = vst [vmem:[#allocation14_spill] sm:$0xff] %v6850_v9  ;;  %9387 = vst [vmem:[#allocation15_spill] sm:$0xff] %v6852_v10 }
 0x105   : > { %v745_v11 = vpop.f32.mrf.mxu0  ;;  %v924_v12 = vpop.f32.mrf.mxu1 }
 0x106   : > { %v925_v13 = vadd.f32 %v924_v12, %v745_v11 }
 0x107   : > { %v6854_v14 = vpop.f32.mrf.mxu0  ;;  %v6856_v15 = vpop.f32.mrf.mxu1 }
 0x108   : > { %9388 = vst [vmem:[#allocation16_spill] sm:$0xff] %v6854_v14  ;;  %9389 = vst [vmem:[#allocation17_spill] sm:$0xff] %v6856_v15 }
 0x109   : > { %v751_v16 = vpop.f32.mrf.mxu0  ;;  %v930_v17 = vpop.f32.mrf.mxu1 }
 0x10a   : > { %v931_v18 = vadd.f32 %v930_v17, %v751_v16 }
 0x10b   : > { %v6858_v19 = vpop.f32.mrf.mxu0  ;;  %v6860_v20 = vpop.f32.mrf.mxu1 }
 0x10d   : > { %v757_v21 = vpop.f32.mrf.mxu0  ;;  %v936_v22 = vpop.f32.mrf.mxu1 }
 0x10e   : > { %v937_v23 = vadd.f32 %v936_v22, %v757_v21 }
 0x10f   : > { %v6862_v24 = vpop.f32.mrf.mxu0  ;;  %v6864_v25 = vpop.f32.mrf.mxu1 }
 0x111   : > { %v763_v26 = vpop.f32.mrf.mxu0  ;;  %v942_v27 = vpop.f32.mrf.mxu1 }
 0x112   : > { %v943_v28 = vadd.f32 %v942_v27, %v763_v26 }
 0x113   : > { %v6866_v29 = vpop.f32.mrf.mxu0  ;;  %v6868_v30 = vpop.f32.mrf.mxu1 }
 0x115   : > { %v6870_v31 = vpop.f32.mrf.mxu0  ;;  %v6872_v32 = vpop.f32.mrf.mxu1 }
 0x117   : > { %v6874_v33 = vpop.f32.mrf.mxu0  ;;  %v6876_v34 = vpop.f32.mrf.mxu1 }
 0x119   : > { %v6878_v35 = vpop.f32.mrf.mxu0  ;;  %v6880_v36 = vpop.f32.mrf.mxu1 }
 0x11b   : > { %v6882_v37 = vpop.f32.mrf.mxu0  ;;  %v6884_v38 = vpop.f32.mrf.mxu1 }
 0x11d   : > { %v6886_v39 = vpop.f32.mrf.mxu0  ;;  %v6888_v40 = vpop.f32.mrf.mxu1 }
 0x11f   : > { %v6890_v41 = vpop.f32.mrf.mxu0  ;;  %v6892_v42 = vpop.f32.mrf.mxu1 }
 0x121   : > { %v6894_v43 = vpop.f32.mrf.mxu0  ;;  %v6896_v44 = vpop.f32.mrf.mxu1 }
 0x123   : > { %v6898_v45 = vpop.f32.mrf.mxu0  ;;  %v6900_v46 = vpop.f32.mrf.mxu1 }
 0x125   : > { %v6902_v47 = vpop.f32.mrf.mxu0  ;;  %v6904_v48 = vpop.f32.mrf.mxu1 }
 0x127   : > { %v6906_v49 = vpop.f32.mrf.mxu0  ;;  %v6908_v50 = vpop.f32.mrf.mxu1 }
 0x129   : > { %v6910_v51 = vpop.f32.mrf.mxu0  ;;  %v6912_v52 = vpop.f32.mrf.mxu1 }
 0x12b   : > { %v6914_v53 = vpop.f32.mrf.mxu0  ;;  %v6916_v56 = vpop.f32.mrf.mxu1 }
 0x12d   : > { %v1130_v55 = vpop.f32.mrf.mxu0 }
 0x12e   : > { %v1201_v57 = vadd.f32 %v1130_v55, %v913_v3 }
 0x12f   : > { %v1132_v58 = vpop.f32.mrf.mxu0 }
 0x130   : > { %v1372_v59 = vpop.f32.mrf.mxu1 }
 0x131   : > { %v1443_v60 = vadd.f32 %v1372_v59, %v1201_v57  ;;  %v1136_v61 = vpop.f32.mrf.mxu0 }
 0x132   : > { %v1203_v62 = vadd.f32 %v1136_v61, %v919_v8  ;;  %v1374_v63 = vpop.f32.mrf.mxu1 }
 0x133   : > { %v6918_v0 = vpop.f32.mrf.mxu0 }
 0x134   : > { %9390 = vst [vmem:[#allocation18_spill] sm:$0xff] %v6918_v0  ;;  %v1378_v1 = vpop.f32.mrf.mxu1  ;;  %v915_v0 = vadd.f32 %v6848_v5, %v6846_v4 }
 0x135   : > { %v1445_v2 = vadd.f32 %v1378_v1, %v1203_v62  ;;  %v1142_v6 = vpop.f32.mrf.mxu0 }
 0x136   : > { %v6920_v7 = vadd.f32 %v1142_v6, %v925_v13  ;;  %v6922_v11 = vpop.f32.mrf.mxu1 }
 0x137   : > { %9392 = vst [vmem:[#allocation20_spill] sm:$0xff] %v6922_v11  ;;  %v6924_v12 = vpop.f32.mrf.mxu0 }
 0x138   : > { %9391 = vst [vmem:[#allocation19_spill] sm:$0xff] %v6920_v7  ;;  %9393 = vst [vmem:[#allocation21_spill] sm:$0xff] %v6924_v12  ;;  %v6928_v3 = vpop.f32.mrf.mxu1 }
 0x139   : > { %v1148_v16 = vpop.f32.mrf.mxu0  ;;  %9395 = vst [vmem:[#allocation23_spill] sm:$0xff] %v6928_v3 }
 0x13a   : > { %v6926_v17 = vadd.f32 %v1148_v16, %v931_v18  ;;  %v6934_v26 = vpop.f32.mrf.mxu1 }
 0x13b   : > { %v6930_v21 = vpop.f32.mrf.mxu0  ;;  %9398 = vst [vmem:[#allocation26_spill] sm:$0xff] %v6934_v26 }
 0x13c   : > { %9394 = vst [vmem:[#allocation22_spill] sm:$0xff] %v6926_v17  ;;  %9396 = vst [vmem:[#allocation24_spill] sm:$0xff] %v6930_v21  ;;  %v6940_v57 = vpop.f32.mrf.mxu1  ;;  %v1202_v17 = vadd.f32 %v1132_v58, %v915_v0 }
 0x13d   : > { %v1154_v8 = vpop.f32.mrf.mxu0  ;;  %9400 = vst [vmem:[#allocation28_spill] sm:$0xff] %v6940_v57 }
 0x13e   : > { %v6932_v22 = vadd.f32 %v1154_v8, %v937_v23  ;;  %v6944_v61 = vpop.f32.mrf.mxu1  ;;  %v1444_v12 = vadd.f32 %v1374_v63, %v1202_v17  ;;  %v1711_v63 = vlaneseq }
 0x13f   : > { %v6936_v27 = vpop.f32.mrf.mxu0  ;;  %9401 = vst [vmem:[#allocation29_spill] sm:$0xff] %v6944_v61 }
 0x140   : > { %9397 = vst [vmem:[#allocation25_spill] sm:$0xff] %v6932_v22  ;;  %v6946_v6 = vpop.f32.mrf.mxu1 }
 0x141   : > { %v1160_v13 = vpop.f32.mrf.mxu0  ;;  %9402 = vst [vmem:[#allocation30_spill] sm:$0xff] %v6946_v6 }
 0x142   : > { %v6938_v55 = vadd.f32 %v1160_v13, %v943_v28  ;;  %v6948_v8 = vpop.f32.mrf.mxu1 }
 0x143   : > { %v6942_v59 = vpop.f32.mrf.mxu0  ;;  %9403 = vst [vmem:[#allocation31_spill] sm:$0xff] %v6948_v8 }
 0x144   : > { %9399 = vst [vmem:[#allocation27_spill] sm:$0xff] %v6938_v55  ;;  %v6952_v28 = vpop.f32.mrf.mxu1 }
 0x145   : > { %v1166_v18 = vpop.f32.mrf.mxu0  ;;  %9404 = vst [vmem:[#allocation32_spill] sm:$0xff] %v6952_v28 }
 0x146   : > { %v6958_v7 = vpop.f32.mrf.mxu1 }
 0x147   : > { %v1168_v62 = vpop.f32.mrf.mxu0 }
 0x148   : > { %v1408_v10 = vpop.f32.mrf.mxu1 }
 0x149   : > { %v1172_v1 = vpop.f32.mrf.mxu0 }
 0x14a   : > { %v1410_v22 = vpop.f32.mrf.mxu1 }
 0x14b   : > { %v1174_v23 = vpop.f32.mrf.mxu0 }
 0x14c   : > { %v1414_v28 = vpop.f32.mrf.mxu1 }
 0x14d   : > { %v1178_v16 = vpop.f32.mrf.mxu0 }
 0x14e   : > { %v1416_v5 = vpop.f32.mrf.mxu1 }
 0x14f   : > { %v1180_v54 = vpop.f32.mrf.mxu0 }
 0x151   : > { %v6950_v11 = vpop.f32.mrf.mxu0 }
 0x153   : > { %v6954_v13 = vpop.f32.mrf.mxu0 }
 0x155   : > { %v6956_v3 = vpop.f32.mrf.mxu0 }
 0x157   : > { %v6960_v26 = vpop.f32.mrf.mxu0 }
 0x159   : > { %v6964_v57 = vpop.f32.mrf.mxu0 }
 0x15b   : > { %v6966_v9 = vpop.f32.mrf.mxu0 }
 0x15d   : > { %v1614_v61 = vpop.f32.mrf.mxu0 }
 0x15e   : > { %v6968_v6 = vadd.f32 %v1614_v61, %v1443_v60  ;;  %v1420_v60 = vpop.f32.mrf.mxu1 }
 0x15f   : > { %v1616_v15 = vpop.f32.mrf.mxu0 }
 0x160   : > { %9405 = vst [vmem:[#allocation33_spill] sm:$0xff] %v6968_v6  ;;  %v6970_v14 = vadd.f32 %v1616_v15, %v1444_v12  ;;  %v949_v15 = vadd.f32 %v6872_v32, %v6870_v31  ;;  %v1422_v12 = vpop.f32.mrf.mxu1  ;;  %v951_v6 = vadd.f32 %v6876_v34, %v6874_v33  ;;  %v1709_v31 = vld [vmem:[%s9339_s2] sm:$0x3] }
 0x161   : > { %v1620_v8 = vpop.f32.mrf.mxu0 }
 0x162   : > { %9406 = vst [vmem:[#allocation34_spill] sm:$0xff] %v6970_v14  ;;  %v6972_v21 = vadd.f32 %v1620_v8, %v1445_v2  ;;  %v1712_v2 = vshrl.u32 %v1711_v63, 7  ;;  %v1213_v14 = vadd.f32 %v1166_v18, %v949_v15  ;;  %v957_v63 = vadd.f32 %v6884_v38, %v6882_v37 }
 0x163   : > { %v6974_v55 = vpop.f32.mrf.mxu0 }
 0x164   : > { %9407 = vst [vmem:[#allocation35_spill] sm:$0xff] %v6972_v21  ;;  %9408 = vst [vmem:[#allocation36_spill] sm:$0xff] %v6974_v55  ;;  %v955_v55 = vadd.f32 %v6880_v36, %v6878_v35  ;;  %v1455_v33 = vadd.f32 %v1408_v10, %v1213_v14  ;;  %v7005_v18 = vsub.s32 1, %v1712_v2  ;;  %v961_v35 = vadd.f32 %v6888_v40, %v6886_v39 }
 0x165   : > { %v6976_v4 = vpop.f32.mrf.mxu0  ;;  %v967_v40 = vadd.f32 %v6896_v44, %v6894_v43  ;;  %v973_v44 = vadd.f32 %v6904_v48, %v6902_v47 }
 0x166   : > { %9409 = vst [vmem:[#allocation37_spill] sm:$0xff] %v6976_v4  ;;  %v1214_v4 = vadd.f32 %v1168_v62, %v951_v6  ;;  %v1215_v34 = vadd.f32 %v1172_v1, %v955_v55  ;;  %v1216_v6 = vadd.f32 %v1174_v23, %v957_v63  ;;  %v7015_v14 = vrot.slane %v1709_v31, %v7005_v18 }
 0x167   : > { %v6978_v58 = vpop.f32.mrf.mxu0  ;;  %v1221_v63 = vadd.f32 %v6956_v3, %v973_v44 }
 0x168   : > { %9410 = vst [vmem:[#allocation38_spill] sm:$0xff] %v6978_v58  ;;  %v6996_v58 = vsub.s32 0, %v1712_v2  ;;  %v1456_v62 = vadd.f32 %v1410_v22, %v1214_v4  ;;  %v1457_v10 = vadd.f32 %v1414_v28, %v1215_v34  ;;  %v1458_v1 = vadd.f32 %v1416_v5, %v1216_v6 }
 0x169   : > { %v6980_v0 = vpop.f32.mrf.mxu0  ;;  %v945_v6 = vadd.f32 %v6868_v30, %v6866_v29 }
 0x16a   : > { %9411 = vst [vmem:[#allocation39_spill] sm:$0xff] %v6980_v0  ;;  %v1426_v0 = vpop.f32.mrf.mxu1  ;;  %v7010_v15 = vrot.slane %v1709_v31, %v6996_v58 }
 0x16b   : > { %v6982_v17 = vpop.f32.mrf.mxu0  ;;  %v1212_v29 = vadd.f32 %v6942_v59, %v945_v6  ;;  %v9423_v6 = vld [vmem:[#allocation25_spill] sm:$0xff] }
 0x16c   : > { %9412 = vst [vmem:[#allocation40_spill] sm:$0xff] %v6982_v17 }
 0x16d   : > { %v6984_v61 = vpop.f32.mrf.mxu0 }
 0x16e   : > { %9413 = vst [vmem:[#allocation41_spill] sm:$0xff] %v6984_v61  ;;  %v963_v61 = vadd.f32 %v6892_v42, %v6890_v41 }
 0x16f   : > { %v6988_v8 = vpop.f32.mrf.mxu0 }
 0x170   : > { %9414 = vst [vmem:[#allocation42_spill] sm:$0xff] %v6988_v8  ;;  %v1217_v8 = vadd.f32 %v1178_v16, %v961_v35  ;;  %v1218_v22 = vadd.f32 %v1180_v54, %v963_v61  ;;  %v969_v16 = vadd.f32 %v6900_v46, %v6898_v45  ;;  %v979_v35 = vadd.f32 %v6912_v52, %v6910_v51 }
 0x171   : > { %v6992_v21 = vpop.f32.mrf.mxu0  ;;  %v981_v51 = vadd.f32 %v6916_v56, %v6914_v53 }
 0x172   : > { %9415 = vst [vmem:[#allocation43_spill] sm:$0xff] %v6992_v21  ;;  %v1428_v21 = vpop.f32.mrf.mxu1  ;;  %v1459_v28 = vadd.f32 %v1420_v60, %v1217_v8  ;;  %v1460_v45 = vadd.f32 %v1422_v12, %v1218_v22  ;;  %v1220_v5 = vadd.f32 %v6954_v13, %v969_v16  ;;  %v975_v8 = vadd.f32 %v6908_v50, %v6906_v49 }
 0x173   : > { %v7001_v32 = vpop.f32.mrf.mxu0  ;;  %v1224_v53 = vadd.f32 %v6966_v9, %v981_v51  ;;  %v9424_v51 = vld [vmem:[#allocation30_spill] sm:$0xff] }
 0x174   : > { %v1432_v4 = vpop.f32.mrf.mxu1  ;;  %v1222_v49 = vadd.f32 %v6960_v26, %v975_v8  ;;  %v1462_v3 = vadd.f32 %v1428_v21, %v1220_v5  ;;  %v1223_v21 = vadd.f32 %v6964_v57, %v979_v35 }
 0x175   : > { %v1650_v36 = vpop.f32.mrf.mxu0  ;;  %v1463_v52 = vadd.f32 %v1432_v4, %v1221_v63 }
 0x176   : > { %v1697_v17 = vadd.f32 %v1650_v36, %v1455_v33  ;;  %v1434_v47 = vpop.f32.mrf.mxu1 }
 0x177   : > { %v1652_v37 = vpop.f32.mrf.mxu0  ;;  %v1464_v30 = vadd.f32 %v1434_v47, %v1222_v49 }
 0x178   : > { %v1698_v38 = vadd.f32 %v1652_v37, %v1456_v62  ;;  %v7018_v39 = vadd.f32 %v7010_v15, %v1697_v17  ;;  %v1219_v17 = vadd.f32 %v6950_v11, %v967_v40  ;;  %v1438_v26 = vpop.f32.mrf.mxu1 }
 0x179   : > { %v1656_v55 = vpop.f32.mrf.mxu0  ;;  %v1465_v59 = vadd.f32 %v1438_v26, %v1223_v21  ;;  %v9425_v26 = vld [vmem:[#allocation42_spill] sm:$0xff] }
 0x17a   : > { %v1699_v23 = vadd.f32 %v1656_v55, %v1457_v10  ;;  %v1757_v41 = vmax.f32 %v7018_v39, 0.0  ;;  %v7024_v42 = vadd.f32 %v7015_v14, %v1698_v38  ;;  %v1461_v12 = vadd.f32 %v1426_v0, %v1219_v17 }
 0x17b   : > { %v1658_v2 = vpop.f32.mrf.mxu0 }
 0x17c   : > { %v7030_v31 = vadd.f32 %v7010_v15, %v1699_v23  ;;  %v1700_v54 = vadd.f32 %v1658_v2, %v1458_v1  ;;  %1817 = vrot.lane.b32.xlu0 %v1757_v41, %s6112_s18  ;;  %v1758_v43 = vmax.f32 %v7024_v42, 0.0  ;;  %v939_v1 = vadd.f32 %v6864_v25, %v6862_v24  ;;  %v1440_v23 = vpop.f32.mrf.mxu1 }
 0x17d   : > { %v1662_v46 = vpop.f32.mrf.mxu0  ;;  %v1454_v2 = vadd.f32 %v6958_v7, %v1212_v29  ;;  %v1466_v44 = vadd.f32 %v1440_v23, %v1224_v53  ;;  %v933_v25 = vadd.f32 %v6860_v20, %v6858_v19  ;;  %v9420_v19 = vld [vmem:[#allocation43_spill] sm:$0xff]  ;;  %v9426_v29 = vld [vmem:[#allocation21_spill] sm:$0xff] }
 0x17e   : > { %v1759_v11 = vmax.f32 %v7030_v31, 0.0  ;;  %v7041_v60 = vadd.f32 %v7015_v14, %v1700_v54  ;;  %v1701_v61 = vadd.f32 %v1662_v46, %v1459_v28  ;;  %1819 = vrot.lane.b32.xlu1 %v1758_v43, %s6112_s18  ;;  %v1210_v54 = vadd.f32 %v6936_v27, %v939_v1  ;;  %v9417_v46 = vld [vmem:[#allocation32_spill] sm:$0xff] }
 0x17f   : > { %v1664_v48 = vpop.f32.mrf.mxu0 }
 0x180   : > { %v1760_v13 = vmax.f32 %v7041_v60, 0.0  ;;  %v7051_v33 = vadd.f32 %v7010_v15, %v1701_v61  ;;  %v1702_v34 = vadd.f32 %v1664_v48, %v1460_v45  ;;  %1821 = vrot.lane.b32.xlu0 %v1759_v11, %s6112_s18  ;;  %v9416_v45 = vld [vmem:[#allocation27_spill] sm:$0xff]  ;;  %v1696_v61 = vadd.f32 %v7001_v32, %v1454_v2  ;;  %v9418_v48 = vld [vmem:[#allocation24_spill] sm:$0xff] }
 0x181   : > { %v1668_v50 = vpop.f32.mrf.mxu0  ;;  %v1453_v5 = vadd.f32 %v9417_v46, %v9416_v45 }
 0x182   : > { %v1761_v36 = vmax.f32 %v7051_v33, 0.0  ;;  %v7061_v0 = vadd.f32 %v7015_v14, %v1702_v34  ;;  %v1703_v62 = vadd.f32 %v1668_v50, %v1461_v12  ;;  %1823 = vrot.lane.b32.xlu1 %v1760_v13, %s6112_s18  ;;  %v1208_v12 = vadd.f32 %v9418_v48, %v933_v25  ;;  %v9419_v34 = vld [vmem:[#allocation31_spill] sm:$0xff]  ;;  %v9421_v50 = vld [vmem:[#allocation16_spill] sm:$0xff] }
 0x183   : > { %v1670_v37 = vpop.f32.mrf.mxu0  ;;  %v1452_v35 = vadd.f32 %v9419_v34, %v1210_v54  ;;  %v1695_v20 = vadd.f32 %v9420_v19, %v1453_v5  ;;  %v7129_v21 = vadd.f32 %v7015_v14, %v1696_v61  ;;  %v9432_v54 = vld [vmem:[#allocation28_spill] sm:$0xff]  ;;  %v9434_v5 = vld [vmem:[#allocation18_spill] sm:$0xff]  ;;  %v9436_v48 = vld [vmem:[#allocation39_spill] sm:$0xff] }
 0x184   : > { %v1762_v10 = vmax.f32 %v7061_v0, 0.0  ;;  %v7073_v38 = vadd.f32 %v7010_v15, %v1703_v62  ;;  %v1704_v40 = vadd.f32 %v1670_v37, %v1462_v3  ;;  %1825 = vrot.lane.b32.xlu0 %v1761_v36, %s6112_s18  ;;  %v9422_v3 = vld [vmem:[#allocation17_spill] sm:$0xff]  ;;  %v9437_v19 = vld [vmem:[#allocation19_spill] sm:$0xff] }
 0x185   : > { %v1674_v22 = vpop.f32.mrf.mxu0  ;;  %v927_v62 = vadd.f32 %v9422_v3, %v9421_v50  ;;  %v1694_v37 = vadd.f32 %v9425_v26, %v1452_v35  ;;  %v7139_v23 = vadd.f32 %v7010_v15, %v1695_v20  ;;  %v1756_v46 = vmax.f32 %v7129_v21, 0.0  ;;  %v9438_v20 = vld [vmem:[#allocation23_spill] sm:$0xff]  ;;  %v9439_v3 = vld [vmem:[#allocation38_spill] sm:$0xff] }
 0x186   : > { %v1763_v56 = vmax.f32 %v7073_v38, 0.0  ;;  %v7082_v57 = vadd.f32 %v7015_v14, %v1704_v40  ;;  %v1705_v55 = vadd.f32 %v1674_v22, %v1463_v52  ;;  %1827 = vrot.lane.b32.xlu1 %v1762_v10, %s6112_s18  ;;  %v1451_v52 = vadd.f32 %v9424_v51, %v9423_v6  ;;  %v9427_v22 = vld [vmem:[#allocation29_spill] sm:$0xff] }
 0x187   : > { %v1676_v16 = vpop.f32.mrf.mxu0  ;;  %v1450_v53 = vadd.f32 %v9427_v22, %v1208_v12  ;;  %v7151_v45 = vadd.f32 %v7015_v14, %v1694_v37  ;;  %v1755_v35 = vmax.f32 %v7139_v23, 0.0  ;;  %v1447_v50 = vadd.f32 %v9438_v20, %v9437_v19  ;;  %v9441_v37 = vld [vmem:[#allocation37_spill] sm:$0xff] }
 0x188   : > { %v1764_v28 = vmax.f32 %v7082_v57, 0.0  ;;  %v7091_v9 = vadd.f32 %v7010_v15, %v1705_v55  ;;  %v1706_v4 = vadd.f32 %v1676_v16, %v1464_v30  ;;  %1829 = vrot.lane.b32.xlu0 %v1763_v56, %s6112_s18  ;;  %v1206_v30 = vadd.f32 %v9426_v29, %v927_v62  ;;  %v9428_v55 = vld [vmem:[#allocation41_spill] sm:$0xff] }
 0x189   : > { %v1680_v17 = vpop.f32.mrf.mxu0  ;;  %v1693_v1 = vadd.f32 %v9428_v55, %v1451_v52  ;;  %v1754_v51 = vmax.f32 %v7151_v45, 0.0  ;;  %v9440_v52 = vld [vmem:[#allocation20_spill] sm:$0xff]  ;;  %v1689_v29 = vadd.f32 %v9441_v37, %v1447_v50  ;;  %v9446_v50 = vmov 0.0  }
 0x18a   : > { %v1707_v24 = vadd.f32 %v1680_v17, %v1465_v59  ;;  %1831 = vrot.lane.b32.xlu1 %v1764_v28, %s6112_s18  ;;  %v1765_v7 = vmax.f32 %v7091_v9, 0.0  ;;  %v7108_v63 = vadd.f32 %v7015_v14, %v1706_v4  ;;  %v9429_v59 = vld [vmem:[#allocation14_spill] sm:$0xff]  ;;  %v9430_v4 = vld [vmem:[#allocation15_spill] sm:$0xff]  ;;  %v2167_v20 = vld [vmem:[%s9341_s4 + $0x70] sm:$0xff] }
 0x18b   : > { %v1682_v8 = vpop.f32.mrf.mxu0  ;;  %v921_v2 = vadd.f32 %v9430_v4, %v9429_v59  ;;  %v9431_v17 = vld [vmem:[#allocation22_spill] sm:$0xff]  ;;  %v7161_v34 = vadd.f32 %v7010_v15, %v1693_v1  ;;  %v7195_v4 = vadd.f32 %v7010_v15, %v1689_v29  ;;  %v2162_v37 = vld [vmem:[%s9341_s4 + $0x48] sm:$0xff] }
 0x18c   : > { %v7111_v27 = vadd.f32 %v7010_v15, %v1707_v24  ;;  %v1708_v47 = vadd.f32 %v1682_v8, %v1466_v44  ;;  %v1766_v40 = vmax.f32 %v7108_v63, 0.0  ;;  %v1449_v44 = vadd.f32 %v9432_v54, %v9431_v17  ;;  %v9433_v24 = vld [vmem:[#allocation40_spill] sm:$0xff]  ;;  %v9435_v8 = vld [vmem:[#allocation26_spill] sm:$0xff] }
 0x18d   : > { %v1692_v25 = vadd.f32 %v9433_v24, %v1450_v53  ;;  %v1204_v61 = vadd.f32 %v9434_v5, %v921_v2  ;;  %v1753_v22 = vmax.f32 %v7161_v34, 0.0  ;;  %v9442_v53 = vld [vmem:[#allocation36_spill] sm:$0xff]  ;;  %v9444_v5 = vld [vmem:[#allocation34_spill] sm:$0xff] }
 0x18e   : > { %v1767_v49 = vmax.f32 %v7111_v27, 0.0  ;;  %v7118_v32 = vadd.f32 %v7015_v14, %v1708_v47  ;;  %1833 = vrot.lane.b32.xlu1 %v1765_v7, %s6112_s18  ;;  %v1448_v47 = vadd.f32 %v9435_v8, %v1206_v30  ;;  %v1691_v12 = vadd.f32 %v9436_v48, %v1449_v44  ;;  %v9443_v44 = vld [vmem:[#allocation35_spill] sm:$0xff] }
 0x18f   : > { %v7171_v6 = vadd.f32 %v7015_v14, %v1692_v25  ;;  %v1446_v26 = vadd.f32 %v9440_v52, %v1204_v61  ;;  %v7210_v24 = vadd.f32 %v7010_v15, %v9443_v44  ;;  %v9369_v25 = vmax.f32 %v7195_v4, 0.0  ;;  %v2164_v52 = vld [vmem:[%s9341_s4 + $0x58] sm:$0xff]  ;;  %v2161_v29 = vld [vmem:[%s9341_s4 + $0x40] sm:$0xff]  ;;  %v2158_v44 = vld [vmem:[%s9341_s4 + $0x28] sm:$0xff] }
 0x190   : > { %1837 = vrot.lane.b32.xlu0 %v1767_v49, %s6112_s18  ;;  %v1768_v16 = vmax.f32 %v7118_v32, 0.0  ;;  %v1690_v62 = vadd.f32 %v9439_v3, %v1448_v47  ;;  %v7180_v30 = vadd.f32 %v7010_v15, %v1691_v12  ;;  %v7218_v61 = vadd.f32 %v7015_v14, %v9444_v5  ;;  %v9445_v47 = vld [vmem:[#allocation33_spill] sm:$0xff]  ;;  %v2166_v3 = vld [vmem:[%s9341_s4 + $0x68] sm:$0xff]  ;;  %v2157_v5 = vld [vmem:[%s9341_s4 + $0x20] sm:$0xff] }
 0x191   : > { %v1688_v55 = vadd.f32 %v9442_v53, %v1446_v26  ;;  %v1752_v59 = vmax.f32 %v7171_v6, 0.0  ;;  %v7226_v48 = vadd.f32 %v7010_v15, %v9445_v47  ;;  %v9367_v12 = vmax.f32 %v7210_v24, 0.0  ;;  %v2168_v15 = vld [vmem:[%s9341_s4 + $0x78] sm:$0xff]  ;;  %v2163_v26 = vld [vmem:[%s9341_s4 + $0x50] sm:$0xff] }
 0x192   : > { %1835 = vrot.lane.b32.xlu1 %v1766_v40, %s6112_s18  ;;  %v7188_v1 = vadd.f32 %v7015_v14, %v1690_v62  ;;  %v1751_v2 = vmax.f32 %v7180_v30, 0.0  ;;  %v9366_v19 = vmax.f32 %v7218_v61, 0.0  ;;  %2200 = vmatpush1.msra.mxu0 %v2168_v15  ;;  %v2165_v62 = vld [vmem:[%s9341_s4 + $0x60] sm:$0xff]  ;;  %v2160_v53 = vld [vmem:[%s9341_s4 + $0x38] sm:$0xff]  ;;  %v2155_v15 = vld [vmem:[%s9341_s4 + $0x10] sm:$0xff] }
 0x193   : > { %v7202_v17 = vadd.f32 %v7015_v14, %v1688_v55  ;;  %v9365_v14 = vmax.f32 %v7226_v48, 0.0  ;;  %2201 = vmatprep.subr.mxu0 %v9446_v50  ;;  %v2159_v55 = vld [vmem:[%s9341_s4 + $0x30] sm:$0xff]  ;;  %v2156_v47 = vld [vmem:[%s9341_s4 + $0x18] sm:$0xff] }
 0x194   : > { %1839 = vrot.lane.b32.xlu0 %v1768_v16, %s6112_s18  ;;  %v9370_v54 = vmax.f32 %v7188_v1, 0.0  ;;  %2202 = vmatpush1.msra.mxu0 %v2167_v20  ;;  %v2154_v20 = vld [vmem:[%s9341_s4 + $0x8] sm:$0xff] }
 0x195   : > { %v9368_v8 = vmax.f32 %v7202_v17, 0.0  ;;  %2203 = vmatprep.subr.mxu0 %v9446_v50 }
 0x196   : > { %1815 = vrot.lane.b32.xlu1 %v1756_v46, %s6112_s18  ;;  %2204 = vmatpush1.msra.mxu0 %v2166_v3  ;;  %v2153_v3 = vld [vmem:[%s9341_s4] sm:$0xff] }
 0x197   : > { %2205 = vmatprep.subr.mxu0 %v9446_v50 }
 0x198   : > { %1813 = vrot.lane.b32.xlu0 %v1755_v35, %s6112_s18  ;;  %2206 = vmatpush1.msra.mxu0 %v2165_v62  ;;  %v2176_v62 = vld [vmem:[%s9341_s4 + $0xb8] sm:$0x7f] }
 0x199   : > { %2207 = vmatprep.subr.mxu0 %v9446_v50 }
 0x19a   : > { %1811 = vrot.lane.b32.xlu1 %v1754_v51, %s6112_s18  ;;  %2208 = vmatpush1.msra.mxu0 %v2164_v52  ;;  %v2175_v52 = vld [vmem:[%s9341_s4 + $0xb0] sm:$0xff] }
 0x19b   : > { %2209 = vmatprep.subr.mxu0 %v9446_v50 }
 0x19c   : > { %1809 = vrot.lane.b32.xlu0 %v1753_v22, %s6112_s18  ;;  %2210 = vmatpush1.msra.mxu0 %v2163_v26  ;;  %v2174_v26 = vld [vmem:[%s9341_s4 + $0xa8] sm:$0xff] }
 0x19d   : > { %2211 = vmatprep.subr.mxu0 %v9446_v50 }
 0x19e   : > { %1807 = vrot.lane.b32.xlu1 %v1752_v59, %s6112_s18  ;;  %2212 = vmatpush1.msra.mxu0 %v2162_v37  ;;  %v2173_v37 = vld [vmem:[%s9341_s4 + $0xa0] sm:$0xff] }
 0x19f   : > { %2213 = vmatprep.subr.mxu0 %v9446_v50 }
 0x1a0   : > { %1805 = vrot.lane.b32.xlu0 %v1751_v2, %s6112_s18  ;;  %2214 = vmatpush1.msra.mxu0 %v2161_v29  ;;  %v2172_v29 = vld [vmem:[%s9341_s4 + $0x98] sm:$0xff] }
 0x1a1   : > { %2215 = vmatprep.subr.mxu0 %v9446_v50 }
 0x1a2   : > { %1803 = vrot.lane.b32.xlu1 %v9370_v54, %s6112_s18  ;;  %2216 = vmatpush1.msra.mxu0 %v2160_v53  ;;  %v2171_v53 = vld [vmem:[%s9341_s4 + $0x90] sm:$0xff] }
 0x1a3   : > { %2217 = vmatprep.subr.mxu0 %v9446_v50 }
 0x1a4   : > { %1801 = vrot.lane.b32.xlu0 %v9369_v25, %s6112_s18  ;;  %2218 = vmatpush1.msra.mxu0 %v2159_v55 }
 0x1a5   : > { %2219 = vmatprep.subr.mxu0 %v9446_v50 }
 0x1a6   : > { %1799 = vrot.lane.b32.xlu1 %v9368_v8, %s6112_s18  ;;  %2220 = vmatpush1.msra.mxu0 %v2158_v44 }
 0x1a7   : > { %2221 = vmatprep.subr.mxu0 %v9446_v50 }
 0x1a8   : > { %1797 = vrot.lane.b32.xlu0 %v9367_v12, %s6112_s18  ;;  %2222 = vmatpush1.msra.mxu0 %v2157_v5 }
 0x1a9   : > { %2223 = vmatprep.subr.mxu0 %v9446_v50 }
 0x1aa   : > { %1795 = vrot.lane.b32.xlu1 %v9366_v19, %s6112_s18  ;;  %2224 = vmatpush1.msra.mxu0 %v2156_v47 }
 0x1ab   : > { %2225 = vmatprep.subr.mxu0 %v9446_v50 }
 0x1ac   : > { %1793 = vrot.lane.b32.xlu0 %v9365_v14, %s6112_s18  ;;  %2226 = vmatpush1.msra.mxu0 %v2155_v15 }
 0x1ad   : > { %2227 = vmatprep.subr.mxu0 %v9446_v50 }
 0x1ae   : > { %2228 = vmatpush1.msra.mxu0 %v2154_v20 }
 0x1af   : > { %2229 = vmatprep.subr.mxu0 %v9446_v50 }
 0x1b0   : > { %2230 = vmatpush1.msra.mxu0 %v2153_v3 }
 0x1b1   : > { %2247 = vmatprep.subr.mxu0 %v9446_v50 }
 0x1b2   : > { %5598 = vmatpush2.msk.msra.mxu0 %vm1926_vm2, %v2176_v62 }
 0x1b3   : > { %2249 = vmatprep.subr.mxu0 %v9446_v50 }
 0x1b4   : > { %2250 = vmatpush2.msra.mxu0 %v2175_v52 }
 0x1b5   : > { %2251 = vmatprep.subr.mxu0 %v9446_v50 }
 0x1b6   : > { %2252 = vmatpush2.msra.mxu0 %v2174_v26 }
 0x1b7   : > { %2253 = vmatprep.subr.mxu0 %v9446_v50 }
 0x1b8   : > { %2254 = vmatpush2.msra.mxu0 %v2173_v37 }
 0x1b9   : > { %2255 = vmatprep.subr.mxu0 %v9446_v50 }
 0x1ba   : > { %2256 = vmatpush2.msra.mxu0 %v2172_v29 }
 0x1bb   : > { %2257 = vmatprep.subr.mxu0 %v9446_v50 }
 0x1bc   : > { %2258 = vmatpush2.msra.mxu0 %v2171_v53 }
 0x1bd   : > { %2259 = vmatprep.subr.mxu0 %v9446_v50 }
 0x1ee   : > { %v1818_v55 = vpop.permute.xlu0 %1817 }
 0x1f0   : > { %v1820_v44 = vpop.permute.xlu1 %1819 }
 0x1f1   : > { %v1848_v29 = vsel %vm1841_vm3, %v1818_v55, %v1820_v44  ;;  %v7336_v53 = vmax.f32 %v1758_v43, %v1820_v44 }
 0x1f2   : > { %v1822_v5 = vpop.permute.xlu0 %1821 }
 0x1f4   : > { %v1824_v47 = vpop.permute.xlu1 %1823 }
 0x1f5   : > { %v1849_v19 = vsel %vm1841_vm3, %v1822_v5, %v1824_v47  ;;  %v7355_v5 = vmax.f32 %v1757_v41, %v1848_v29  ;;  %v7363_v38 = vmax.f32 %v1760_v13, %v1824_v47 }
 0x1f6   : > { %v1826_v15 = vpop.permute.xlu0 %1825  ;;  %v7369_v39 = vmax.f32 %v1759_v11, %v1849_v19 }
 0x1f8   : > { %v1828_v20 = vpop.permute.xlu1 %1827 }
 0x1f9   : > { %v1850_v12 = vsel %vm1841_vm3, %v1826_v15, %v1828_v20  ;;  %v7345_v54 = vmax.f32 %v1762_v10, %v1828_v20  ;;  %v1951_v10 = vrot.slane %v7336_v53, 1  ;;  %v1949_v15 = vrot.slane %v7355_v5, 1 }
 0x1fa   : > { %v1830_v62 = vpop.permute.xlu0 %1829  ;;  %v1894_v41 = vmax.f32 %v1761_v36, %v1850_v12  ;;  %v1955_v20 = vrot.slane %v7363_v38, 1 }
 0x1fb   : > { %v1959_v32 = vrot.slane %v7345_v54, 1 }
 0x1fc   : > { %v1832_v3 = vpop.permute.xlu1 %1831 }
 0x1fd   : > { %v1851_v37 = vsel %vm1841_vm3, %v1830_v62, %v1832_v3  ;;  %v1897_v42 = vmax.f32 %v1764_v28, %v1832_v3 }
 0x1fe   : > { %v1896_v55 = vmax.f32 %v1763_v56, %v1851_v37 }
 0x1ff   : > { %v1963_v60 = vrot.slane %v1897_v42, 1 }
 0x200   : > { %v1834_v52 = vpop.permute.xlu1 %1833 }
 0x201   : > { %v1964_v23 = vsel %vm1926_vm2, %v1959_v32, %v1963_v60 }
 0x202   : > { %v1838_v26 = vpop.permute.xlu0 %1837 }
 0x204   : > { %v1836_v14 = vpop.permute.xlu1 %1835 }
 0x205   : > { %v1852_v8 = vsel %vm1841_vm3, %v1834_v52, %v1836_v14  ;;  %v1899_v25 = vmax.f32 %v1766_v40, %v1836_v14  ;;  %v1961_v40 = vrot.slane %v1896_v55, 1  ;;  %v1957_v14 = vrot.slane %v1894_v41, 1 }
 0x206   : > { %v1898_v43 = vmax.f32 %v1765_v7, %v1852_v8  ;;  %v1840_v44 = vpop.permute.xlu0 %1839 }
 0x207   : > { %v1853_v63 = vsel %vm1841_vm3, %v1838_v26, %v1840_v44  ;;  %v1901_v0 = vmax.f32 %v1768_v16, %v1840_v44  ;;  %v1967_v56 = vrot.slane %v1899_v25, 1  ;;  %v1962_v26 = vsel %vm1926_vm2, %v1957_v14, %v1961_v40 }
 0x208   : > { %v1900_v57 = vmax.f32 %v1767_v49, %v1853_v63  ;;  %v1816_v28 = vpop.permute.xlu1 %1815  ;;  %v1965_v9 = vrot.slane %v1898_v43, 1 }
 0x209   : > { %v1971_v7 = vrot.slane %v1901_v0, 1  ;;  %v7376_v27 = vmax.f32 %v1756_v46, %v1816_v28  ;;  %v1968_v19 = vsel %vm1926_vm2, %v1963_v60, %v1967_v56  ;;  %v9447_v60 = vmax.f32 %v7188_v1, 0.0 }
 0x20a   : > { %v1969_v13 = vrot.slane %v1900_v57, 1  ;;  %v1814_v16 = vpop.permute.xlu0 %1813  ;;  %v1966_v46 = vsel %vm1926_vm2, %v1961_v40, %v1965_v9  ;;  %v2016_v52 = vmax.f32 %v1897_v42, %v1968_v19  ;;  %v2014_v42 = vmax.f32 %v7345_v54, %v1964_v23 }
 0x20b   : > { %v2020_v8 = vmax.f32 %v1901_v0, %v1971_v7  ;;  %v1847_v31 = vsel %vm1841_vm3, %v1814_v16, %v1816_v28  ;;  %v1972_v11 = vsel %vm1926_vm2, %v1967_v56, %v1971_v7  ;;  %v1947_v37 = vrot.slane %v7376_v27, 1 }
 0x20c   : > { %v2019_v49 = vmax.f32 %v1900_v57, %v1969_v13  ;;  %v1812_v33 = vpop.permute.xlu1 %1811  ;;  %v2018_v36 = vmax.f32 %v1899_v25, %v1972_v11  ;;  %v1970_v12 = vsel %vm1926_vm2, %v1965_v9, %v1969_v13  ;;  %v7384_v47 = vmax.f32 %v1755_v35, %v1847_v31 }
 0x20d   : > { %5590 = vmatprep.subr.msk.mxu1 %vm1926_vm2, %v2020_v8  ;;  %v2017_v21 = vmax.f32 %v1898_v43, %v1970_v12  ;;  %v7392_v25 = vmax.f32 %v1754_v51, %v1812_v33  ;;  %v1953_v35 = vrot.slane %v7369_v39, 1  ;;  %v2015_v29 = vmax.f32 %v1896_v55, %v1966_v46 }
 0x20e   : > { %5591 = vmatpush1.msk.msra.mxu1 %vm1926_vm2, %v2019_v49  ;;  %v1810_v3 = vpop.permute.xlu0 %1809  ;;  %v1960_v43 = vsel %vm1926_vm2, %v1955_v20, %v1959_v32  ;;  %v1945_v44 = vrot.slane %v7384_v47, 1  ;;  %v1956_v57 = vsel %vm1926_vm2, %v1951_v10, %v1955_v20  ;;  %v9450_v23 = vmax.f32 %v7210_v24, 0.0 }
 0x20f   : > { %v1846_v62 = vsel %vm1841_vm3, %v1810_v3, %v1812_v33  ;;  %2062 = vmatprep.subr.mxu1 %v2018_v36  ;;  %v1958_v0 = vsel %vm1926_vm2, %v1953_v35, %v1957_v14  ;;  %v1943_v56 = vrot.slane %v7392_v25, 1  ;;  %v2012_v9 = vmax.f32 %v7363_v38, %v1960_v43 }
 0x210   : > { %v1886_v45 = vmax.f32 %v1753_v22, %v1846_v62  ;;  %2063 = vmatpush1.msra.mxu1 %v2017_v21  ;;  %v1808_v51 = vpop.permute.xlu1 %1807  ;;  %v2013_v22 = vmax.f32 %v1894_v41, %v1962_v26  ;;  %v1954_v6 = vsel %vm1926_vm2, %v1949_v15, %v1953_v35  ;;  %v2011_v41 = vmax.f32 %v7369_v39, %v1958_v0 }
 0x211   : > { %v1885_v63 = vmax.f32 %v1752_v59, %v1808_v51  ;;  %2064 = vmatprep.subr.mxu1 %v2016_v52  ;;  %v1952_v59 = vsel %vm1926_vm2, %v1947_v37, %v1951_v10  ;;  %v1950_v40 = vsel %vm1926_vm2, %v1945_v44, %v1949_v15  ;;  %v2010_v38 = vmax.f32 %v7336_v53, %v1956_v57 }
 0x212   : > { %2065 = vmatpush1.msra.mxu1 %v2015_v29  ;;  %v1806_v34 = vpop.permute.xlu0 %1805  ;;  %v1941_v55 = vrot.slane %v1886_v45, 1  ;;  %v1948_v16 = vsel %vm1926_vm2, %v1943_v56, %v1947_v37  ;;  %v2009_v30 = vmax.f32 %v7355_v5, %v1954_v6  ;;  %v2007_v1 = vmax.f32 %v7384_v47, %v1950_v40  ;;  %v2024_v6 = vld [vmem:[%s9340_s3 + $0x18] sm:$0xff]  ;;  %v5627_v40 = vld [vmem:[%s9342_s5 + $0x170] sm:$0xff] }
 0x213   : > { %v1845_v28 = vsel %vm1841_vm3, %v1806_v34, %v1808_v51  ;;  %2066 = vmatprep.subr.mxu1 %v2014_v42  ;;  %v1939_v54 = vrot.slane %v1885_v63, 1  ;;  %v9448_v53 = vmax.f32 %v7195_v4, 0.0  ;;  %v2006_v12 = vmax.f32 %v7392_v25, %v1948_v16  ;;  %v5624_v16 = vld [vmem:[%s9342_s5 + $0x158] sm:$0xff] }
 0x214   : > { %v1884_v7 = vmax.f32 %v1751_v2, %v1845_v28  ;;  %2067 = vmatpush1.msra.mxu1 %v2013_v22  ;;  %v1804_v32 = vpop.permute.xlu1 %1803  ;;  %v2008_v2 = vmax.f32 %v7376_v27, %v1952_v59  ;;  %v1946_v31 = vsel %vm1926_vm2, %v1941_v55, %v1945_v44  ;;  %v9449_v27 = vmax.f32 %v7202_v17, 0.0  ;;  %v2021_v28 = vld [vmem:[%s9340_s3] sm:$0xff] }
 0x215   : > { %v1883_v13 = vmax.f32 %v9447_v60, %v1804_v32  ;;  %2068 = vmatprep.subr.mxu1 %v2012_v9  ;;  %v1944_v49 = vsel %vm1926_vm2, %v1939_v54, %v1943_v56  ;;  %v2005_v14 = vmax.f32 %v1886_v45, %v1946_v31  ;;  %v9451_v37 = vmax.f32 %v7218_v61, 0.0  ;;  %v2023_v9 = vld [vmem:[%s9340_s3 + $0x10] sm:$0xff]  ;;  %v2025_v59 = vld [vmem:[%s9340_s3 + $0x20] sm:$0xff]  ;;  %v5626_v60 = vld [vmem:[%s9342_s5 + $0x168] sm:$0xff] }
 0x216   : > { %v1937_v8 = vrot.slane %v1884_v7, 1  ;;  %2069 = vmatpush1.msra.mxu1 %v2011_v41  ;;  %v1802_v10 = vpop.permute.xlu0 %1801  ;;  %v2004_v15 = vmax.f32 %v1885_v63, %v1944_v49  ;;  %v9452_v42 = vmax.f32 %v7226_v48, 0.0  ;;  %v2022_v48 = vld [vmem:[%s9340_s3 + $0x8] sm:$0xff]  ;;  %v5628_v41 = vld [vmem:[%s9342_s5 + $0x178] sm:$0xff]  ;;  %v5619_v31 = vld [vmem:[%s9342_s5 + $0x130] sm:$0xff] }
 0x217   : > { %v1935_v39 = vrot.slane %v1883_v13, 1  ;;  %v1844_v11 = vsel %vm1841_vm3, %v1802_v10, %v1804_v32  ;;  %2070 = vmatprep.subr.mxu1 %v2010_v38  ;;  %v2169_v32 = vld [vmem:[%s9341_s4 + $0x80] sm:$0xff]  ;;  %v5724_v38 = vld [vmem:[%s9342_s5 + $0x3b8] sm:$0xff]  ;;  %v5622_v10 = vld [vmem:[%s9342_s5 + $0x148] sm:$0xff] }
 0x218   : > { %v1882_v33 = vmax.f32 %v9448_v53, %v1844_v11  ;;  %2071 = vmatpush1.msra.mxu1 %v2009_v30  ;;  %v1800_v36 = vpop.permute.xlu1 %1799  ;;  %v1942_v5 = vsel %vm1926_vm2, %v1937_v8, %v1941_v55  ;;  %v5621_v30 = vld [vmem:[%s9342_s5 + $0x140] sm:$0xff]  ;;  %v5723_v49 = vld [vmem:[%s9342_s5 + $0x3b0] sm:$0xff]  ;;  %v5722_v53 = vld [vmem:[%s9342_s5 + $0x3a8] sm:$0xff] }
 0x219   : > { %v1881_v19 = vmax.f32 %v9449_v27, %v1800_v36  ;;  %2072 = vmatprep.subr.mxu1 %v2008_v2  ;;  %v1940_v21 = vsel %vm1926_vm2, %v1935_v39, %v1939_v54  ;;  %v2003_v3 = vmax.f32 %v1884_v7, %v1942_v5  ;;  %v2026_v54 = vld [vmem:[%s9340_s3 + $0x28] sm:$0xff]  ;;  %v5620_v2 = vld [vmem:[%s9342_s5 + $0x138] sm:$0xff]  ;;  %v5719_v27 = vld [vmem:[%s9342_s5 + $0x390] sm:$0xff] }
 0x21a   : > { %v1933_v46 = vrot.slane %v1882_v33, 1  ;;  %2073 = vmatpush1.msra.mxu1 %v2007_v1  ;;  %v1798_v47 = vpop.permute.xlu0 %1797  ;;  %v2002_v62 = vmax.f32 %v1883_v13, %v1940_v21  ;;  %v2170_v7 = vld [vmem:[%s9341_s4 + $0x88] sm:$0xff]  ;;  %v5625_v13 = vld [vmem:[%s9342_s5 + $0x160] sm:$0xff] }
 0x21b   : > { %v1931_v20 = vrot.slane %v1881_v19, 1  ;;  %v1843_v4 = vsel %vm1841_vm3, %v1798_v47, %v1800_v36  ;;  %2074 = vmatprep.subr.mxu1 %v2006_v12  ;;  %2260 = vmatpush2.msra.mxu0 %v2170_v7  ;;  %v5721_v36 = vld [vmem:[%s9342_s5 + $0x3a0] sm:$0xff]  ;;  %v5720_v12 = vld [vmem:[%s9342_s5 + $0x398] sm:$0xff] }
 0x21c   : > { %v1938_v25 = vsel %vm1926_vm2, %v1933_v46, %v1937_v8  ;;  %v1880_v35 = vmax.f32 %v9450_v23, %v1843_v4  ;;  %2075 = vmatpush1.msra.mxu1 %v2005_v14  ;;  %v1796_v17 = vpop.permute.xlu1 %1795  ;;  %2261 = vmatprep.subr.mxu0 %v9446_v50  ;;  %v5623_v8 = vld [vmem:[%s9342_s5 + $0x150] sm:$0xff]  ;;  %v5717_v21 = vld [vmem:[%s9342_s5 + $0x380] sm:$0xff]  ;;  %v5716_v23 = vld [vmem:[%s9342_s5 + $0x378] sm:$0xff] }
 0x21d   : > { %v2001_v52 = vmax.f32 %v1882_v33, %v1938_v25  ;;  %v1936_v26 = vsel %vm1926_vm2, %v1931_v20, %v1935_v39  ;;  %v1879_v45 = vmax.f32 %v9451_v37, %v1796_v17  ;;  %2076 = vmatprep.subr.mxu1 %v2004_v15  ;;  %2262 = vmatpush2.msra.mxu0 %v2169_v32  ;;  %v5618_v39 = vld [vmem:[%s9342_s5 + $0x128] sm:$0xff]  ;;  %v5615_v37 = vld [vmem:[%s9342_s5 + $0x110] sm:$0xff]  ;;  %v2330_v7 = vld [vmem:[%s9342_s5 + $0xb8] sm:$0xff] }
 0x21e   : > { %v2000_v51 = vmax.f32 %v1881_v19, %v1936_v26  ;;  %v1928_v29 = vrot.slane %v1880_v35, 1  ;;  %2077 = vmatpush1.msra.mxu1 %v2003_v3  ;;  %v1794_v43 = vpop.permute.xlu0 %1793  ;;  %2981 = vmatprep.subr.mxu0 %v5724_v38  ;;  %v5718_v19 = vld [vmem:[%s9342_s5 + $0x388] sm:$0xff]  ;;  %v5713_v26 = vld [vmem:[%s9342_s5 + $0x360] sm:$0xff] }
 0x21f   : > { %v1930_v44 = vrot.slane %v1879_v45, 1  ;;  %v1842_v63 = vsel %vm1841_vm3, %v1794_v43, %v1796_v17  ;;  %2078 = vmatprep.subr.mxu1 %v2002_v62  ;;  %v5714_v17 = vld [vmem:[%s9342_s5 + $0x368] sm:$0xff]  ;;  %v5617_v62 = vld [vmem:[%s9342_s5 + $0x120] sm:$0xff] }
 0x220   : > { %v1934_v24 = vsel %vm1926_vm2, %v1928_v29, %v1933_v46  ;;  %v1878_v0 = vmax.f32 %v9452_v42, %v1842_v63  ;;  %2079 = vmatpush1.msra.mxu1 %v2001_v52  ;;  %v5616_v52 = vld [vmem:[%s9342_s5 + $0x118] sm:$0xff]  ;;  %v5710_v43 = vld [vmem:[%s9342_s5 + $0x348] sm:$0xff]  ;;  %v5611_v42 = vld [vmem:[%s9342_s5 + $0xf0] sm:$0xff] }
 0x221   : > { %v1999_v56 = vmax.f32 %v1880_v35, %v1934_v24  ;;  %v1932_v34 = vsel %vm1926_vm2, %v1930_v44, %v1931_v20  ;;  %2080 = vmatprep.subr.mxu1 %v2000_v51  ;;  %v5715_v35 = vld [vmem:[%s9342_s5 + $0x370] sm:$0xff]  ;;  %v5712_v51 = vld [vmem:[%s9342_s5 + $0x358] sm:$0xff]  ;;  %v5613_v44 = vld [vmem:[%s9342_s5 + $0x100] sm:$0xff] }
 0x222   : > { %v1998_v61 = vmax.f32 %v1879_v45, %v1932_v34  ;;  %v1927_v22 = vrot.slane %v1878_v0, 1  ;;  %v5614_v45 = vld [vmem:[%s9342_s5 + $0x108] sm:$0xff]  ;;  %v5612_v63 = vld [vmem:[%s9342_s5 + $0xf8] sm:$0xff]  ;;  %v5709_v24 = vld [vmem:[%s9342_s5 + $0x340] sm:$0xff] }
 0x223   : > { %2081 = vmatpush1.msra.mxu1 %v1999_v56  ;;  %v5708_v56 = vld [vmem:[%s9342_s5 + $0x338] sm:$0xff]  ;;  %v5707_v34 = vld [vmem:[%s9342_s5 + $0x330] sm:$0xff]  ;;  %v5701_v32 = vld [vmem:[%s9342_s5 + $0x300] sm:$0xff] }
 0x224   : > { %v1929_v57 = vsel %vm1926_vm2, %v1927_v22, %v1928_v29  ;;  %2082 = vmatprep.subr.mxu1 %v1998_v61  ;;  %v5711_v29 = vld [vmem:[%s9342_s5 + $0x350] sm:$0xff]  ;;  %v5706_v61 = vld [vmem:[%s9342_s5 + $0x328] sm:$0xff]  ;;  %v5609_v22 = vld [vmem:[%s9342_s5 + $0xe0] sm:$0xff] }
 0x225   : > { %v1997_v55 = vmax.f32 %v1878_v0, %v1929_v57  ;;  %v5610_v0 = vld [vmem:[%s9342_s5 + $0xe8] sm:$0xff]  ;;  %v5608_v57 = vld [vmem:[%s9342_s5 + $0xd8] sm:$0xff] }
 0x227   : > { %2083 = vmatpush1.msra.mxu1 %v1997_v55  ;;  %v5705_v55 = vld [vmem:[%s9342_s5 + $0x320] sm:$0xff] }
 0x228   : > { %5592 = vmatmul.mubr.msk.f32.vlgmr.msra.gmra.mxu1 %vm2027_vm4, %v2021_v28  ;;  %2388 = vmatprep.subr.mxu1 %v5628_v41  ;;  %v5607_v28 = vld [vmem:[%s9342_s5 + $0xd0] sm:$0xff] }
 0x229   : > { %2122 = vmatprep.mubr.f32.mxu1 %v9446_v50  ;;  %2389 = vmatpush1.msra.mxu1 %v5627_v40 }
 0x22a   : > { %2390 = vmatprep.subr.mxu1 %v5626_v60 }
 0x22b   : > { %2391 = vmatpush1.msra.mxu1 %v5625_v13 }
 0x22c   : > { %5593 = vmatmul.mubr.msk.f32.gmra.mxu1 %vm2027_vm4, %v2022_v48  ;;  %2392 = vmatprep.subr.mxu1 %v5624_v16  ;;  %v5606_v48 = vld [vmem:[%s9342_s5 + $0xc8] sm:$0xff] }
 0x22d   : > { %2128 = vmatprep.mubr.f32.mxu1 %v9446_v50  ;;  %2393 = vmatpush1.msra.mxu1 %v5623_v8  ;;  %v2329_v8 = vld [vmem:[%s9342_s5 + $0xb0] sm:$0xff] }
 0x22e   : > { %2394 = vmatprep.subr.mxu1 %v5622_v10 }
 0x22f   : > { %2395 = vmatpush1.msra.mxu1 %v5621_v30 }
 0x230   : > { %5594 = vmatmul.mubr.msk.f32.gmra.mxu1 %vm2027_vm4, %v2023_v9  ;;  %2396 = vmatprep.subr.mxu1 %v5620_v2  ;;  %v5704_v9 = vld [vmem:[%s9342_s5 + $0x318] sm:$0xff]  ;;  %v2328_v2 = vld [vmem:[%s9342_s5 + $0xa8] sm:$0xff] }
 0x231   : > { %2134 = vmatprep.mubr.f32.mxu1 %v9446_v50  ;;  %2397 = vmatpush1.msra.mxu1 %v5619_v31 }
 0x232   : > { %2398 = vmatprep.subr.mxu1 %v5618_v39  ;;  %v2327_v39 = vld [vmem:[%s9342_s5 + $0xa0] sm:$0xff] }
 0x233   : > { %2399 = vmatpush1.msra.mxu1 %v5617_v62  ;;  %v2315_v62 = vld [vmem:[%s9342_s5 + $0x40] sm:$0xff] }
 0x234   : > { %5595 = vmatmul.mubr.msk.f32.gmra.mxu1 %vm2027_vm4, %v2024_v6  ;;  %2400 = vmatprep.subr.mxu1 %v5616_v52  ;;  %v5703_v6 = vld [vmem:[%s9342_s5 + $0x310] sm:$0xff]  ;;  %v2314_v52 = vld [vmem:[%s9342_s5 + $0x38] sm:$0xff] }
 0x235   : > { %2140 = vmatprep.mubr.f32.mxu1 %v9446_v50  ;;  %2401 = vmatpush1.msra.mxu1 %v5615_v37 }
 0x236   : > { %2402 = vmatprep.subr.mxu1 %v5614_v45  ;;  %v2312_v45 = vld [vmem:[%s9342_s5 + $0x28] sm:$0xff] }
 0x237   : > { %2403 = vmatpush1.msra.mxu1 %v5613_v44  ;;  %v2309_v44 = vld [vmem:[%s9342_s5 + $0x10] sm:$0xff] }
 0x238   : > { %5596 = vmatmul.mubr.msk.f32.gmra.mxu1 %vm2027_vm4, %v2025_v59  ;;  %2404 = vmatprep.subr.mxu1 %v5612_v63  ;;  %v5702_v59 = vld [vmem:[%s9342_s5 + $0x308] sm:$0xff] }
 0x239   : > { %2146 = vmatprep.mubr.f32.mxu1 %v9446_v50  ;;  %2405 = vmatpush1.msra.mxu1 %v5611_v42  ;;  %v2307_v42 = vld [vmem:[%s9342_s5] sm:$0xff] }
 0x23a   : > { %2406 = vmatprep.subr.mxu1 %v5610_v0 }
 0x23b   : > { %2407 = vmatpush1.msra.mxu1 %v5609_v22  ;;  %v5662_v22 = vld [vmem:[%s9342_s5 + $0x228] sm:$0xff] }
 0x23c   : > { %5597 = vmatmul.mubr.msk.f32.gmra.mxu1 %vm2027_vm4, %v2026_v54  ;;  %2408 = vmatprep.subr.mxu1 %v5608_v57  ;;  %v5605_v54 = vld [vmem:[%s9342_s5 + $0xc0] sm:$0xff] }
 0x23d   : > { %2444 = vmatprep.mubr.f32.mxu1 %v9446_v50  ;;  %2409 = vmatpush1.msra.mxu1 %v5607_v28  ;;  %v5661_v57 = vld [vmem:[%s9342_s5 + $0x220] sm:$0xff]  ;;  %v5659_v28 = vld [vmem:[%s9342_s5 + $0x210] sm:$0xff] }
 0x23e   : > { %2410 = vmatprep.subr.mxu1 %v5606_v48 }
 0x23f   : > { %2411 = vmatpush1.msra.mxu1 %v5605_v54  ;;  %v5655_v54 = vld [vmem:[%s9342_s5 + $0x1f0] sm:$0xff] }
 0x240   : > { %2507 = vmatprep.subr.mxu1 %v2330_v7 }
 0x2e8   : > { %v2118_v11 = vpop.f32.mrf.mxu1 }
 0x2ea   : > { %v2120_v1 = vpop.f32.mrf.mxu1 }
 0x2eb   : > { %5599 = vmatprep.mubr.msk.f32.mxu0 %vm2177_vm5, %v2120_v1  ;;  %v2326_v1 = vld [vmem:[%s9342_s5 + $0x98] sm:$0xff] }
 0x2ec   : > { %v2124_v33 = vpop.f32.mrf.mxu1  ;;  %2264 = vmatmul.mubr.f32.vlgmr.msra.gmra.mxu0 %v2118_v11 }
 0x2ed   : > { %2982 = vmatpush1.msra.mxu0 %v5723_v49  ;;  %v2325_v49 = vld [vmem:[%s9342_s5 + $0x90] sm:$0xff] }
 0x2ee   : > { %v2126_v5 = vpop.f32.mrf.mxu1  ;;  %2983 = vmatprep.subr.mxu0 %v5722_v53 }
 0x2ef   : > { %5600 = vmatprep.mubr.msk.f32.mxu0 %vm2177_vm5, %v2126_v5  ;;  %2984 = vmatpush1.msra.mxu0 %v5721_v36  ;;  %v2324_v36 = vld [vmem:[%s9342_s5 + $0x88] sm:$0xff]  ;;  %v2323_v5 = vld [vmem:[%s9342_s5 + $0x80] sm:$0xff] }
 0x2f0   : > { %v2130_v14 = vpop.f32.mrf.mxu1  ;;  %2269 = vmatmul.mubr.f32.gmra.mxu0 %v2124_v33  ;;  %2985 = vmatprep.subr.mxu0 %v5720_v12 }
 0x2f1   : > { %2986 = vmatpush1.msra.mxu0 %v5719_v27 }
 0x2f2   : > { %v2132_v46 = vpop.f32.mrf.mxu1  ;;  %2987 = vmatprep.subr.mxu0 %v5718_v19  ;;  %v2322_v19 = vld [vmem:[%s9342_s5 + $0x78] sm:$0xff] }
 0x2f3   : > { %5601 = vmatprep.mubr.msk.f32.mxu0 %vm2177_vm5, %v2132_v46  ;;  %2988 = vmatpush1.msra.mxu0 %v5717_v21 }
 0x2f4   : > { %v2136_v47 = vpop.f32.mrf.mxu1  ;;  %2274 = vmatmul.mubr.f32.gmra.mxu0 %v2130_v14  ;;  %2989 = vmatprep.subr.mxu0 %v5716_v23  ;;  %v2321_v14 = vld [vmem:[%s9342_s5 + $0x70] sm:$0xff] }
 0x2f5   : > { %2990 = vmatpush1.msra.mxu0 %v5715_v35  ;;  %v2316_v35 = vld [vmem:[%s9342_s5 + $0x48] sm:$0xff] }
 0x2f6   : > { %v2138_v15 = vpop.f32.mrf.mxu1  ;;  %2991 = vmatprep.subr.mxu0 %v5714_v17 }
 0x2f7   : > { %5602 = vmatprep.mubr.msk.f32.mxu0 %vm2177_vm5, %v2138_v15  ;;  %2992 = vmatpush1.msra.mxu0 %v5713_v26  ;;  %v2313_v26 = vld [vmem:[%s9342_s5 + $0x30] sm:$0xff] }
 0x2f8   : > { %v2142_v20 = vpop.f32.mrf.mxu1  ;;  %2279 = vmatmul.mubr.f32.gmra.mxu0 %v2136_v47  ;;  %2993 = vmatprep.subr.mxu0 %v5712_v51  ;;  %v2320_v47 = vld [vmem:[%s9342_s5 + $0x68] sm:$0xff] }
 0x2f9   : > { %2994 = vmatpush1.msra.mxu0 %v5711_v29  ;;  %v2311_v29 = vld [vmem:[%s9342_s5 + $0x20] sm:$0xff] }
 0x2fa   : > { %v2144_v4 = vpop.f32.mrf.mxu1  ;;  %2995 = vmatprep.subr.mxu0 %v5710_v43  ;;  %v2310_v43 = vld [vmem:[%s9342_s5 + $0x18] sm:$0xff] }
 0x2fb   : > { %5603 = vmatprep.mubr.msk.f32.mxu0 %vm2177_vm5, %v2144_v4  ;;  %2996 = vmatpush1.msra.mxu0 %v5709_v24  ;;  %v2318_v4 = vld [vmem:[%s9342_s5 + $0x58] sm:$0xff]  ;;  %v2308_v24 = vld [vmem:[%s9342_s5 + $0x8] sm:$0xff] }
 0x2fc   : > { %v2148_v3 = vpop.f32.mrf.mxu1  ;;  %2284 = vmatmul.mubr.f32.gmra.mxu0 %v2142_v20  ;;  %2997 = vmatprep.subr.mxu0 %v5708_v56  ;;  %v2319_v20 = vld [vmem:[%s9342_s5 + $0x60] sm:$0xff]  ;;  %v5664_v56 = vld [vmem:[%s9342_s5 + $0x238] sm:$0xff] }
 0x2fd   : > { %2998 = vmatpush1.msra.mxu0 %v5707_v34  ;;  %v5663_v34 = vld [vmem:[%s9342_s5 + $0x230] sm:$0xff] }
 0x2fe   : > { %v2150_v25 = vpop.f32.mrf.mxu1  ;;  %2999 = vmatprep.subr.mxu0 %v5706_v61 }
 0x2ff   : > { %5604 = vmatprep.mubr.msk.f32.mxu0 %vm2177_vm5, %v2150_v25  ;;  %3000 = vmatpush1.msra.mxu0 %v5705_v55  ;;  %v2317_v25 = vld [vmem:[%s9342_s5 + $0x50] sm:$0xff]  ;;  %v5660_v55 = vld [vmem:[%s9342_s5 + $0x218] sm:$0xff] }
 0x300   : > { %2289 = vmatmul.mubr.f32.gmra.mxu0 %v2148_v3  ;;  %3001 = vmatprep.subr.mxu0 %v5704_v9  ;;  %v5658_v9 = vld [vmem:[%s9342_s5 + $0x208] sm:$0xff] }
 0x301   : > { %3037 = vmatprep.mubr.f32.mxu0 %v9446_v50  ;;  %3002 = vmatpush1.msra.mxu0 %v5703_v6  ;;  %v5657_v6 = vld [vmem:[%s9342_s5 + $0x200] sm:$0xff] }
 0x302   : > { %3003 = vmatprep.subr.mxu0 %v5702_v59  ;;  %v5656_v59 = vld [vmem:[%s9342_s5 + $0x1f8] sm:$0xff] }
 0x303   : > { %3004 = vmatpush1.msra.mxu0 %v5701_v32  ;;  %v5654_v32 = vld [vmem:[%s9342_s5 + $0x1e8] sm:$0xff] }
 0x304   : > { %3384 = vmatprep.subr.mxu0 %v9446_v50 }
 0x3ac   : > { %v2265_v41 = vpop.f32.mrf.mxu0 }
 0x3ad   : > { %2295 = vst.msk [vmem:[#allocation2] sm:$0xff] %vm2294_vm6, %v2265_v41  ;;  %v5653_v41 = vld [vmem:[%s9342_s5 + $0x1e0] sm:$0xff] }
 0x3ae   : > { %v2267_v40 = vpop.f32.mrf.mxu0 }
 0x3af   : > { %v5652_v40 = vld [vmem:[%s9342_s5 + $0x1d8] sm:$0xff] }
 0x3b0   : > { %v2270_v60 = vpop.f32.mrf.mxu0 }
 0x3b1   : > { %2296 = vst.msk [vmem:[#allocation2 + $0x8] sm:$0xff] %vm2294_vm6, %v2270_v60  ;;  %v5651_v60 = vld [vmem:[%s9342_s5 + $0x1d0] sm:$0xff] }
 0x3b2   : > { %v2272_v13 = vpop.f32.mrf.mxu0 }
 0x3b4   : > { %v2275_v38 = vpop.f32.mrf.mxu0  ;;  %v2301_v61 = vld [vmem:[#allocation2] sm:$0xff] }
 0x3b5   : > { %2297 = vst.msk [vmem:[#allocation2 + $0x10] sm:$0xff] %vm2294_vm6, %v2275_v38  ;;  %v5650_v38 = vld [vmem:[%s9342_s5 + $0x1c8] sm:$0xff] }
 0x3b6   : > { %v2277_v16 = vpop.f32.mrf.mxu0 }
 0x3b7   : > { %v5649_v16 = vld [vmem:[%s9342_s5 + $0x1c0] sm:$0xff] }
 0x3b8   : > { %v2280_v10 = vpop.f32.mrf.mxu0  ;;  %v2331_v30 = vld [vmem:[#allocation2 + $0x1] sm:$0xff] }
 0x3b9   : > { %v2924_v31 = vld [vmem:[#allocation2 + $0x4] sm:$0xff]  ;;  %2298 = vst.msk [vmem:[#allocation2 + $0x18] sm:$0xff] %vm2294_vm6, %v2280_v10  ;;  %5629 = vmatmul.mubr.msk.f32.vlgmr.msra.gmra.mxu1 %vm2294_vm6, %v2331_v30  ;;  %v5647_v10 = vld [vmem:[%s9342_s5 + $0x1b0] sm:$0xff] }
 0x3ba   : > { %5725 = vmatmul.mubr.msk.f32.vlgmr.msra.gmra.mxu0 %vm2294_vm6, %v2924_v31  ;;  %v2282_v11 = vpop.f32.mrf.mxu0  ;;  %2508 = vmatpush1.msra.mxu1 %v2329_v8  ;;  %v2302_v48 = vld [vmem:[#allocation2 + $0x8] sm:$0xff]  ;;  %v5648_v8 = vld [vmem:[%s9342_s5 + $0x1b8] sm:$0xff]  ;;  %v5645_v31 = vld [vmem:[%s9342_s5 + $0x1a0] sm:$0xff] }
 0x3bb   : > { %2450 = vmatprep.mubr.f32.mxu1 %v9446_v50  ;;  %2509 = vmatprep.subr.mxu1 %v2328_v2  ;;  %v5646_v2 = vld [vmem:[%s9342_s5 + $0x1a8] sm:$0xff]  ;;  %v5643_v11 = vld [vmem:[%s9342_s5 + $0x190] sm:$0xff] }
 0x3bc   : > { %3043 = vmatprep.mubr.f32.mxu0 %v9446_v50  ;;  %v2285_v53 = vpop.f32.mrf.mxu0  ;;  %2510 = vmatpush1.msra.mxu1 %v2327_v39  ;;  %v2332_v33 = vld [vmem:[#allocation2 + $0x9] sm:$0xff]  ;;  %v5644_v39 = vld [vmem:[%s9342_s5 + $0x198] sm:$0xff] }
 0x3bd   : > { %v2925_v12 = vld [vmem:[#allocation2 + $0xc] sm:$0xff]  ;;  %2299 = vst.msk [vmem:[#allocation2 + $0x20] sm:$0xff] %vm2294_vm6, %v2285_v53  ;;  %5630 = vmatmul.mubr.msk.f32.gmra.mxu1 %vm2294_vm6, %v2332_v33  ;;  %2511 = vmatprep.subr.mxu1 %v2326_v1  ;;  %v5641_v53 = vld [vmem:[%s9342_s5 + $0x180] sm:$0xff]  ;;  %v5694_v33 = vld [vmem:[%s9342_s5 + $0x2f8] sm:$0xff] }
 0x3be   : > { %v2287_v27 = vpop.f32.mrf.mxu0  ;;  %2512 = vmatpush1.msra.mxu1 %v2325_v49  ;;  %2456 = vmatprep.mubr.f32.mxu1 %v9446_v50  ;;  %v2303_v7 = vld [vmem:[#allocation2 + $0x10] sm:$0xff]  ;;  %v5642_v49 = vld [vmem:[%s9342_s5 + $0x188] sm:$0xff] }
 0x3bf   : > { %2513 = vmatprep.subr.mxu1 %v2324_v36  ;;  %5726 = vmatmul.mubr.msk.f32.gmra.mxu0 %vm2294_vm6, %v2925_v12  ;;  %v5693_v36 = vld [vmem:[%s9342_s5 + $0x2f0] sm:$0xff]  ;;  %v2600_v12 = vld [vmem:[#allocation2 + $0x2] sm:$0xff] }
 0x3c0   : > { %v2290_v21 = vpop.f32.mrf.mxu0  ;;  %2514 = vmatpush1.msra.mxu1 %v2323_v5  ;;  %v2333_v46 = vld [vmem:[#allocation2 + $0x11] sm:$0xff]  ;;  %3049 = vmatprep.mubr.f32.mxu0 %v9446_v50  ;;  %v5692_v5 = vld [vmem:[%s9342_s5 + $0x2e8] sm:$0xff]  ;;  %v5691_v27 = vld [vmem:[%s9342_s5 + $0x2e0] sm:$0xff] }
 0x3c1   : > { %v2926_v15 = vld [vmem:[#allocation2 + $0x14] sm:$0xff]  ;;  %2300 = vst.msk [vmem:[#allocation2 + $0x28] sm:$0xff] %vm2294_vm6, %v2290_v21  ;;  %5631 = vmatmul.mubr.msk.f32.gmra.mxu1 %vm2294_vm6, %v2333_v46  ;;  %2515 = vmatprep.subr.mxu1 %v2322_v19  ;;  %v2601_v21 = vld [vmem:[#allocation2 + $0xa] sm:$0xff] }
 0x3c2   : > { %2516 = vmatpush1.msra.mxu1 %v2321_v14  ;;  %2462 = vmatprep.mubr.f32.mxu1 %v9446_v50  ;;  %v2292_v3 = vpop.f32.mrf.mxu0  ;;  %v2304_v13 = vld [vmem:[#allocation2 + $0x18] sm:$0xff]  ;;  %v5689_v14 = vld [vmem:[%s9342_s5 + $0x2d0] sm:$0xff]  ;;  %v5688_v46 = vld [vmem:[%s9342_s5 + $0x2c8] sm:$0xff] }
 0x3c3   : > { %2517 = vmatprep.subr.mxu1 %v2320_v47  ;;  %5727 = vmatmul.mubr.msk.f32.gmra.mxu0 %vm2294_vm6, %v2926_v15  ;;  %v5690_v19 = vld [vmem:[%s9342_s5 + $0x2d8] sm:$0xff]  ;;  %v5687_v47 = vld [vmem:[%s9342_s5 + $0x2c0] sm:$0xff]  ;;  %v5684_v3 = vld [vmem:[%s9342_s5 + $0x2a8] sm:$0xff] }
 0x3c4   : > { %2518 = vmatpush1.msra.mxu1 %v2319_v20  ;;  %v2334_v23 = vld [vmem:[#allocation2 + $0x19] sm:$0xff]  ;;  %3055 = vmatprep.mubr.f32.mxu0 %v9446_v50  ;;  %v5685_v20 = vld [vmem:[%s9342_s5 + $0x2b0] sm:$0xff] }
 0x3c5   : > { %v2927_v17 = vld [vmem:[#allocation2 + $0x1c] sm:$0xff]  ;;  %5632 = vmatmul.mubr.msk.f32.gmra.mxu1 %vm2294_vm6, %v2334_v23  ;;  %2519 = vmatprep.subr.mxu1 %v2318_v4  ;;  %v2602_v4 = vld [vmem:[#allocation2 + $0x12] sm:$0xff] }
 0x3c6   : > { %2520 = vmatpush1.msra.mxu1 %v2317_v25  ;;  %2468 = vmatprep.mubr.f32.mxu1 %v9446_v50  ;;  %v2305_v30 = vld [vmem:[#allocation2 + $0x20] sm:$0xff]  ;;  %v5686_v15 = vld [vmem:[%s9342_s5 + $0x2b8] sm:$0xff] }
 0x3c7   : > { %2521 = vmatprep.subr.mxu1 %v2316_v35  ;;  %5728 = vmatmul.mubr.msk.f32.gmra.mxu0 %vm2294_vm6, %v2927_v17  ;;  %v5683_v25 = vld [vmem:[%s9342_s5 + $0x2a0] sm:$0xff]  ;;  %v5682_v23 = vld [vmem:[%s9342_s5 + $0x298] sm:$0xff]  ;;  %v5681_v35 = vld [vmem:[%s9342_s5 + $0x290] sm:$0xff] }
 0x3c8   : > { %2522 = vmatpush1.msra.mxu1 %v2315_v62  ;;  %v2335_v37 = vld [vmem:[#allocation2 + $0x21] sm:$0xff]  ;;  %3061 = vmatprep.mubr.f32.mxu0 %v9446_v50  ;;  %v2336_v63 = vld [vmem:[#allocation2 + $0x29] sm:$0xf] }
 0x3c9   : > { %v2928_v51 = vld [vmem:[#allocation2 + $0x24] sm:$0xff]  ;;  %5633 = vmatmul.mubr.msk.f32.gmra.mxu1 %vm2294_vm6, %v2335_v37  ;;  %2523 = vmatprep.subr.mxu1 %v2314_v52  ;;  %v2929_v0 = vld [vmem:[#allocation2 + $0x2c] sm:$0xf]  ;;  %v2603_v17 = vld [vmem:[#allocation2 + $0x1a] sm:$0xff] }
 0x3ca   : > { %2524 = vmatpush1.msra.mxu1 %v2313_v26  ;;  %2474 = vmatprep.mubr.f32.mxu1 %v9446_v50  ;;  %v2306_v1 = vld [vmem:[#allocation2 + $0x28] sm:$0xf]  ;;  %v5679_v52 = vld [vmem:[%s9342_s5 + $0x280] sm:$0xff]  ;;  %v5678_v26 = vld [vmem:[%s9342_s5 + $0x278] sm:$0xff] }
 0x3cb   : > { %2525 = vmatprep.subr.mxu1 %v2312_v45  ;;  %5729 = vmatmul.mubr.msk.f32.gmra.mxu0 %vm2294_vm6, %v2928_v51  ;;  %v5680_v62 = vld [vmem:[%s9342_s5 + $0x288] sm:$0xff]  ;;  %v5677_v37 = vld [vmem:[%s9342_s5 + $0x270] sm:$0xff] }
 0x3cc   : > { %2526 = vmatpush1.msra.mxu1 %v2311_v29  ;;  %3067 = vmatprep.mubr.f32.mxu0 %v9446_v50  ;;  %v2604_v45 = vld [vmem:[#allocation2 + $0x22] sm:$0xff] }
 0x3cd   : > { %5634 = vmatmul.mubr.msk.f32.gmra.mxu1 %vm2294_vm6, %v2336_v63  ;;  %2527 = vmatprep.subr.mxu1 %v2310_v43  ;;  %v5676_v51 = vld [vmem:[%s9342_s5 + $0x268] sm:$0xff]  ;;  %v5675_v29 = vld [vmem:[%s9342_s5 + $0x260] sm:$0xff]  ;;  %v5674_v43 = vld [vmem:[%s9342_s5 + $0x258] sm:$0xff] }
 0x3ce   : > { %2528 = vmatpush1.msra.mxu1 %v2309_v44  ;;  %2563 = vmatprep.mubr.f32.mxu1 %v9446_v50  ;;  %v5673_v44 = vld [vmem:[%s9342_s5 + $0x250] sm:$0xff]  ;;  %v2605_v63 = vld [vmem:[#allocation2 + $0x2a] sm:$0xf] }
 0x3cf   : > { %2529 = vmatprep.subr.mxu1 %v2308_v24  ;;  %5730 = vmatmul.mubr.msk.f32.gmra.mxu0 %vm2294_vm6, %v2929_v0  ;;  %v5672_v24 = vld [vmem:[%s9342_s5 + $0x248] sm:$0xff] }
 0x3d0   : > { %2530 = vmatpush1.msra.mxu1 %v2307_v42  ;;  %v5671_v42 = vld [vmem:[%s9342_s5 + $0x240] sm:$0xff] }
 0x3d1   : > { %5635 = vmatmul.mubr.msk.f32.vlgmr.msra.gmra.mxu1 %vm2294_vm6, %v2301_v61  ;;  %2657 = vmatprep.subr.mxu1 %v5664_v56  ;;  %v2762_v0 = vld [vmem:[#allocation2 + $0x3] sm:$0xff]  ;;  %v2763_v56 = vld [vmem:[#allocation2 + $0xb] sm:$0xff]  ;;  %v2765_v61 = vld [vmem:[#allocation2 + $0x1b] sm:$0xff] }
 0x3d2   : > { %2658 = vmatpush1.msra.mxu1 %v5663_v34  ;;  %2569 = vmatprep.mubr.f32.mxu1 %v9446_v50  ;;  %v2764_v34 = vld [vmem:[#allocation2 + $0x13] sm:$0xff] }
 0x3d3   : > { %2659 = vmatprep.subr.mxu1 %v5662_v22  ;;  %v2766_v22 = vld [vmem:[#allocation2 + $0x23] sm:$0xff] }
 0x3d4   : > { %2660 = vmatpush1.msra.mxu1 %v5661_v57  ;;  %v2767_v57 = vld [vmem:[#allocation2 + $0x2b] sm:$0xf] }
 0x3d5   : > { %5636 = vmatmul.mubr.msk.f32.gmra.mxu1 %vm2294_vm6, %v2302_v48  ;;  %2661 = vmatprep.subr.mxu1 %v5660_v55 }
 0x3d6   : > { %2662 = vmatpush1.msra.mxu1 %v5659_v28  ;;  %2575 = vmatprep.mubr.f32.mxu1 %v9446_v50 }
 0x3d7   : > { %2663 = vmatprep.subr.mxu1 %v5658_v9 }
 0x3d8   : > { %2664 = vmatpush1.msra.mxu1 %v5657_v6 }
 0x3d9   : > { %5637 = vmatmul.mubr.msk.f32.gmra.mxu1 %vm2294_vm6, %v2303_v7  ;;  %2665 = vmatprep.subr.mxu1 %v5656_v59 }
 0x3da   : > { %2666 = vmatpush1.msra.mxu1 %v5655_v54  ;;  %2581 = vmatprep.mubr.f32.mxu1 %v9446_v50 }
 0x3db   : > { %2667 = vmatprep.subr.mxu1 %v5654_v32 }
 0x3dc   : > { %2668 = vmatpush1.msra.mxu1 %v5653_v41 }
 0x3dd   : > { %5638 = vmatmul.mubr.msk.f32.gmra.mxu1 %vm2294_vm6, %v2304_v13  ;;  %2669 = vmatprep.subr.mxu1 %v5652_v40 }
 0x3de   : > { %2670 = vmatpush1.msra.mxu1 %v5651_v60  ;;  %2587 = vmatprep.mubr.f32.mxu1 %v9446_v50 }
 0x3df   : > { %2671 = vmatprep.subr.mxu1 %v5650_v38 }
 0x3e0   : > { %2672 = vmatpush1.msra.mxu1 %v5649_v16 }
 0x3e1   : > { %5639 = vmatmul.mubr.msk.f32.gmra.mxu1 %vm2294_vm6, %v2305_v30  ;;  %2673 = vmatprep.subr.mxu1 %v5648_v8 }
 0x3e2   : > { %2674 = vmatpush1.msra.mxu1 %v5647_v10  ;;  %2593 = vmatprep.mubr.f32.mxu1 %v9446_v50 }
 0x3e3   : > { %2675 = vmatprep.subr.mxu1 %v5646_v2 }
 0x3e4   : > { %2676 = vmatpush1.msra.mxu1 %v5645_v31 }
 0x3e5   : > { %5640 = vmatmul.mubr.msk.f32.gmra.mxu1 %vm2294_vm6, %v2306_v1  ;;  %2677 = vmatprep.subr.mxu1 %v5644_v39 }
 0x3e6   : > { %2678 = vmatpush1.msra.mxu1 %v5643_v11  ;;  %2713 = vmatprep.mubr.f32.mxu1 %v9446_v50 }
 0x3e7   : > { %2679 = vmatprep.subr.mxu1 %v5642_v49 }
 0x3e8   : > { %2680 = vmatpush1.msra.mxu1 %v5641_v53 }
 0x3e9   : > { %5665 = vmatmul.mubr.msk.f32.vlgmr.msra.gmra.mxu1 %vm2294_vm6, %v2600_v12  ;;  %2819 = vmatprep.subr.mxu1 %v5694_v33 }
 0x3ea   : > { %2820 = vmatpush1.msra.mxu1 %v5693_v36  ;;  %2719 = vmatprep.mubr.f32.mxu1 %v9446_v50 }
 0x3eb   : > { %2821 = vmatprep.subr.mxu1 %v5692_v5 }
 0x3ec   : > { %2822 = vmatpush1.msra.mxu1 %v5691_v27 }
 0x3ed   : > { %5666 = vmatmul.mubr.msk.f32.gmra.mxu1 %vm2294_vm6, %v2601_v21  ;;  %2823 = vmatprep.subr.mxu1 %v5690_v19 }
 0x3ee   : > { %2824 = vmatpush1.msra.mxu1 %v5689_v14  ;;  %2725 = vmatprep.mubr.f32.mxu1 %v9446_v50 }
 0x3ef   : > { %2825 = vmatprep.subr.mxu1 %v5688_v46 }
 0x3f0   : > { %2826 = vmatpush1.msra.mxu1 %v5687_v47 }
 0x3f1   : > { %5667 = vmatmul.mubr.msk.f32.gmra.mxu1 %vm2294_vm6, %v2602_v4  ;;  %2827 = vmatprep.subr.mxu1 %v5686_v15 }
 0x3f2   : > { %2828 = vmatpush1.msra.mxu1 %v5685_v20  ;;  %2731 = vmatprep.mubr.f32.mxu1 %v9446_v50 }
 0x3f3   : > { %2829 = vmatprep.subr.mxu1 %v5684_v3 }
 0x3f4   : > { %2830 = vmatpush1.msra.mxu1 %v5683_v25 }
 0x3f5   : > { %5668 = vmatmul.mubr.msk.f32.gmra.mxu1 %vm2294_vm6, %v2603_v17  ;;  %2831 = vmatprep.subr.mxu1 %v5682_v23 }
 0x3f6   : > { %2832 = vmatpush1.msra.mxu1 %v5681_v35  ;;  %2737 = vmatprep.mubr.f32.mxu1 %v9446_v50 }
 0x3f7   : > { %2833 = vmatprep.subr.mxu1 %v5680_v62 }
 0x3f8   : > { %2834 = vmatpush1.msra.mxu1 %v5679_v52 }
 0x3f9   : > { %5669 = vmatmul.mubr.msk.f32.gmra.mxu1 %vm2294_vm6, %v2604_v45  ;;  %2835 = vmatprep.subr.mxu1 %v5678_v26 }
 0x3fa   : > { %2836 = vmatpush1.msra.mxu1 %v5677_v37  ;;  %2743 = vmatprep.mubr.f32.mxu1 %v9446_v50 }
 0x3fb   : > { %2837 = vmatprep.subr.mxu1 %v5676_v51 }
 0x3fc   : > { %2838 = vmatpush1.msra.mxu1 %v5675_v29 }
 0x3fd   : > { %5670 = vmatmul.mubr.msk.f32.gmra.mxu1 %vm2294_vm6, %v2605_v63  ;;  %2839 = vmatprep.subr.mxu1 %v5674_v43 }
 0x3fe   : > { %2840 = vmatpush1.msra.mxu1 %v5673_v44  ;;  %2875 = vmatprep.mubr.f32.mxu1 %v9446_v50 }
 0x3ff   : > { %2841 = vmatprep.subr.mxu1 %v5672_v24 }
 0x400   : > { %2842 = vmatpush1.msra.mxu1 %v5671_v42 }
 0x401   : > { %5695 = vmatmul.mubr.msk.f32.vlgmr.msra.gmra.mxu1 %vm2294_vm6, %v2762_v0 }
 0x402   : > { %2881 = vmatprep.mubr.f32.mxu1 %v9446_v50 }
 0x405   : > { %5696 = vmatmul.mubr.msk.f32.gmra.mxu1 %vm2294_vm6, %v2763_v56 }
 0x406   : > { %2887 = vmatprep.mubr.f32.mxu1 %v9446_v50 }
 0x409   : > { %5697 = vmatmul.mubr.msk.f32.gmra.mxu1 %vm2294_vm6, %v2764_v34  ;;  %v3086_v34 = vld [vmem:[%s9343_s6] sm:$0x3] }
 0x40a   : > { %2893 = vmatprep.mubr.f32.mxu1 %v9446_v50 }
 0x40d   : > { %5698 = vmatmul.mubr.msk.f32.gmra.mxu1 %vm2294_vm6, %v2765_v61 }
 0x40e   : > { %2899 = vmatprep.mubr.f32.mxu1 %v9446_v50 }
 0x411   : > { %5699 = vmatmul.mubr.msk.f32.gmra.mxu1 %vm2294_vm6, %v2766_v22 }
 0x412   : > { %2905 = vmatprep.mubr.f32.mxu1 %v9446_v50 }
 0x415   : > { %5700 = vmatmul.mubr.msk.f32.gmra.mxu1 %vm2294_vm6, %v2767_v57 }
 0x416   : > { %3330 = vmatprep.mubr.f32.mxu1 %v9446_v50  ;;  %v7958_v50 = vrot.slane %v3086_v34, %v7005_v18 }
 0x479   : > { %v2446_v55 = vpop.f32.mrf.mxu1 }
 0x47a   : > { %v7934_v19 = vpop.f32.mrf.mxu0 }
 0x47b   : > { %v2448_v28 = vpop.f32.mrf.mxu1 }
 0x47c   : > { %v7938_v46 = vpop.f32.mrf.mxu0 }
 0x47d   : > { %v2452_v48 = vpop.f32.mrf.mxu1 }
 0x47f   : > { %v2454_v9 = vpop.f32.mrf.mxu1  ;;  %v7940_v20 = vpop.f32.mrf.mxu0 }
 0x481   : > { %v2458_v6 = vpop.f32.mrf.mxu1  ;;  %v7942_v25 = vpop.f32.mrf.mxu0 }
 0x483   : > { %v7918_v59 = vpop.f32.mrf.mxu1  ;;  %v3051_v17 = vpop.f32.mrf.mxu0 }
 0x485   : > { %v2464_v54 = vpop.f32.mrf.mxu1  ;;  %v7944_v26 = vpop.f32.mrf.mxu0 }
 0x487   : > { %v2466_v7 = vpop.f32.mrf.mxu1  ;;  %v3057_v51 = vpop.f32.mrf.mxu0 }
 0x489   : > { %v2470_v32 = vpop.f32.mrf.mxu1  ;;  %v3059_v44 = vpop.f32.mrf.mxu0 }
 0x48b   : > { %v2472_v41 = vpop.f32.mrf.mxu1  ;;  %v3063_v61 = vpop.f32.mrf.mxu0 }
 0x48d   : > { %v2476_v40 = vpop.f32.mrf.mxu1 }
 0x48f   : > { %v7920_v60 = vpop.f32.mrf.mxu1 }
 0x491   : > { %v2565_v13 = vpop.f32.mrf.mxu1 }
 0x492   : > { %v7922_v38 = vadd.f32 %v2565_v13, %v2446_v55  ;;  %v7954_v13 = vrot.slane %v3086_v34, %v6996_v58 }
 0x493   : > { %v2567_v16 = vpop.f32.mrf.mxu1 }
 0x494   : > { %v7924_v8 = vadd.f32 %v2567_v16, %v2448_v28 }
 0x495   : > { %v2571_v10 = vpop.f32.mrf.mxu1 }
 0x496   : > { %v7926_v30 = vadd.f32 %v2571_v10, %v2452_v48 }
 0x497   : > { %v2573_v2 = vpop.f32.mrf.mxu1 }
 0x498   : > { %v7928_v31 = vadd.f32 %v2573_v2, %v2454_v9 }
 0x499   : > { %v2577_v39 = vpop.f32.mrf.mxu1 }
 0x49a   : > { %v2578_v48 = vadd.f32 %v2577_v39, %v2458_v6 }
 0x49b   : > { %v2579_v11 = vpop.f32.mrf.mxu1 }
 0x49d   : > { %v2583_v1 = vpop.f32.mrf.mxu1 }
 0x49e   : > { %v2584_v24 = vadd.f32 %v2583_v1, %v2464_v54  ;;  %v2580_v1 = vadd.f32 %v2579_v11, %v7918_v59 }
 0x49f   : > { %v2585_v49 = vpop.f32.mrf.mxu1 }
 0x4a0   : > { %v2586_v0 = vadd.f32 %v2585_v49, %v2466_v7  ;;  %v3065_v7 = vpop.f32.mrf.mxu0 }
 0x4a1   : > { %v2589_v53 = vpop.f32.mrf.mxu1 }
 0x4a2   : > { %v2590_v57 = vadd.f32 %v2589_v53, %v2470_v32 }
 0x4a3   : > { %v2591_v33 = vpop.f32.mrf.mxu1 }
 0x4a4   : > { %v2592_v16 = vadd.f32 %v2591_v33, %v2472_v41 }
 0x4a5   : > { %v2595_v36 = vpop.f32.mrf.mxu1 }
 0x4a6   : > { %v2596_v49 = vadd.f32 %v2595_v36, %v2476_v40  ;;  %v3069_v36 = vpop.f32.mrf.mxu0 }
 0x4a7   : > { %v2597_v12 = vpop.f32.mrf.mxu1 }
 0x4a8   : > { %v2598_v41 = vadd.f32 %v2597_v12, %v7920_v60 }
 0x4a9   : > { %v7930_v5 = vpop.f32.mrf.mxu1 }
 0x4ab   : > { %v7932_v27 = vpop.f32.mrf.mxu1 }
 0x4ad   : > { %v2721_v14 = vpop.f32.mrf.mxu1 }
 0x4af   : > { %v7936_v21 = vpop.f32.mrf.mxu1 }
 0x4b1   : > { %v2727_v47 = vpop.f32.mrf.mxu1 }
 0x4b3   : > { %v2729_v15 = vpop.f32.mrf.mxu1 }
 0x4b4   : > { %v2755_v33 = vadd.f32 %v2729_v15, %v2580_v1  ;;  %v2753_v15 = vadd.f32 %v7936_v21, %v7928_v31 }
 0x4b5   : > { %v2733_v4 = vpop.f32.mrf.mxu1 }
 0x4b6   : > { %v2756_v56 = vadd.f32 %v2733_v4, %v2584_v24  ;;  %v2754_v4 = vadd.f32 %v2727_v47, %v2578_v48  ;;  %v2752_v47 = vadd.f32 %v2721_v14, %v7926_v30  ;;  %v2751_v48 = vadd.f32 %v7932_v27, %v7924_v8 }
 0x4b7   : > { %v2735_v3 = vpop.f32.mrf.mxu1 }
 0x4b8   : > { %v2757_v55 = vadd.f32 %v2735_v3, %v2586_v0 }
 0x4b9   : > { %v2739_v23 = vpop.f32.mrf.mxu1 }
 0x4ba   : > { %v2758_v10 = vadd.f32 %v2739_v23, %v2590_v57  ;;  %v3071_v57 = vpop.f32.mrf.mxu0 }
 0x4bb   : > { %v2741_v35 = vpop.f32.mrf.mxu1 }
 0x4bc   : > { %v2759_v32 = vadd.f32 %v2741_v35, %v2592_v16 }
 0x4bd   : > { %v2745_v62 = vpop.f32.mrf.mxu1 }
 0x4be   : > { %v2760_v3 = vadd.f32 %v2745_v62, %v2596_v49 }
 0x4bf   : > { %v2747_v52 = vpop.f32.mrf.mxu1 }
 0x4c0   : > { %v2761_v35 = vadd.f32 %v2747_v52, %v2598_v41  ;;  %v3359_v41 = vld [vmem:[%s9345_s8 + $0x50] sm:$0xff] }
 0x4c1   : > { %v7946_v37 = vpop.f32.mrf.mxu1 }
 0x4c3   : > { %v7948_v45 = vpop.f32.mrf.mxu1 }
 0x4c4   : > { %v2913_v16 = vadd.f32 %v7948_v45, %v2751_v48 }
 0x4c5   : > { %v2883_v29 = vpop.f32.mrf.mxu1 }
 0x4c6   : > { %v2914_v62 = vadd.f32 %v2883_v29, %v2752_v47  ;;  %v3351_v47 = vld [vmem:[%s9345_s8 + $0x10] sm:$0xff] }
 0x4c7   : > { %v2885_v43 = vpop.f32.mrf.mxu1 }
 0x4c9   : > { %v2889_v63 = vpop.f32.mrf.mxu1 }
 0x4ca   : > { %v2916_v23 = vadd.f32 %v2889_v63, %v2754_v4  ;;  %v3363_v4 = vld [vmem:[%s9345_s8 + $0x70] sm:$0xff] }
 0x4cb   : > { %v2891_v42 = vpop.f32.mrf.mxu1 }
 0x4cc   : > { %v3078_v63 = vadd.f32 %v3051_v17, %v2916_v23  ;;  %v3356_v23 = vld [vmem:[%s9345_s8 + $0x38] sm:$0xff] }
 0x4cd   : > { %v2895_v22 = vpop.f32.mrf.mxu1 }
 0x4ce   : > { %v2918_v28 = vadd.f32 %v2895_v22, %v2756_v56 }
 0x4cf   : > { %v2897_v9 = vpop.f32.mrf.mxu1 }
 0x4d0   : > { %v3080_v54 = vadd.f32 %v3057_v51, %v2918_v28  ;;  %v2919_v2 = vadd.f32 %v2897_v9, %v2757_v55  ;;  %v2750_v55 = vadd.f32 %v7930_v5, %v7922_v38  ;;  %v2915_v28 = vadd.f32 %v2885_v43, %v2753_v15  ;;  %v3367_v15 = vld [vmem:[%s9345_s8 + $0x90] sm:$0xff] }
 0x4d1   : > { %v2901_v24 = vpop.f32.mrf.mxu1  ;;  %v3076_v38 = vadd.f32 %v7940_v20, %v2914_v62  ;;  %v8007_v43 = vadd.f32 %v7954_v13, %v3078_v63 }
 0x4d2   : > { %v3081_v53 = vadd.f32 %v3059_v44, %v2919_v2  ;;  %v2920_v6 = vadd.f32 %v2901_v24, %v2758_v10  ;;  %v7961_v39 = vadd.f32 %v7954_v13, %v3080_v54  ;;  %v2917_v44 = vadd.f32 %v2891_v42, %v2755_v33  ;;  %v3358_v33 = vld [vmem:[%s9345_s8 + $0x48] sm:$0xff] }
 0x4d3   : > { %v2903_v51 = vpop.f32.mrf.mxu1  ;;  %v2912_v9 = vadd.f32 %v7946_v37, %v2750_v55  ;;  %v3077_v8 = vadd.f32 %v7942_v25, %v2915_v28  ;;  %v3114_v10 = vmax.f32 %v8007_v43, 0.0  ;;  %v8024_v45 = vadd.f32 %v7954_v13, %v3076_v38 }
 0x4d4   : > { %v3082_v0 = vadd.f32 %v3063_v61, %v2920_v6  ;;  %v2921_v59 = vadd.f32 %v2903_v51, %v2759_v32  ;;  %v3116_v40 = vmax.f32 %v7961_v39, 0.0  ;;  %v7966_v11 = vadd.f32 %v7958_v50, %v3081_v53  ;;  %v3362_v32 = vld [vmem:[%s9345_s8 + $0x68] sm:$0xff]  ;;  %v3361_v53 = vld [vmem:[%s9345_s8 + $0x60] sm:$0xff]  ;;  %v3360_v6 = vld [vmem:[%s9345_s8 + $0x58] sm:$0xff] }
 0x4d5   : > { %v2907_v56 = vpop.f32.mrf.mxu1  ;;  %v3079_v31 = vadd.f32 %v7944_v26, %v2917_v44  ;;  %v3074_v37 = vadd.f32 %v7934_v19, %v2912_v9  ;;  %v3075_v25 = vadd.f32 %v7938_v46, %v2913_v16  ;;  %v8032_v2 = vadd.f32 %v7958_v50, %v3077_v8  ;;  %v3355_v51 = vld [vmem:[%s9345_s8 + $0x30] sm:$0xff]  ;;  %v3349_v44 = vld [vmem:[%s9345_s8] sm:$0xff] }
 0x4d6   : > { %v3083_v34 = vadd.f32 %v3065_v7, %v2921_v59  ;;  %v2922_v22 = vadd.f32 %v2907_v56, %v2760_v3  ;;  %3146 = vrot.lane.b32.xlu0 %v3116_v40, %s6112_s18  ;;  %v3117_v60 = vmax.f32 %v7966_v11, 0.0  ;;  %v7974_v12 = vadd.f32 %v7954_v13, %v3082_v0  ;;  %v3357_v3 = vld [vmem:[%s9345_s8 + $0x40] sm:$0xff]  ;;  %v3354_v0 = vld [vmem:[%s9345_s8 + $0x28] sm:$0xff] }
 0x4d7   : > { %v2909_v30 = vpop.f32.mrf.mxu1  ;;  %v8016_v20 = vadd.f32 %v7958_v50, %v3079_v31  ;;  %v3112_v19 = vmax.f32 %v8024_v45, 0.0  ;;  %v8039_v7 = vadd.f32 %v7954_v13, %v3074_v37  ;;  %v3113_v46 = vmax.f32 %v8032_v2, 0.0  ;;  %v3353_v59 = vld [vmem:[%s9345_s8 + $0x20] sm:$0xff]  ;;  %v3370_v56 = vld [vmem:[%s9345_s8 + $0xa8] sm:$0x7f] }
 0x4d8   : > { %v3084_v14 = vadd.f32 %v3069_v36, %v2922_v22  ;;  %v2923_v52 = vadd.f32 %v2909_v30, %v2761_v35  ;;  %3148 = vrot.lane.b32.xlu1 %v3117_v60, %s6112_s18  ;;  %v3118_v42 = vmax.f32 %v7974_v12, 0.0  ;;  %v7983_v61 = vadd.f32 %v7958_v50, %v3083_v34  ;;  %v3352_v36 = vld [vmem:[%s9345_s8 + $0x18] sm:$0xff]  ;;  %v3350_v35 = vld [vmem:[%s9345_s8 + $0x8] sm:$0xff]  ;;  %v3369_v34 = vld [vmem:[%s9345_s8 + $0xa0] sm:$0xff] }
 0x4d9   : > { %v3115_v54 = vmax.f32 %v8016_v20, 0.0  ;;  %v8046_v1 = vadd.f32 %v7958_v50, %v3075_v25  ;;  %v3110_v49 = vmax.f32 %v8039_v7, 0.0  ;;  %v9453_v24 = vmov 0.0   ;;  %v3368_v22 = vld [vmem:[%s9345_s8 + $0x98] sm:$0xff]  ;;  %v3247_v7 = vld [vmem:[%s9344_s7 + $0x8] sm:$0xff] }
 0x4da   : > { %v3085_v21 = vadd.f32 %v3071_v57, %v2923_v52  ;;  %3150 = vrot.lane.b32.xlu0 %v3118_v42, %s6112_s18  ;;  %v3119_v17 = vmax.f32 %v7983_v61, 0.0  ;;  %v7993_v29 = vadd.f32 %v7954_v13, %v3084_v14 }
 0x4db   : > { %v3111_v13 = vmax.f32 %v8046_v1, 0.0 }
 0x4dc   : > { %3152 = vrot.lane.b32.xlu1 %v3119_v17, %s6112_s18  ;;  %v3120_v5 = vmax.f32 %v7993_v29, 0.0  ;;  %v8004_v26 = vadd.f32 %v7958_v50, %v3085_v21  ;;  %v3364_v50 = vld [vmem:[%s9345_s8 + $0x78] sm:$0xff] }
 0x4dd   : > { %3385 = vmatpush1.msra.mxu0 %v3364_v50 }
 0x4de   : > { %3154 = vrot.lane.b32.xlu0 %v3120_v5, %s6112_s18  ;;  %v3121_v27 = vmax.f32 %v8004_v26, 0.0  ;;  %3386 = vmatprep.subr.mxu0 %v9453_v24 }
 0x4df   : > { %3387 = vmatpush1.msra.mxu0 %v3363_v4 }
 0x4e0   : > { %3156 = vrot.lane.b32.xlu1 %v3121_v27, %s6112_s18  ;;  %3388 = vmatprep.subr.mxu0 %v9453_v24 }
 0x4e1   : > { %3389 = vmatpush1.msra.mxu0 %v3362_v32 }
 0x4e2   : > { %3142 = vrot.lane.b32.xlu0 %v3114_v10, %s6112_s18  ;;  %3390 = vmatprep.subr.mxu0 %v9453_v24 }
 0x4e3   : > { %3391 = vmatpush1.msra.mxu0 %v3361_v53 }
 0x4e4   : > { %3144 = vrot.lane.b32.xlu1 %v3115_v54, %s6112_s18  ;;  %3392 = vmatprep.subr.mxu0 %v9453_v24 }
 0x4e5   : > { %3393 = vmatpush1.msra.mxu0 %v3360_v6 }
 0x4e6   : > { %3138 = vrot.lane.b32.xlu0 %v3112_v19, %s6112_s18  ;;  %3394 = vmatprep.subr.mxu0 %v9453_v24 }
 0x4e7   : > { %3395 = vmatpush1.msra.mxu0 %v3359_v41 }
 0x4e8   : > { %3140 = vrot.lane.b32.xlu1 %v3113_v46, %s6112_s18  ;;  %3396 = vmatprep.subr.mxu0 %v9453_v24 }
 0x4e9   : > { %3397 = vmatpush1.msra.mxu0 %v3358_v33 }
 0x4ea   : > { %3134 = vrot.lane.b32.xlu0 %v3110_v49, %s6112_s18  ;;  %3398 = vmatprep.subr.mxu0 %v9453_v24 }
 0x4eb   : > { %3399 = vmatpush1.msra.mxu0 %v3357_v3 }
 0x4ec   : > { %3136 = vrot.lane.b32.xlu1 %v3111_v13, %s6112_s18  ;;  %3400 = vmatprep.subr.mxu0 %v9453_v24 }
 0x4ed   : > { %3401 = vmatpush1.msra.mxu0 %v3356_v23 }
 0x4ee   : > { %3402 = vmatprep.subr.mxu0 %v9453_v24 }
 0x4ef   : > { %3403 = vmatpush1.msra.mxu0 %v3355_v51 }
 0x4f0   : > { %3404 = vmatprep.subr.mxu0 %v9453_v24 }
 0x4f1   : > { %3405 = vmatpush1.msra.mxu0 %v3354_v0 }
 0x4f2   : > { %3406 = vmatprep.subr.mxu0 %v9453_v24 }
 0x4f3   : > { %3407 = vmatpush1.msra.mxu0 %v3353_v59 }
 0x4f4   : > { %3408 = vmatprep.subr.mxu0 %v9453_v24 }
 0x4f5   : > { %3409 = vmatpush1.msra.mxu0 %v3352_v36 }
 0x4f6   : > { %3410 = vmatprep.subr.mxu0 %v9453_v24 }
 0x4f7   : > { %3411 = vmatpush1.msra.mxu0 %v3351_v47 }
 0x4f8   : > { %3412 = vmatprep.subr.mxu0 %v9453_v24 }
 0x4f9   : > { %3413 = vmatpush1.msra.mxu0 %v3350_v35 }
 0x4fa   : > { %3414 = vmatprep.subr.mxu0 %v9453_v24 }
 0x4fb   : > { %3415 = vmatpush1.msra.mxu0 %v3349_v44 }
 0x4fc   : > { %3436 = vmatprep.subr.mxu0 %v9453_v24 }
 0x4fd   : > { %5736 = vmatpush2.msk.msra.mxu0 %vm1926_vm2, %v3370_v56 }
 0x4fe   : > { %3438 = vmatprep.subr.mxu0 %v9453_v24 }
 0x4ff   : > { %3439 = vmatpush2.msra.mxu0 %v3369_v34 }
 0x500   : > { %3440 = vmatprep.subr.mxu0 %v9453_v24 }
 0x501   : > { %3441 = vmatpush2.msra.mxu0 %v3368_v22 }
 0x502   : > { %3442 = vmatprep.subr.mxu0 %v9453_v24 }
 0x503   : > { %3443 = vmatpush2.msra.mxu0 %v3367_v15 }
 0x504   : > { %3444 = vmatprep.subr.mxu0 %v9453_v24 }
 0x548   : > { %v3147_v62 = vpop.permute.xlu0 %3146 }
 0x54a   : > { %v3149_v63 = vpop.permute.xlu1 %3148 }
 0x54b   : > { %v3161_v52 = vsel %vm1841_vm3, %v3147_v62, %v3149_v63  ;;  %v3183_v28 = vmax.f32 %v3117_v60, %v3149_v63 }
 0x54c   : > { %v3151_v30 = vpop.permute.xlu0 %3150  ;;  %v3182_v48 = vmax.f32 %v3116_v40, %v3161_v52 }
 0x54d   : > { %v3212_v37 = vrot.slane %v3183_v28, 1 }
 0x54e   : > { %v3153_v14 = vpop.permute.xlu1 %3152  ;;  %v3210_v25 = vrot.slane %v3182_v48, 1 }
 0x54f   : > { %v3162_v57 = vsel %vm1841_vm3, %v3151_v30, %v3153_v14  ;;  %v3185_v55 = vmax.f32 %v3119_v17, %v3153_v14 }
 0x550   : > { %v3155_v31 = vpop.permute.xlu0 %3154  ;;  %v3184_v21 = vmax.f32 %v3118_v42, %v3162_v57 }
 0x551   : > { %v3216_v9 = vrot.slane %v3185_v55, 1 }
 0x552   : > { %v3157_v38 = vpop.permute.xlu1 %3156  ;;  %v3214_v60 = vrot.slane %v3184_v21, 1 }
 0x553   : > { %v3163_v16 = vsel %vm1841_vm3, %v3155_v31, %v3157_v38  ;;  %v3187_v8 = vmax.f32 %v3121_v27, %v3157_v38  ;;  %v3217_v39 = vsel %vm1926_vm2, %v3212_v37, %v3216_v9  ;;  %v5761_v31 = vld [vmem:[%s9346_s9 + $0x158] sm:$0xff]  ;;  %v5758_v38 = vld [vmem:[%s9346_s9 + $0x140] sm:$0xff] }
 0x554   : > { %v3186_v61 = vmax.f32 %v3120_v5, %v3163_v16  ;;  %v3143_v11 = vpop.permute.xlu0 %3142  ;;  %v3215_v33 = vsel %vm1926_vm2, %v3210_v25, %v3214_v60  ;;  %v5757_v16 = vld [vmem:[%s9346_s9 + $0x138] sm:$0xff] }
 0x555   : > { %v3220_v17 = vrot.slane %v3187_v8, 1  ;;  %v3240_v36 = vmax.f32 %v3182_v48, %v3215_v33  ;;  %v5760_v48 = vld [vmem:[%s9346_s9 + $0x150] sm:$0xff]  ;;  %v5779_v33 = vld [vmem:[%s9346_s9 + $0x1b8] sm:$0xff] }
 0x556   : > { %v3218_v12 = vrot.slane %v3186_v61, 1  ;;  %v3145_v42 = vpop.permute.xlu1 %3144 }
 0x557   : > { %v3245_v40 = vmax.f32 %v3187_v8, %v3220_v17  ;;  %v3160_v50 = vsel %vm1841_vm3, %v3143_v11, %v3145_v42  ;;  %v3181_v26 = vmax.f32 %v3115_v54, %v3145_v42  ;;  %v3221_v27 = vsel %vm1926_vm2, %v3216_v9, %v3220_v17  ;;  %v5759_v9 = vld [vmem:[%s9346_s9 + $0x148] sm:$0xff]  ;;  %v5756_v8 = vld [vmem:[%s9346_s9 + $0x130] sm:$0xff]  ;;  %v5753_v11 = vld [vmem:[%s9346_s9 + $0x118] sm:$0xff] }
 0x558   : > { %v3244_v4 = vmax.f32 %v3186_v61, %v3218_v12  ;;  %v3180_v29 = vmax.f32 %v3114_v10, %v3160_v50  ;;  %v3139_v5 = vpop.permute.xlu0 %3138  ;;  %v3243_v32 = vmax.f32 %v3185_v55, %v3221_v27  ;;  %v3219_v53 = vsel %vm1926_vm2, %v3214_v60, %v3218_v12  ;;  %v3366_v55 = vld [vmem:[%s9345_s8 + $0x88] sm:$0xff]  ;;  %v5754_v61 = vld [vmem:[%s9346_s9 + $0x120] sm:$0xff]  ;;  %v5752_v60 = vld [vmem:[%s9346_s9 + $0x110] sm:$0xff] }
 0x559   : > { %v3208_v6 = vrot.slane %v3181_v26, 1  ;;  %5731 = vmatprep.subr.msk.mxu1 %vm3259_vm7, %v3245_v40  ;;  %v3242_v41 = vmax.f32 %v3184_v21, %v3219_v53  ;;  %v3241_v10 = vmax.f32 %v3183_v28, %v3217_v39  ;;  %3445 = vmatpush2.msra.mxu0 %v3366_v55  ;;  %v3365_v28 = vld [vmem:[%s9345_s8 + $0x80] sm:$0xff]  ;;  %v5789_v21 = vld [vmem:[%s9346_s9 + $0x208] sm:$0xff]  ;;  %v5787_v42 = vld [vmem:[%s9346_s9 + $0x1f8] sm:$0xff] }
 0x55a   : > { %v3206_v3 = vrot.slane %v3180_v29, 1  ;;  %5732 = vmatpush1.msk.msra.mxu1 %vm3259_vm7, %v3244_v4  ;;  %v3141_v20 = vpop.permute.xlu1 %3140  ;;  %3446 = vmatprep.subr.mxu0 %v9453_v24  ;;  %v5788_v12 = vld [vmem:[%s9346_s9 + $0x200] sm:$0xff]  ;;  %v5786_v40 = vld [vmem:[%s9346_s9 + $0x1f0] sm:$0xff]  ;;  %v5785_v50 = vld [vmem:[%s9346_s9 + $0x1e8] sm:$0xff] }
 0x55b   : > { %v3213_v54 = vsel %vm1926_vm2, %v3208_v6, %v3212_v37  ;;  %v3159_v23 = vsel %vm1841_vm3, %v3139_v5, %v3141_v20  ;;  %v3179_v43 = vmax.f32 %v3113_v46, %v3141_v20  ;;  %3288 = vmatprep.subr.mxu1 %v3243_v32  ;;  %3447 = vmatpush2.msra.mxu0 %v3365_v28  ;;  %v5755_v37 = vld [vmem:[%s9346_s9 + $0x128] sm:$0xff]  ;;  %v5784_v27 = vld [vmem:[%s9346_s9 + $0x1e0] sm:$0xff]  ;;  %v5783_v4 = vld [vmem:[%s9346_s9 + $0x1d8] sm:$0xff] }
 0x55c   : > { %v3211_v51 = vsel %vm1926_vm2, %v3206_v3, %v3210_v25  ;;  %v3239_v0 = vmax.f32 %v3181_v26, %v3213_v54  ;;  %v3178_v59 = vmax.f32 %v3112_v19, %v3159_v23  ;;  %3289 = vmatpush1.msra.mxu1 %v3242_v41  ;;  %v3135_v56 = vpop.permute.xlu0 %3134  ;;  %3749 = vmatprep.subr.mxu0 %v5789_v21  ;;  %v5782_v5 = vld [vmem:[%s9346_s9 + $0x1d0] sm:$0xff]  ;;  %v5781_v32 = vld [vmem:[%s9346_s9 + $0x1c8] sm:$0xff]  ;;  %v5749_v54 = vld [vmem:[%s9346_s9 + $0xf8] sm:$0xff] }
 0x55d   : > { %v3238_v47 = vmax.f32 %v3180_v29, %v3211_v51  ;;  %v3204_v35 = vrot.slane %v3179_v43, 1  ;;  %3290 = vmatprep.subr.mxu1 %v3241_v10  ;;  %v5751_v41 = vld [vmem:[%s9346_s9 + $0x108] sm:$0xff]  ;;  %v5778_v20 = vld [vmem:[%s9346_s9 + $0x1b0] sm:$0xff]  ;;  %v5776_v10 = vld [vmem:[%s9346_s9 + $0x1a0] sm:$0xff] }
 0x55e   : > { %v3201_v44 = vrot.slane %v3178_v59, 1  ;;  %3291 = vmatpush1.msra.mxu1 %v3240_v36  ;;  %v3137_v34 = vpop.permute.xlu1 %3136  ;;  %v5777_v23 = vld [vmem:[%s9346_s9 + $0x1a8] sm:$0xff]  ;;  %v5774_v36 = vld [vmem:[%s9346_s9 + $0x190] sm:$0xff]  ;;  %v5838_v55 = vld [vmem:[%s9346_s9 + $0x360] sm:$0xff] }
 0x55f   : > { %v3209_v2 = vsel %vm1926_vm2, %v3204_v35, %v3208_v6  ;;  %v3158_v46 = vsel %vm1841_vm3, %v3135_v56, %v3137_v34  ;;  %v3177_v22 = vmax.f32 %v3111_v13, %v3137_v34  ;;  %3292 = vmatprep.subr.mxu1 %v3239_v0  ;;  %v3246_v13 = vld [vmem:[%s9344_s7] sm:$0xff]  ;;  %v5747_v51 = vld [vmem:[%s9346_s9 + $0xe8] sm:$0xff]  ;;  %v5775_v0 = vld [vmem:[%s9346_s9 + $0x198] sm:$0xff] }
 0x560   : > { %v3207_v45 = vsel %vm1926_vm2, %v3201_v44, %v3206_v3  ;;  %v3237_v19 = vmax.f32 %v3179_v43, %v3209_v2  ;;  %v3176_v15 = vmax.f32 %v3110_v49, %v3158_v46  ;;  %3293 = vmatpush1.msra.mxu1 %v3238_v47  ;;  %v3248_v49 = vld [vmem:[%s9344_s7 + $0x10] sm:$0x3f]  ;;  %v5780_v6 = vld [vmem:[%s9346_s9 + $0x1c0] sm:$0xff]  ;;  %v5745_v47 = vld [vmem:[%s9346_s9 + $0xd8] sm:$0xff] }
 0x561   : > { %v3236_v62 = vmax.f32 %v3178_v59, %v3207_v45  ;;  %v3203_v63 = vrot.slane %v3177_v22, 1  ;;  %v5750_v3 = vld [vmem:[%s9346_s9 + $0x100] sm:$0xff]  ;;  %v5748_v43 = vld [vmem:[%s9346_s9 + $0xf0] sm:$0xff]  ;;  %v5743_v34 = vld [vmem:[%s9346_s9 + $0xc8] sm:$0xff] }
 0x562   : > { %v3200_v30 = vrot.slane %v3176_v15, 1  ;;  %3294 = vmatprep.subr.mxu1 %v3237_v19  ;;  %v5746_v59 = vld [vmem:[%s9346_s9 + $0xe0] sm:$0xff]  ;;  %v5771_v2 = vld [vmem:[%s9346_s9 + $0x178] sm:$0xff]  ;;  %v5769_v19 = vld [vmem:[%s9346_s9 + $0x168] sm:$0xff] }
 0x563   : > { %v3205_v14 = vsel %vm1926_vm2, %v3203_v63, %v3204_v35  ;;  %3295 = vmatpush1.msra.mxu1 %v3236_v62  ;;  %v5773_v35 = vld [vmem:[%s9346_s9 + $0x188] sm:$0xff]  ;;  %v5772_v56 = vld [vmem:[%s9346_s9 + $0x180] sm:$0xff]  ;;  %v5741_v45 = vld [vmem:[%s9346_s9 + $0xb8] sm:$0xff] }
 0x564   : > { %v3202_v52 = vsel %vm1926_vm2, %v3200_v30, %v3201_v44  ;;  %v3235_v57 = vmax.f32 %v3177_v22, %v3205_v14  ;;  %v5744_v44 = vld [vmem:[%s9346_s9 + $0xd0] sm:$0xff]  ;;  %v5742_v46 = vld [vmem:[%s9346_s9 + $0xc0] sm:$0xff]  ;;  %v3493_v63 = vld [vmem:[%s9346_s9 + $0xa8] sm:$0xff] }
 0x565   : > { %v3234_v1 = vmax.f32 %v3176_v15, %v3202_v52  ;;  %v5770_v22 = vld [vmem:[%s9346_s9 + $0x170] sm:$0xff]  ;;  %v5768_v62 = vld [vmem:[%s9346_s9 + $0x160] sm:$0xff]  ;;  %v5839_v30 = vld [vmem:[%s9346_s9 + $0x368] sm:$0xff] }
 0x566   : > { %3296 = vmatprep.subr.mxu1 %v3235_v57  ;;  %v5740_v15 = vld [vmem:[%s9346_s9 + $0xb0] sm:$0xff]  ;;  %v3491_v28 = vld [vmem:[%s9346_s9 + $0x98] sm:$0xff] }
 0x567   : > { %3297 = vmatpush1.msra.mxu1 %v3234_v1 }
 0x568   : > { %5733 = vmatmul.mubr.msk.f32.vlgmr.msra.gmra.mxu1 %vm3249_vm8, %v3246_v13  ;;  %3539 = vmatprep.subr.mxu1 %v5761_v31 }
 0x569   : > { %3336 = vmatprep.mubr.f32.mxu1 %v9453_v24  ;;  %3540 = vmatpush1.msra.mxu1 %v5760_v48  ;;  %v5837_v48 = vld [vmem:[%s9346_s9 + $0x358] sm:$0xff] }
 0x56a   : > { %3541 = vmatprep.subr.mxu1 %v5759_v9  ;;  %v3490_v9 = vld [vmem:[%s9346_s9 + $0x90] sm:$0xff] }
 0x56b   : > { %3542 = vmatpush1.msra.mxu1 %v5758_v38  ;;  %v5836_v38 = vld [vmem:[%s9346_s9 + $0x350] sm:$0xff] }
 0x56c   : > { %5734 = vmatmul.mubr.msk.f32.gmra.mxu1 %vm3249_vm8, %v3247_v7  ;;  %3543 = vmatprep.subr.mxu1 %v5757_v16  ;;  %v3489_v16 = vld [vmem:[%s9346_s9 + $0x88] sm:$0xff] }
 0x56d   : > { %3342 = vmatprep.mubr.f32.mxu1 %v9453_v24  ;;  %3544 = vmatpush1.msra.mxu1 %v5756_v8  ;;  %v5835_v8 = vld [vmem:[%s9346_s9 + $0x348] sm:$0xff] }
 0x56e   : > { %3545 = vmatprep.subr.mxu1 %v5755_v37  ;;  %v3488_v37 = vld [vmem:[%s9346_s9 + $0x80] sm:$0xff] }
 0x56f   : > { %3546 = vmatpush1.msra.mxu1 %v5754_v61  ;;  %v5834_v61 = vld [vmem:[%s9346_s9 + $0x340] sm:$0xff] }
 0x570   : > { %5735 = vmatmul.mubr.msk.f32.gmra.mxu1 %vm3249_vm8, %v3248_v49  ;;  %3547 = vmatprep.subr.mxu1 %v5753_v11  ;;  %v3492_v49 = vld [vmem:[%s9346_s9 + $0xa0] sm:$0xff]  ;;  %v3487_v11 = vld [vmem:[%s9346_s9 + $0x78] sm:$0xff] }
 0x571   : > { %3593 = vmatprep.mubr.f32.mxu1 %v9453_v24  ;;  %3548 = vmatpush1.msra.mxu1 %v5752_v60  ;;  %v5833_v60 = vld [vmem:[%s9346_s9 + $0x338] sm:$0xff] }
 0x572   : > { %3549 = vmatprep.subr.mxu1 %v5751_v41  ;;  %v5826_v41 = vld [vmem:[%s9346_s9 + $0x300] sm:$0xff] }
 0x573   : > { %3550 = vmatpush1.msra.mxu1 %v5750_v3  ;;  %v5825_v3 = vld [vmem:[%s9346_s9 + $0x2f8] sm:$0xff] }
 0x574   : > { %3551 = vmatprep.subr.mxu1 %v5749_v54  ;;  %v5824_v54 = vld [vmem:[%s9346_s9 + $0x2f0] sm:$0xff] }
 0x575   : > { %3552 = vmatpush1.msra.mxu1 %v5748_v43  ;;  %v5823_v43 = vld [vmem:[%s9346_s9 + $0x2e8] sm:$0xff] }
 0x576   : > { %3553 = vmatprep.subr.mxu1 %v5747_v51  ;;  %v5822_v51 = vld [vmem:[%s9346_s9 + $0x2e0] sm:$0xff] }
 0x577   : > { %3554 = vmatpush1.msra.mxu1 %v5746_v59  ;;  %v3475_v59 = vld [vmem:[%s9346_s9 + $0x18] sm:$0xff] }
 0x578   : > { %3555 = vmatprep.subr.mxu1 %v5745_v47  ;;  %v5821_v47 = vld [vmem:[%s9346_s9 + $0x2d8] sm:$0xff] }
 0x579   : > { %3556 = vmatpush1.msra.mxu1 %v5744_v44  ;;  %v5820_v44 = vld [vmem:[%s9346_s9 + $0x2d0] sm:$0xff] }
 0x57a   : > { %3557 = vmatprep.subr.mxu1 %v5743_v34  ;;  %v5819_v34 = vld [vmem:[%s9346_s9 + $0x2c8] sm:$0xff] }
 0x57b   : > { %3558 = vmatpush1.msra.mxu1 %v5742_v46  ;;  %v5818_v46 = vld [vmem:[%s9346_s9 + $0x2c0] sm:$0xff] }
 0x57c   : > { %3559 = vmatprep.subr.mxu1 %v5741_v45  ;;  %v5813_v45 = vld [vmem:[%s9346_s9 + $0x2b0] sm:$0xff] }
 0x57d   : > { %3560 = vmatpush1.msra.mxu1 %v5740_v15  ;;  %v5812_v15 = vld [vmem:[%s9346_s9 + $0x2a8] sm:$0xff] }
 0x57e   : > { %3631 = vmatprep.subr.mxu1 %v3493_v63  ;;  %v5811_v63 = vld [vmem:[%s9346_s9 + $0x2a0] sm:$0xff] }
 0x628   : > { %v3332_v17 = vpop.f32.mrf.mxu1 }
 0x62a   : > { %v3334_v25 = vpop.f32.mrf.mxu1 }
 0x62b   : > { %5737 = vmatprep.mubr.msk.f32.mxu0 %vm3371_vm9, %v3334_v25  ;;  %v5832_v25 = vld [vmem:[%s9346_s9 + $0x330] sm:$0xff] }
 0x62c   : > { %v3338_v39 = vpop.f32.mrf.mxu1  ;;  %3449 = vmatmul.mubr.f32.vlgmr.msra.gmra.mxu0 %v3332_v17  ;;  %v3486_v17 = vld [vmem:[%s9346_s9 + $0x70] sm:$0xff] }
 0x62d   : > { %3750 = vmatpush1.msra.mxu0 %v5788_v12  ;;  %v3485_v12 = vld [vmem:[%s9346_s9 + $0x68] sm:$0xff] }
 0x62e   : > { %v3340_v26 = vpop.f32.mrf.mxu1  ;;  %3751 = vmatprep.subr.mxu0 %v5787_v42  ;;  %v5831_v42 = vld [vmem:[%s9346_s9 + $0x328] sm:$0xff] }
 0x62f   : > { %5738 = vmatprep.mubr.msk.f32.mxu0 %vm3371_vm9, %v3340_v26  ;;  %3752 = vmatpush1.msra.mxu0 %v5786_v40  ;;  %v5830_v40 = vld [vmem:[%s9346_s9 + $0x320] sm:$0xff]  ;;  %v5829_v26 = vld [vmem:[%s9346_s9 + $0x318] sm:$0xff] }
 0x630   : > { %3454 = vmatmul.mubr.f32.gmra.mxu0 %v3338_v39  ;;  %v3344_v29 = vpop.f32.mrf.mxu1  ;;  %3753 = vmatprep.subr.mxu0 %v5785_v50  ;;  %v3484_v39 = vld [vmem:[%s9346_s9 + $0x60] sm:$0xff]  ;;  %v3483_v50 = vld [vmem:[%s9346_s9 + $0x58] sm:$0xff] }
 0x631   : > { %3754 = vmatpush1.msra.mxu0 %v5784_v27  ;;  %v3482_v27 = vld [vmem:[%s9346_s9 + $0x50] sm:$0xff] }
 0x632   : > { %v3346_v53 = vpop.f32.mrf.mxu1  ;;  %3755 = vmatprep.subr.mxu0 %v5783_v4  ;;  %v5828_v4 = vld [vmem:[%s9346_s9 + $0x310] sm:$0xff] }
 0x633   : > { %5739 = vmatprep.mubr.msk.f32.mxu0 %vm3371_vm9, %v3346_v53  ;;  %3756 = vmatpush1.msra.mxu0 %v5782_v5  ;;  %v3481_v5 = vld [vmem:[%s9346_s9 + $0x48] sm:$0xff] }
 0x634   : > { %3459 = vmatmul.mubr.f32.gmra.mxu0 %v3344_v29  ;;  %3757 = vmatprep.subr.mxu0 %v5781_v32  ;;  %v5827_v53 = vld [vmem:[%s9346_s9 + $0x308] sm:$0xff] }
 0x635   : > { %3758 = vmatpush1.msra.mxu0 %v5780_v6  ;;  %3803 = vmatprep.mubr.f32.mxu0 %v9453_v24  ;;  %v3480_v6 = vld [vmem:[%s9346_s9 + $0x40] sm:$0xff] }
 0x636   : > { %3759 = vmatprep.subr.mxu0 %v5779_v33  ;;  %v3479_v33 = vld [vmem:[%s9346_s9 + $0x38] sm:$0xff] }
 0x637   : > { %3760 = vmatpush1.msra.mxu0 %v5778_v20  ;;  %v3478_v20 = vld [vmem:[%s9346_s9 + $0x30] sm:$0xff] }
 0x638   : > { %3761 = vmatprep.subr.mxu0 %v5777_v23  ;;  %v3477_v23 = vld [vmem:[%s9346_s9 + $0x28] sm:$0xff] }
 0x639   : > { %3762 = vmatpush1.msra.mxu0 %v5776_v10  ;;  %v3476_v10 = vld [vmem:[%s9346_s9 + $0x20] sm:$0xff] }
 0x63a   : > { %3763 = vmatprep.subr.mxu0 %v5775_v0 }
 0x63b   : > { %3764 = vmatpush1.msra.mxu0 %v5774_v36 }
 0x63c   : > { %3765 = vmatprep.subr.mxu0 %v5773_v35  ;;  %v3474_v35 = vld [vmem:[%s9346_s9 + $0x10] sm:$0xff] }
 0x63d   : > { %3766 = vmatpush1.msra.mxu0 %v5772_v56  ;;  %v3473_v56 = vld [vmem:[%s9346_s9 + $0x8] sm:$0xff] }
 0x63e   : > { %3767 = vmatprep.subr.mxu0 %v5771_v2  ;;  %v3472_v2 = vld [vmem:[%s9346_s9] sm:$0xff] }
 0x63f   : > { %3768 = vmatpush1.msra.mxu0 %v5770_v22  ;;  %v5814_v22 = vld [vmem:[%s9346_s9 + $0x2b8] sm:$0xff] }
 0x640   : > { %3769 = vmatprep.subr.mxu0 %v5769_v19 }
 0x641   : > { %3770 = vmatpush1.msra.mxu0 %v5768_v62 }
 0x642   : > { %3997 = vmatprep.subr.mxu0 %v5839_v30  ;;  %v5810_v30 = vld [vmem:[%s9346_s9 + $0x298] sm:$0xff] }
 0x6ec   : > { %v3450_v14 = vpop.f32.mrf.mxu0 }
 0x6ed   : > { %3465 = vst.msk [vmem:[#allocation3] sm:$0xff] %vm3464_vm10, %v3450_v14  ;;  %v5809_v14 = vld [vmem:[%s9346_s9 + $0x290] sm:$0xff] }
 0x6ee   : > { %v3452_v52 = vpop.f32.mrf.mxu0 }
 0x6f0   : > { %v3455_v57 = vpop.f32.mrf.mxu0 }
 0x6f1   : > { %3466 = vst.msk [vmem:[#allocation3 + $0x8] sm:$0xff] %vm3464_vm10, %v3455_v57  ;;  %v5808_v57 = vld [vmem:[%s9346_s9 + $0x288] sm:$0xff] }
 0x6f2   : > { %v3457_v1 = vpop.f32.mrf.mxu0 }
 0x6f4   : > { %v3460_v13 = vpop.f32.mrf.mxu0  ;;  %v3469_v19 = vld [vmem:[#allocation3] sm:$0xff] }
 0x6f5   : > { %3468 = vst.msk [vmem:[#allocation3 + $0x10] sm:$0x3f] %vm3467_vm11, %v3460_v13  ;;  %v5807_v13 = vld [vmem:[%s9346_s9 + $0x280] sm:$0xff] }
 0x6f6   : > { %v3462_v7 = vpop.f32.mrf.mxu0 }
 0x6f7   : > { %v5806_v7 = vld [vmem:[%s9346_s9 + $0x278] sm:$0xff] }
 0x6f8   : > { %v3494_v31 = vld [vmem:[#allocation3 + $0x1] sm:$0xff] }
 0x6f9   : > { %v3704_v21 = vld [vmem:[#allocation3 + $0x2] sm:$0xff]  ;;  %5762 = vmatmul.mubr.msk.f32.vlgmr.msra.gmra.mxu1 %vm3464_vm10, %v3494_v31 }
 0x6fa   : > { %5790 = vmatmul.mubr.msk.f32.vlgmr.msra.gmra.mxu0 %vm3464_vm10, %v3704_v21  ;;  %3632 = vmatpush1.msra.mxu1 %v3492_v49  ;;  %v3952_v62 = vld [vmem:[#allocation3 + $0x4] sm:$0xff]  ;;  %v5803_v21 = vld [vmem:[%s9346_s9 + $0x260] sm:$0xff] }
 0x6fb   : > { %3998 = vmatpush1.msra.mxu0 %v5838_v55  ;;  %3633 = vmatprep.subr.mxu1 %v3491_v28  ;;  %v3470_v52 = vld [vmem:[#allocation3 + $0x8] sm:$0xff]  ;;  %v5805_v49 = vld [vmem:[%s9346_s9 + $0x270] sm:$0xff]  ;;  %v5804_v28 = vld [vmem:[%s9346_s9 + $0x268] sm:$0xff] }
 0x6fc   : > { %3999 = vmatprep.subr.mxu0 %v5837_v48  ;;  %3634 = vmatpush1.msra.mxu1 %v3490_v9  ;;  %v3495_v29 = vld [vmem:[#allocation3 + $0x9] sm:$0xff]  ;;  %v3496_v0 = vld [vmem:[#allocation3 + $0x11] sm:$0x3]  ;;  %v3954_v31 = vld [vmem:[#allocation3 + $0x14] sm:$0x3] }
 0x6fd   : > { %4000 = vmatpush1.msra.mxu0 %v5836_v38  ;;  %3635 = vmatprep.subr.mxu1 %v3489_v16  ;;  %v3705_v32 = vld [vmem:[#allocation3 + $0xa] sm:$0xff]  ;;  %v3706_v36 = vld [vmem:[#allocation3 + $0x12] sm:$0x3]  ;;  %v5801_v9 = vld [vmem:[%s9346_s9 + $0x250] sm:$0xff] }
 0x6fe   : > { %4001 = vmatprep.subr.mxu0 %v5835_v8  ;;  %3636 = vmatpush1.msra.mxu1 %v3488_v37  ;;  %v3953_v1 = vld [vmem:[#allocation3 + $0xc] sm:$0xff]  ;;  %v5800_v38 = vld [vmem:[%s9346_s9 + $0x248] sm:$0xff]  ;;  %v5797_v37 = vld [vmem:[%s9346_s9 + $0x230] sm:$0xff] }
 0x6ff   : > { %4002 = vmatpush1.msra.mxu0 %v5834_v61  ;;  %3637 = vmatprep.subr.mxu1 %v3487_v11  ;;  %v3471_v55 = vld [vmem:[#allocation3 + $0x10] sm:$0x3]  ;;  %v5802_v48 = vld [vmem:[%s9346_s9 + $0x258] sm:$0xff]  ;;  %v5796_v61 = vld [vmem:[%s9346_s9 + $0x228] sm:$0xff] }
 0x700   : > { %4003 = vmatprep.subr.mxu0 %v5833_v60  ;;  %3638 = vmatpush1.msra.mxu1 %v3486_v17  ;;  %v5799_v16 = vld [vmem:[%s9346_s9 + $0x240] sm:$0xff]  ;;  %v5798_v8 = vld [vmem:[%s9346_s9 + $0x238] sm:$0xff]  ;;  %v5793_v17 = vld [vmem:[%s9346_s9 + $0x210] sm:$0xff] }
 0x701   : > { %4004 = vmatpush1.msra.mxu0 %v5832_v25  ;;  %3639 = vmatprep.subr.mxu1 %v3485_v12  ;;  %v5795_v11 = vld [vmem:[%s9346_s9 + $0x220] sm:$0xff]  ;;  %v5794_v60 = vld [vmem:[%s9346_s9 + $0x218] sm:$0xff] }
 0x702   : > { %4005 = vmatprep.subr.mxu0 %v5831_v42  ;;  %3640 = vmatpush1.msra.mxu1 %v3484_v39  ;;  %v3828_v25 = vld [vmem:[#allocation3 + $0x3] sm:$0xff]  ;;  %v3829_v12 = vld [vmem:[#allocation3 + $0xb] sm:$0xff]  ;;  %v3830_v42 = vld [vmem:[#allocation3 + $0x13] sm:$0x3] }
 0x703   : > { %4006 = vmatpush1.msra.mxu0 %v5830_v40  ;;  %3641 = vmatprep.subr.mxu1 %v3483_v50 }
 0x704   : > { %4007 = vmatprep.subr.mxu0 %v5829_v26  ;;  %3599 = vmatprep.mubr.f32.mxu1 %v9453_v24 }
 0x705   : > { %3642 = vmatpush1.msra.mxu1 %v3482_v27  ;;  %3809 = vmatprep.mubr.f32.mxu0 %v9453_v24 }
 0x706   : > { %4008 = vmatpush1.msra.mxu0 %v5828_v4  ;;  %5763 = vmatmul.mubr.msk.f32.gmra.mxu1 %vm3464_vm10, %v3495_v29 }
 0x707   : > { %3643 = vmatprep.subr.mxu1 %v3481_v5  ;;  %5791 = vmatmul.mubr.msk.f32.gmra.mxu0 %vm3464_vm10, %v3705_v32 }
 0x708   : > { %4009 = vmatprep.subr.mxu0 %v5827_v53  ;;  %3644 = vmatpush1.msra.mxu1 %v3480_v6 }
 0x709   : > { %4010 = vmatpush1.msra.mxu0 %v5826_v41  ;;  %3645 = vmatprep.subr.mxu1 %v3479_v33 }
 0x70a   : > { %4011 = vmatprep.subr.mxu0 %v5825_v3  ;;  %3646 = vmatpush1.msra.mxu1 %v3478_v20 }
 0x70b   : > { %4012 = vmatpush1.msra.mxu0 %v5824_v54  ;;  %3647 = vmatprep.subr.mxu1 %v3477_v23 }
 0x70c   : > { %4013 = vmatprep.subr.mxu0 %v5823_v43  ;;  %3605 = vmatprep.mubr.f32.mxu1 %v9453_v24 }
 0x70d   : > { %3648 = vmatpush1.msra.mxu1 %v3476_v10  ;;  %3815 = vmatprep.mubr.f32.mxu0 %v9453_v24 }
 0x70e   : > { %4014 = vmatpush1.msra.mxu0 %v5822_v51  ;;  %5764 = vmatmul.mubr.msk.f32.gmra.mxu1 %vm3464_vm10, %v3496_v0 }
 0x70f   : > { %3649 = vmatprep.subr.mxu1 %v3475_v59  ;;  %5792 = vmatmul.mubr.msk.f32.gmra.mxu0 %vm3464_vm10, %v3706_v36 }
 0x710   : > { %4015 = vmatprep.subr.mxu0 %v5821_v47  ;;  %3650 = vmatpush1.msra.mxu1 %v3474_v35 }
 0x711   : > { %4016 = vmatpush1.msra.mxu0 %v5820_v44  ;;  %3651 = vmatprep.subr.mxu1 %v3473_v56 }
 0x712   : > { %4017 = vmatprep.subr.mxu0 %v5819_v34  ;;  %3652 = vmatpush1.msra.mxu1 %v3472_v2 }
 0x713   : > { %3685 = vmatprep.mubr.f32.mxu1 %v9453_v24  ;;  %4018 = vmatpush1.msra.mxu0 %v5818_v46  ;;  %v4076_v46 = vld [vmem:[%s9347_s10] sm:$0x3] }
 0x714   : > { %4051 = vmatprep.mubr.f32.mxu0 %v9453_v24  ;;  %5765 = vmatmul.mubr.msk.f32.vlgmr.msra.gmra.mxu1 %vm3464_vm10, %v3469_v19 }
 0x715   : > { %3873 = vmatprep.subr.mxu1 %v5814_v22  ;;  %5840 = vmatmul.mubr.msk.f32.vlgmr.msra.gmra.mxu0 %vm3464_vm10, %v3952_v62 }
 0x716   : > { %3874 = vmatpush1.msra.mxu1 %v5813_v45  ;;  %3691 = vmatprep.mubr.f32.mxu1 %v9453_v24 }
 0x717   : > { %3875 = vmatprep.subr.mxu1 %v5812_v15  ;;  %4057 = vmatprep.mubr.f32.mxu0 %v9453_v24 }
 0x718   : > { %3876 = vmatpush1.msra.mxu1 %v5811_v63 }
 0x719   : > { %5766 = vmatmul.mubr.msk.f32.gmra.mxu1 %vm3464_vm10, %v3470_v52  ;;  %3877 = vmatprep.subr.mxu1 %v5810_v30  ;;  %v4081_v52 = vrot.slane %v4076_v46, %v6996_v58 }
 0x71a   : > { %5841 = vmatmul.mubr.msk.f32.gmra.mxu0 %vm3464_vm10, %v3953_v1  ;;  %3878 = vmatpush1.msra.mxu1 %v5809_v14 }
 0x71b   : > { %3879 = vmatprep.subr.mxu1 %v5808_v57  ;;  %3697 = vmatprep.mubr.f32.mxu1 %v9453_v24 }
 0x71c   : > { %3880 = vmatpush1.msra.mxu1 %v5807_v13  ;;  %4063 = vmatprep.mubr.f32.mxu0 %v9453_v24 }
 0x71d   : > { %5767 = vmatmul.mubr.msk.f32.gmra.mxu1 %vm3464_vm10, %v3471_v55  ;;  %3881 = vmatprep.subr.mxu1 %v5806_v7 }
 0x71e   : > { %5842 = vmatmul.mubr.msk.f32.gmra.mxu0 %vm3464_vm10, %v3954_v31  ;;  %3882 = vmatpush1.msra.mxu1 %v5805_v49  ;;  %v4085_v31 = vrot.slane %v4076_v46, %v7005_v18 }
 0x71f   : > { %3883 = vmatprep.subr.mxu1 %v5804_v28  ;;  %3927 = vmatprep.mubr.f32.mxu1 %v9453_v24 }
 0x720   : > { %3884 = vmatpush1.msra.mxu1 %v5803_v21  ;;  %4467 = vmatprep.mubr.f32.mxu0 %v9453_v24 }
 0x721   : > { %3885 = vmatprep.subr.mxu1 %v5802_v48 }
 0x722   : > { %3886 = vmatpush1.msra.mxu1 %v5801_v9 }
 0x723   : > { %3887 = vmatprep.subr.mxu1 %v5800_v38 }
 0x724   : > { %3888 = vmatpush1.msra.mxu1 %v5799_v16 }
 0x725   : > { %3889 = vmatprep.subr.mxu1 %v5798_v8 }
 0x726   : > { %3890 = vmatpush1.msra.mxu1 %v5797_v37 }
 0x727   : > { %3891 = vmatprep.subr.mxu1 %v5796_v61 }
 0x728   : > { %3892 = vmatpush1.msra.mxu1 %v5795_v11 }
 0x729   : > { %3893 = vmatprep.subr.mxu1 %v5794_v60 }
 0x72a   : > { %3894 = vmatpush1.msra.mxu1 %v5793_v17 }
 0x72b   : > { %5815 = vmatmul.mubr.msk.f32.vlgmr.msra.gmra.mxu1 %vm3464_vm10, %v3828_v25 }
 0x72c   : > { %3933 = vmatprep.mubr.f32.mxu1 %v9453_v24 }
 0x72f   : > { %5816 = vmatmul.mubr.msk.f32.gmra.mxu1 %vm3464_vm10, %v3829_v12 }
 0x730   : > { %3939 = vmatprep.mubr.f32.mxu1 %v9453_v24 }
 0x733   : > { %5817 = vmatmul.mubr.msk.f32.gmra.mxu1 %vm3464_vm10, %v3830_v42 }
 0x734   : > { %4241 = vmatprep.mubr.f32.mxu1 %v9453_v24 }
 0x7b9   : > { %v3595_v39 = vpop.f32.mrf.mxu1 }
 0x7ba   : > { %v3805_v27 = vpop.f32.mrf.mxu0 }
 0x7bb   : > { %v3597_v40 = vpop.f32.mrf.mxu1 }
 0x7bc   : > { %v3807_v29 = vpop.f32.mrf.mxu0 }
 0x7c6   : > { %v3601_v50 = vpop.f32.mrf.mxu1 }
 0x7c7   : > { %v3811_v32 = vpop.f32.mrf.mxu0 }
 0x7c8   : > { %v3603_v26 = vpop.f32.mrf.mxu1 }
 0x7c9   : > { %v3813_v6 = vpop.f32.mrf.mxu0 }
 0x7ce   : > { %v3607_v4 = vpop.f32.mrf.mxu1 }
 0x7cf   : > { %v3817_v33 = vpop.f32.mrf.mxu0 }
 0x7d0   : > { %v3609_v5 = vpop.f32.mrf.mxu1 }
 0x7d1   : > { %v3819_v20 = vpop.f32.mrf.mxu0 }
 0x7d4   : > { %v3687_v53 = vpop.f32.mrf.mxu1 }
 0x7d5   : > { %v4053_v23 = vpop.f32.mrf.mxu0  ;;  %v3688_v59 = vadd.f32 %v3687_v53, %v3595_v39 }
 0x7d6   : > { %v3689_v41 = vpop.f32.mrf.mxu1 }
 0x7d7   : > { %v4055_v10 = vpop.f32.mrf.mxu0  ;;  %v3690_v56 = vadd.f32 %v3689_v41, %v3597_v40  ;;  %v3822_v19 = vadd.f32 %v3805_v27, %v3688_v59 }
 0x7d9   : > { %v3693_v3 = vpop.f32.mrf.mxu1  ;;  %v3823_v57 = vadd.f32 %v3807_v29, %v3690_v56 }
 0x7da   : > { %v3694_v0 = vadd.f32 %v3693_v3, %v3601_v50  ;;  %v4059_v36 = vpop.f32.mrf.mxu0 }
 0x7db   : > { %v3695_v54 = vpop.f32.mrf.mxu1 }
 0x7dc   : > { %v3696_v35 = vadd.f32 %v3695_v54, %v3603_v26  ;;  %v3824_v2 = vadd.f32 %v3811_v32, %v3694_v0  ;;  %v4061_v22 = vpop.f32.mrf.mxu0 }
 0x7dd   : > { %v3699_v43 = vpop.f32.mrf.mxu1 }
 0x7de   : > { %v3700_v34 = vadd.f32 %v3699_v43, %v3607_v4  ;;  %v3825_v63 = vadd.f32 %v3813_v6, %v3696_v35  ;;  %v4065_v49 = vpop.f32.mrf.mxu0 }
 0x7df   : > { %v3701_v51 = vpop.f32.mrf.mxu1 }
 0x7e0   : > { %v3702_v45 = vadd.f32 %v3701_v51, %v3609_v5  ;;  %v3826_v7 = vadd.f32 %v3817_v33, %v3700_v34  ;;  %v4067_v17 = vpop.f32.mrf.mxu0 }
 0x7e2   : > { %v3827_v28 = vadd.f32 %v3819_v20, %v3702_v45 }
 0x7eb   : > { %v3929_v47 = vpop.f32.mrf.mxu1 }
 0x7ec   : > { %v3946_v30 = vadd.f32 %v3929_v47, %v3822_v19 }
 0x7ed   : > { %v3931_v44 = vpop.f32.mrf.mxu1 }
 0x7ee   : > { %v3947_v21 = vadd.f32 %v3931_v44, %v3823_v57  ;;  %v4070_v16 = vadd.f32 %v4053_v23, %v3946_v30  ;;  %v4161_v57 = vld [vmem:[%s9348_s11] sm:$0xff] }
 0x7ef   : > { %v3935_v15 = vpop.f32.mrf.mxu1 }
 0x7f0   : > { %v3948_v62 = vadd.f32 %v3935_v15, %v3824_v2  ;;  %v4071_v25 = vadd.f32 %v4055_v10, %v3947_v21  ;;  %v4088_v26 = vadd.f32 %v4081_v52, %v4070_v16  ;;  %v4263_v21 = vld [vmem:[%s9349_s12 + $0x48] sm:$0xff] }
 0x7f1   : > { %v3937_v14 = vpop.f32.mrf.mxu1  ;;  %v4259_v16 = vld [vmem:[%s9349_s12 + $0x28] sm:$0xff] }
 0x7f2   : > { %v4072_v1 = vadd.f32 %v4059_v36, %v3948_v62  ;;  %v3949_v13 = vadd.f32 %v3937_v14, %v3825_v63  ;;  %v4089_v4 = vadd.f32 %v4085_v31, %v4071_v25  ;;  %v4094_v29 = vmax.f32 %v4088_v26, 0.0  ;;  %v4270_v25 = vld [vmem:[%s9349_s12 + $0x80] sm:$0xff]  ;;  %v5863_v26 = vld [vmem:[%s9350_s13 + $0xf8] sm:$0xff] }
 0x7f3   : > { %v3941_v55 = vpop.f32.mrf.mxu1 }
 0x7f4   : > { %v4073_v48 = vadd.f32 %v4061_v22, %v3949_v13  ;;  %v3950_v9 = vadd.f32 %v3941_v55, %v3826_v7  ;;  %v4090_v38 = vadd.f32 %v4081_v52, %v4072_v1  ;;  %v4095_v5 = vmax.f32 %v4089_v4, 0.0  ;;  %v4269_v1 = vld [vmem:[%s9349_s12 + $0x78] sm:$0xff]  ;;  %v4268_v13 = vld [vmem:[%s9349_s12 + $0x70] sm:$0xff]  ;;  %v4162_v7 = vld [vmem:[%s9348_s11 + $0x8] sm:$0x1] }
 0x7f5   : > { %v3943_v8 = vpop.f32.mrf.mxu1  ;;  %v4266_v55 = vld [vmem:[%s9349_s12 + $0x60] sm:$0xff]  ;;  %v5861_v4 = vld [vmem:[%s9350_s13 + $0xe8] sm:$0xff] }
 0x7f6   : > { %v4074_v37 = vadd.f32 %v4065_v49, %v3950_v9  ;;  %v3951_v61 = vadd.f32 %v3943_v8, %v3827_v28  ;;  %v4096_v11 = vmax.f32 %v4090_v38, 0.0  ;;  %v4091_v60 = vadd.f32 %v4085_v31, %v4073_v48  ;;  %v4267_v49 = vld [vmem:[%s9349_s12 + $0x68] sm:$0xff]  ;;  %v4265_v28 = vld [vmem:[%s9349_s12 + $0x58] sm:$0xff]  ;;  %v4262_v48 = vld [vmem:[%s9349_s12 + $0x40] sm:$0xff] }
 0x7f7   : > { %v4261_v9 = vld [vmem:[%s9349_s12 + $0x38] sm:$0xff]  ;;  %v4260_v38 = vld [vmem:[%s9349_s12 + $0x30] sm:$0xff]  ;;  %v4258_v8 = vld [vmem:[%s9349_s12 + $0x20] sm:$0xff] }
 0x7f8   : > { %v4075_v12 = vadd.f32 %v4067_v17, %v3951_v61  ;;  %4110 = vrot.lane.b32.xlu0 %v4096_v11, %s6112_s18  ;;  %v4097_v42 = vmax.f32 %v4091_v60, 0.0  ;;  %v4092_v39 = vadd.f32 %v4081_v52, %v4074_v37  ;;  %v4257_v37 = vld [vmem:[%s9349_s12 + $0x18] sm:$0xff]  ;;  %v4256_v61 = vld [vmem:[%s9349_s12 + $0x10] sm:$0xff]  ;;  %v4254_v60 = vld [vmem:[%s9349_s12] sm:$0xff] }
 0x7f9   : > { %v4271_v17 = vld [vmem:[%s9349_s12 + $0x88] sm:$0x7f] }
 0x7fa   : > { %4112 = vrot.lane.b32.xlu1 %v4097_v42, %s6112_s18  ;;  %v4098_v40 = vmax.f32 %v4092_v39, 0.0  ;;  %v4093_v50 = vadd.f32 %v4085_v31, %v4075_v12  ;;  %v4264_v31 = vld [vmem:[%s9349_s12 + $0x50] sm:$0xff]  ;;  %v5867_v12 = vld [vmem:[%s9350_s13 + $0x118] sm:$0xff] }
 0x7fb   : > { %v5866_v39 = vld [vmem:[%s9350_s13 + $0x110] sm:$0xff]  ;;  %4417 = vmatprep.subr.mxu0 %v5867_v12 }
 0x7fc   : > { %4114 = vrot.lane.b32.xlu0 %v4098_v40, %s6112_s18  ;;  %v4099_v27 = vmax.f32 %v4093_v50, 0.0  ;;  %4418 = vmatpush1.msra.mxu0 %v5866_v39  ;;  %v5864_v50 = vld [vmem:[%s9350_s13 + $0x100] sm:$0xff]  ;;  %v5918_v12 = vld [vmem:[%s9350_s13 + $0x290] sm:$0xff]  ;;  %v5917_v39 = vld [vmem:[%s9350_s13 + $0x288] sm:$0xff] }
 0x7fe   : > { %4116 = vrot.lane.b32.xlu1 %v4099_v27, %s6112_s18 }
 0x800   : > { %4106 = vrot.lane.b32.xlu0 %v4094_v29, %s6112_s18 }
 0x802   : > { %4108 = vrot.lane.b32.xlu1 %v4095_v5, %s6112_s18  ;;  %s9454_s18 = sld [smem:[#allocation46_spill]] }
 0x86a   : > { %v4111_v32 = vpop.permute.xlu0 %4110 }
 0x86c   : > { %v4113_v53 = vpop.permute.xlu1 %4112 }
 0x86d   : > { %v4119_v6 = vsel %vm1841_vm3, %v4111_v32, %v4113_v53  ;;  %v4130_v33 = vmax.f32 %v4097_v42, %v4113_v53  ;;  %v5887_v42 = vld [vmem:[%s9350_s13 + $0x1a8] sm:$0xff]  ;;  %v5858_v32 = vld [vmem:[%s9350_s13 + $0xd0] sm:$0xff] }
 0x86e   : > { %v4115_v41 = vpop.permute.xlu0 %4114  ;;  %v4129_v3 = vmax.f32 %v4096_v11, %v4119_v6  ;;  %v4255_v11 = vld [vmem:[%s9349_s12 + $0x8] sm:$0xff] }
 0x86f   : > { %v4143_v10 = vrot.slane %v4130_v33, 1 }
 0x870   : > { %v4117_v20 = vpop.permute.xlu1 %4116  ;;  %v4140_v0 = vrot.slane %v4129_v3, 1 }
 0x871   : > { %v4120_v54 = vsel %vm1841_vm3, %v4115_v41, %v4117_v20  ;;  %v4132_v23 = vmax.f32 %v4099_v27, %v4117_v20  ;;  %v5862_v27 = vld [vmem:[%s9350_s13 + $0xf0] sm:$0xff]  ;;  %v5886_v41 = vld [vmem:[%s9350_s13 + $0x1a0] sm:$0xff] }
 0x872   : > { %v4131_v43 = vmax.f32 %v4098_v40, %v4120_v54  ;;  %v4107_v36 = vpop.permute.xlu0 %4106  ;;  %v5865_v40 = vld [vmem:[%s9350_s13 + $0x108] sm:$0xff]  ;;  %v5884_v20 = vld [vmem:[%s9350_s13 + $0x190] sm:$0xff] }
 0x873   : > { %v4147_v51 = vrot.slane %v4132_v23, 1  ;;  %4419 = vmatprep.subr.mxu0 %v5865_v40  ;;  %v5883_v54 = vld [vmem:[%s9350_s13 + $0x188] sm:$0xff]  ;;  %v4370_v40 = vld [vmem:[%s9350_s13 + $0x40] sm:$0xff] }
 0x874   : > { %v4145_v59 = vrot.slane %v4131_v43, 1  ;;  %v4109_v47 = vpop.permute.xlu1 %4108  ;;  %4420 = vmatpush1.msra.mxu0 %v5864_v50  ;;  %v5916_v50 = vld [vmem:[%s9350_s13 + $0x280] sm:$0xff] }
 0x875   : > { %v4160_v35 = vmax.f32 %v4132_v23, %v4147_v51  ;;  %v4118_v44 = vsel %vm1841_vm3, %v4107_v36, %v4109_v47  ;;  %v4128_v56 = vmax.f32 %v4095_v5, %v4109_v47  ;;  %v4148_v34 = vsel %vm1926_vm2, %v4143_v10, %v4147_v51  ;;  %4421 = vmatprep.subr.mxu0 %v5863_v26  ;;  %v5859_v5 = vld [vmem:[%s9350_s13 + $0xd8] sm:$0xff]  ;;  %v5880_v51 = vld [vmem:[%s9350_s13 + $0x170] sm:$0xff]  ;;  %v5857_v36 = vld [vmem:[%s9350_s13 + $0xc8] sm:$0xff] }
 0x876   : > { %v4159_v2 = vmax.f32 %v4131_v43, %v4145_v59  ;;  %v4127_v46 = vmax.f32 %v4094_v29, %v4118_v44  ;;  %v4158_v22 = vmax.f32 %v4130_v33, %v4148_v34  ;;  %v4146_v45 = vsel %vm1926_vm2, %v4140_v0, %v4145_v59  ;;  %v5860_v29 = vld [vmem:[%s9350_s13 + $0xe0] sm:$0xff]  ;;  %4422 = vmatpush1.msra.mxu0 %v5862_v27  ;;  %v5885_v33 = vld [vmem:[%s9350_s13 + $0x198] sm:$0xff]  ;;  %v5876_v44 = vld [vmem:[%s9350_s13 + $0x150] sm:$0xff] }
 0x877   : > { %v4142_v19 = vrot.slane %v4128_v56, 1  ;;  %5843 = vmatprep.subr.msk.mxu1 %vm4170_vm12, %v4160_v35  ;;  %v4157_v15 = vmax.f32 %v4129_v3, %v4146_v45  ;;  %4423 = vmatprep.subr.mxu0 %v5861_v4  ;;  %v5882_v43 = vld [vmem:[%s9350_s13 + $0x180] sm:$0xff]  ;;  %v5877_v47 = vld [vmem:[%s9350_s13 + $0x158] sm:$0xff]  ;;  %v5875_v34 = vld [vmem:[%s9350_s13 + $0x148] sm:$0xff] }
 0x878   : > { %v4139_v62 = vrot.slane %v4127_v46, 1  ;;  %5844 = vmatpush1.msk.msra.mxu1 %vm4170_vm12, %v4159_v2  ;;  %4424 = vmatpush1.msra.mxu0 %v5860_v29  ;;  %v5878_v59 = vld [vmem:[%s9350_s13 + $0x160] sm:$0xff]  ;;  %v5854_v2 = vld [vmem:[%s9350_s13 + $0xb0] sm:$0xff]  ;;  %v5873_v45 = vld [vmem:[%s9350_s13 + $0x138] sm:$0xff] }
 0x879   : > { %v4144_v63 = vsel %vm1926_vm2, %v4142_v19, %v4143_v10  ;;  %4205 = vmatprep.subr.mxu1 %v4158_v22  ;;  %4425 = vmatprep.subr.mxu0 %v5859_v5  ;;  %v5881_v10 = vld [vmem:[%s9350_s13 + $0x178] sm:$0xff]  ;;  %v5856_v35 = vld [vmem:[%s9350_s13 + $0xc0] sm:$0xff]  ;;  %v5853_v22 = vld [vmem:[%s9350_s13 + $0xa8] sm:$0xff] }
 0x87a   : > { %v4141_v30 = vsel %vm1926_vm2, %v4139_v62, %v4140_v0  ;;  %v4156_v14 = vmax.f32 %v4128_v56, %v4144_v63  ;;  %4206 = vmatpush1.msra.mxu1 %v4157_v15  ;;  %4426 = vmatpush1.msra.mxu0 %v5858_v32  ;;  %v5879_v0 = vld [vmem:[%s9350_s13 + $0x168] sm:$0xff]  ;;  %v5855_v56 = vld [vmem:[%s9350_s13 + $0xb8] sm:$0xff]  ;;  %v5852_v19 = vld [vmem:[%s9350_s13 + $0xa0] sm:$0xff] }
 0x87b   : > { %v4155_v52 = vmax.f32 %v4127_v46, %v4141_v30  ;;  %4427 = vmatprep.subr.mxu0 %v5857_v36  ;;  %v5874_v46 = vld [vmem:[%s9350_s13 + $0x140] sm:$0xff]  ;;  %v5872_v15 = vld [vmem:[%s9350_s13 + $0x130] sm:$0xff]  ;;  %v5851_v62 = vld [vmem:[%s9350_s13 + $0x98] sm:$0xff] }
 0x87c   : > { %4207 = vmatprep.subr.mxu1 %v4156_v14  ;;  %4428 = vmatpush1.msra.mxu0 %v5856_v35  ;;  %v5871_v63 = vld [vmem:[%s9350_s13 + $0x128] sm:$0xff]  ;;  %v5850_v30 = vld [vmem:[%s9350_s13 + $0x90] sm:$0xff]  ;;  %v5870_v14 = vld [vmem:[%s9350_s13 + $0x120] sm:$0xff] }
 0x87d   : > { %4208 = vmatpush1.msra.mxu1 %v4155_v52  ;;  %4429 = vmatprep.subr.mxu0 %v5855_v56  ;;  %v4379_v52 = vld [vmem:[%s9350_s13 + $0x88] sm:$0xff]  ;;  %v4369_v26 = vld [vmem:[%s9350_s13 + $0x38] sm:$0xff]  ;;  %v4368_v4 = vld [vmem:[%s9350_s13 + $0x30] sm:$0xff] }
 0x87e   : > { %5845 = vmatmul.mubr.msk.f32.vlgmr.msra.gmra.mxu1 %vm4163_vm13, %v4161_v57  ;;  %4282 = vmatprep.subr.mxu1 %v9453_v24  ;;  %v5925_v57 = vld [vmem:[%s9350_s13 + $0x2c8] sm:$0xff]  ;;  %v5915_v27 = vld [vmem:[%s9350_s13 + $0x278] sm:$0xff]  ;;  %v5914_v29 = vld [vmem:[%s9350_s13 + $0x270] sm:$0xff] }
 0x87f   : > { %4247 = vmatprep.mubr.f32.mxu1 %v9453_v24  ;;  %4283 = vmatpush1.msra.mxu1 %v4269_v1  ;;  %v4367_v5 = vld [vmem:[%s9350_s13 + $0x28] sm:$0xff]  ;;  %v5905_v36 = vld [vmem:[%s9350_s13 + $0x230] sm:$0xff]  ;;  %v5961_v56 = vld [vmem:[%s9350_s13 + $0x3d8] sm:$0xff] }
 0x880   : > { %4284 = vmatprep.subr.mxu1 %v9453_v24  ;;  %4430 = vmatpush1.msra.mxu0 %v5854_v2  ;;  %v5913_v32 = vld [vmem:[%s9350_s13 + $0x268] sm:$0xff]  ;;  %v5960_v2 = vld [vmem:[%s9350_s13 + $0x3d0] sm:$0xff] }
 0x881   : > { %4285 = vmatpush1.msra.mxu1 %v4268_v13  ;;  %4431 = vmatprep.subr.mxu0 %v5853_v22  ;;  %v5959_v22 = vld [vmem:[%s9350_s13 + $0x3c8] sm:$0xff] }
 0x882   : > { %5846 = vmatmul.mubr.msk.f32.gmra.mxu1 %vm4163_vm13, %v4162_v7  ;;  %4286 = vmatprep.subr.mxu1 %v9453_v24 }
 0x883   : > { %4287 = vmatpush1.msra.mxu1 %v4267_v49  ;;  %4432 = vmatpush1.msra.mxu0 %v5852_v19  ;;  %v5958_v19 = vld [vmem:[%s9350_s13 + $0x3c0] sm:$0xff] }
 0x884   : > { %4288 = vmatprep.subr.mxu1 %v9453_v24  ;;  %4433 = vmatprep.subr.mxu0 %v5851_v62  ;;  %v5957_v62 = vld [vmem:[%s9350_s13 + $0x3b8] sm:$0xff] }
 0x885   : > { %4289 = vmatpush1.msra.mxu1 %v4266_v55  ;;  %4434 = vmatpush1.msra.mxu0 %v5850_v30  ;;  %v4378_v55 = vld [vmem:[%s9350_s13 + $0x80] sm:$0xff]  ;;  %v5956_v30 = vld [vmem:[%s9350_s13 + $0x3b0] sm:$0xff] }
 0x886   : > { %4290 = vmatprep.subr.mxu1 %v9453_v24  ;;  %4491 = vmatprep.subr.mxu0 %v4379_v52  ;;  %v5955_v52 = vld [vmem:[%s9350_s13 + $0x3a8] sm:$0xff] }
 0x887   : > { %4291 = vmatpush1.msra.mxu1 %v4265_v28  ;;  %v5924_v28 = vld [vmem:[%s9350_s13 + $0x2c0] sm:$0xff] }
 0x888   : > { %4292 = vmatprep.subr.mxu1 %v9453_v24 }
 0x889   : > { %4293 = vmatpush1.msra.mxu1 %v4264_v31  ;;  %v4377_v31 = vld [vmem:[%s9350_s13 + $0x78] sm:$0xff] }
 0x88a   : > { %4294 = vmatprep.subr.mxu1 %v9453_v24 }
 0x88b   : > { %4295 = vmatpush1.msra.mxu1 %v4263_v21 }
 0x88c   : > { %4296 = vmatprep.subr.mxu1 %v9453_v24 }
 0x88d   : > { %4297 = vmatpush1.msra.mxu1 %v4262_v48 }
 0x88e   : > { %4298 = vmatprep.subr.mxu1 %v9453_v24 }
 0x88f   : > { %4299 = vmatpush1.msra.mxu1 %v4261_v9  ;;  %v5923_v9 = vld [vmem:[%s9350_s13 + $0x2b8] sm:$0xff] }
 0x890   : > { %4300 = vmatprep.subr.mxu1 %v9453_v24 }
 0x891   : > { %4301 = vmatpush1.msra.mxu1 %v4260_v38  ;;  %v4376_v38 = vld [vmem:[%s9350_s13 + $0x70] sm:$0xff] }
 0x892   : > { %4302 = vmatprep.subr.mxu1 %v9453_v24 }
 0x893   : > { %4303 = vmatpush1.msra.mxu1 %v4259_v16  ;;  %v5922_v16 = vld [vmem:[%s9350_s13 + $0x2b0] sm:$0xff] }
 0x894   : > { %4304 = vmatprep.subr.mxu1 %v9453_v24 }
 0x895   : > { %4305 = vmatpush1.msra.mxu1 %v4258_v8  ;;  %v4375_v8 = vld [vmem:[%s9350_s13 + $0x68] sm:$0xff] }
 0x896   : > { %4306 = vmatprep.subr.mxu1 %v9453_v24 }
 0x897   : > { %4307 = vmatpush1.msra.mxu1 %v4257_v37  ;;  %v5921_v37 = vld [vmem:[%s9350_s13 + $0x2a8] sm:$0xff] }
 0x898   : > { %4308 = vmatprep.subr.mxu1 %v9453_v24 }
 0x899   : > { %4309 = vmatpush1.msra.mxu1 %v4256_v61  ;;  %v4374_v61 = vld [vmem:[%s9350_s13 + $0x60] sm:$0xff] }
 0x89a   : > { %4310 = vmatprep.subr.mxu1 %v9453_v24 }
 0x89b   : > { %4311 = vmatpush1.msra.mxu1 %v4255_v11  ;;  %v5920_v11 = vld [vmem:[%s9350_s13 + $0x2a0] sm:$0xff] }
 0x89c   : > { %4312 = vmatprep.subr.mxu1 %v9453_v24 }
 0x89d   : > { %4313 = vmatpush1.msra.mxu1 %v4254_v60  ;;  %v4373_v60 = vld [vmem:[%s9350_s13 + $0x58] sm:$0xff] }
 0x89e   : > { %4342 = vmatprep.subr.mxu1 %v9453_v24 }
 0x89f   : > { %5847 = vmatpush2.msk.msra.mxu1 %vm1926_vm2, %v4271_v17  ;;  %v5919_v17 = vld [vmem:[%s9350_s13 + $0x298] sm:$0xff]  ;;  %vm5341_vm2 = vcmask 811008  }
 0x8a0   : > { %4344 = vmatprep.subr.mxu1 %v9453_v24 }
 0x8a1   : > { %4345 = vmatpush2.msra.mxu1 %v4270_v25  ;;  %v4372_v25 = vld [vmem:[%s9350_s13 + $0x50] sm:$0xff] }
 0x8a2   : > { %4585 = vmatprep.subr.mxu1 %v5887_v42  ;;  %v4371_v42 = vld [vmem:[%s9350_s13 + $0x48] sm:$0xff] }
 0x93e   : > { %v4243_v53 = vpop.f32.mrf.mxu1 }
 0x940   : > { %v4245_v6 = vpop.f32.mrf.mxu1 }
 0x941   : > { %5848 = vmatprep.mubr.msk.f32.mxu1 %vm4272_vm14, %v4245_v6  ;;  %v5912_v6 = vld [vmem:[%s9350_s13 + $0x260] sm:$0xff] }
 0x942   : > { %4347 = vmatmul.mubr.f32.vlgmr.msra.gmra.mxu1 %v4243_v53  ;;  %v4249_v3 = vpop.f32.mrf.mxu1  ;;  %v4366_v53 = vld [vmem:[%s9350_s13 + $0x20] sm:$0xff] }
 0x943   : > { %4586 = vmatpush1.msra.mxu1 %v5886_v41  ;;  %v4365_v41 = vld [vmem:[%s9350_s13 + $0x18] sm:$0xff] }
 0x944   : > { %v4251_v23 = vpop.f32.mrf.mxu1  ;;  %4587 = vmatprep.subr.mxu1 %v5885_v33  ;;  %v5911_v33 = vld [vmem:[%s9350_s13 + $0x258] sm:$0xff] }
 0x945   : > { %5849 = vmatprep.mubr.msk.f32.mxu1 %vm4272_vm14, %v4251_v23  ;;  %4588 = vmatpush1.msra.mxu1 %v5884_v20  ;;  %v5910_v20 = vld [vmem:[%s9350_s13 + $0x250] sm:$0xff]  ;;  %v5909_v23 = vld [vmem:[%s9350_s13 + $0x248] sm:$0xff] }
 0x946   : > { %4352 = vmatmul.mubr.f32.gmra.mxu1 %v4249_v3  ;;  %4589 = vmatprep.subr.mxu1 %v5883_v54  ;;  %v4364_v3 = vld [vmem:[%s9350_s13 + $0x10] sm:$0xff]  ;;  %v4363_v54 = vld [vmem:[%s9350_s13 + $0x8] sm:$0xff] }
 0x947   : > { %4590 = vmatpush1.msra.mxu1 %v5882_v43  ;;  %4635 = vmatprep.mubr.f32.mxu1 %v9453_v24  ;;  %v4362_v43 = vld [vmem:[%s9350_s13] sm:$0xff] }
 0x948   : > { %4591 = vmatprep.subr.mxu1 %v5881_v10  ;;  %v5908_v10 = vld [vmem:[%s9350_s13 + $0x240] sm:$0xff] }
 0x949   : > { %4592 = vmatpush1.msra.mxu1 %v5880_v51  ;;  %v5906_v51 = vld [vmem:[%s9350_s13 + $0x238] sm:$0xff] }
 0x94a   : > { %4593 = vmatprep.subr.mxu1 %v5879_v0  ;;  %v5963_v0 = vld [vmem:[%s9350_s13 + $0x3e8] sm:$0xff] }
 0x94b   : > { %4594 = vmatpush1.msra.mxu1 %v5878_v59 }
 0x94c   : > { %4595 = vmatprep.subr.mxu1 %v5877_v47  ;;  %v5962_v47 = vld [vmem:[%s9350_s13 + $0x3e0] sm:$0xff] }
 0x94d   : > { %4596 = vmatpush1.msra.mxu1 %v5876_v44  ;;  %v5904_v44 = vld [vmem:[%s9350_s13 + $0x228] sm:$0xff] }
 0x94e   : > { %4597 = vmatprep.subr.mxu1 %v5875_v34  ;;  %v5903_v34 = vld [vmem:[%s9350_s13 + $0x220] sm:$0xff] }
 0x94f   : > { %4598 = vmatpush1.msra.mxu1 %v5874_v46  ;;  %v5902_v46 = vld [vmem:[%s9350_s13 + $0x218] sm:$0xff] }
 0x950   : > { %4599 = vmatprep.subr.mxu1 %v5873_v45  ;;  %v5901_v45 = vld [vmem:[%s9350_s13 + $0x210] sm:$0xff] }
 0x951   : > { %4600 = vmatpush1.msra.mxu1 %v5872_v15  ;;  %v5900_v15 = vld [vmem:[%s9350_s13 + $0x208] sm:$0xff] }
 0x952   : > { %4601 = vmatprep.subr.mxu1 %v5871_v63  ;;  %v5899_v63 = vld [vmem:[%s9350_s13 + $0x200] sm:$0xff] }
 0x953   : > { %4602 = vmatpush1.msra.mxu1 %v5870_v14  ;;  %v5898_v14 = vld [vmem:[%s9350_s13 + $0x1f8] sm:$0xff] }
 0x954   : > { %4777 = vmatprep.subr.mxu1 %v5925_v57  ;;  %v5897_v57 = vld [vmem:[%s9350_s13 + $0x1f0] sm:$0xff] }
 0xa02   : > { %v4348_v1 = vpop.f32.mrf.mxu1 }
 0xa03   : > { %4358 = vst.msk [vmem:[#allocation4] sm:$0xff] %vm4357_vm15, %v4348_v1  ;;  %v5954_v1 = vld [vmem:[%s9350_s13 + $0x3a0] sm:$0xff] }
 0xa04   : > { %v4350_v13 = vpop.f32.mrf.mxu1 }
 0xa05   : > { %v5896_v13 = vld [vmem:[%s9350_s13 + $0x1e8] sm:$0xff] }
 0xa06   : > { %v4353_v7 = vpop.f32.mrf.mxu1 }
 0xa07   : > { %4360 = vst.msk [vmem:[#allocation4 + $0x8] sm:$0x1] %vm4359_vm0, %v4353_v7  ;;  %v5953_v7 = vld [vmem:[%s9350_s13 + $0x398] sm:$0xff] }
 0xa08   : > { %v4355_v49 = vpop.f32.mrf.mxu1 }
 0xa09   : > { %v5895_v49 = vld [vmem:[%s9350_s13 + $0x1e0] sm:$0xff] }
 0xa0a   : > { %v4380_v21 = vld [vmem:[#allocation4 + $0x1] sm:$0x1]  ;;  %v4548_v48 = vld [vmem:[#allocation4 + $0x2] sm:$0x1]  ;;  %v4361_v59 = vld [vmem:[#allocation4] sm:$0x1] }
 0xa0b   : > { %5868 = vmatmul.mubr.msk.f32.vlgmr.msra.gmra.mxu0 %vm4357_vm15, %v4380_v21  ;;  %5888 = vmatmul.mubr.msk.f32.vlgmr.msra.gmra.mxu1 %vm4357_vm15, %v4548_v48  ;;  %v4740_v35 = vld [vmem:[#allocation4 + $0x4] sm:$0x1]  ;;  %v5893_v21 = vld [vmem:[%s9350_s13 + $0x1d0] sm:$0xff]  ;;  %v5950_v48 = vld [vmem:[%s9350_s13 + $0x380] sm:$0xff] }
 0xa0c   : > { %4492 = vmatpush1.msra.mxu0 %v4378_v55  ;;  %4778 = vmatpush1.msra.mxu1 %v5924_v28  ;;  %v5952_v55 = vld [vmem:[%s9350_s13 + $0x390] sm:$0xff]  ;;  %v5894_v28 = vld [vmem:[%s9350_s13 + $0x1d8] sm:$0xff] }
 0xa0d   : > { %4493 = vmatprep.subr.mxu0 %v4377_v31  ;;  %4779 = vmatprep.subr.mxu1 %v5923_v9  ;;  %v5951_v31 = vld [vmem:[%s9350_s13 + $0x388] sm:$0xff] }
 0xa0e   : > { %4494 = vmatpush1.msra.mxu0 %v4376_v38  ;;  %4780 = vmatpush1.msra.mxu1 %v5922_v16  ;;  %v5892_v9 = vld [vmem:[%s9350_s13 + $0x1c8] sm:$0xff]  ;;  %v5949_v38 = vld [vmem:[%s9350_s13 + $0x378] sm:$0xff]  ;;  %v5891_v16 = vld [vmem:[%s9350_s13 + $0x1c0] sm:$0xff] }
 0xa0f   : > { %4495 = vmatprep.subr.mxu0 %v4375_v8  ;;  %4781 = vmatprep.subr.mxu1 %v5921_v37  ;;  %v5948_v8 = vld [vmem:[%s9350_s13 + $0x370] sm:$0xff]  ;;  %v5890_v37 = vld [vmem:[%s9350_s13 + $0x1b8] sm:$0xff] }
 0xa10   : > { %4496 = vmatpush1.msra.mxu0 %v4374_v61  ;;  %4782 = vmatpush1.msra.mxu1 %v5920_v11  ;;  %v5947_v61 = vld [vmem:[%s9350_s13 + $0x368] sm:$0xff]  ;;  %v5889_v11 = vld [vmem:[%s9350_s13 + $0x1b0] sm:$0xff] }
 0xa11   : > { %4497 = vmatprep.subr.mxu0 %v4373_v60  ;;  %4783 = vmatprep.subr.mxu1 %v5919_v17  ;;  %v5946_v60 = vld [vmem:[%s9350_s13 + $0x360] sm:$0xff]  ;;  %v5944_v17 = vld [vmem:[%s9350_s13 + $0x358] sm:$0xff] }
 0xa12   : > { %4498 = vmatpush1.msra.mxu0 %v4372_v25  ;;  %4784 = vmatpush1.msra.mxu1 %v5918_v12  ;;  %v5943_v25 = vld [vmem:[%s9350_s13 + $0x350] sm:$0xff]  ;;  %v4644_v12 = vld [vmem:[#allocation4 + $0x3] sm:$0x1] }
 0xa13   : > { %4499 = vmatprep.subr.mxu0 %v4371_v42  ;;  %4785 = vmatprep.subr.mxu1 %v5917_v39  ;;  %v5942_v42 = vld [vmem:[%s9350_s13 + $0x348] sm:$0xff] }
 0xa14   : > { %4500 = vmatpush1.msra.mxu0 %v4370_v40  ;;  %4786 = vmatpush1.msra.mxu1 %v5916_v50  ;;  %v4932_v39 = vld [vmem:[#allocation4 + $0x6] sm:$0x1]  ;;  %v5941_v40 = vld [vmem:[%s9350_s13 + $0x340] sm:$0xff] }
 0xa15   : > { %4501 = vmatprep.subr.mxu0 %v4369_v26  ;;  %4787 = vmatprep.subr.mxu1 %v5915_v27  ;;  %v6001_v50 = vld [vmem:[%s9350_s13 + $0x508] sm:$0xff]  ;;  %v5940_v26 = vld [vmem:[%s9350_s13 + $0x338] sm:$0xff]  ;;  %v6000_v27 = vld [vmem:[%s9350_s13 + $0x500] sm:$0xff] }
 0xa16   : > { %4502 = vmatpush1.msra.mxu0 %v4368_v4  ;;  %4788 = vmatpush1.msra.mxu1 %v5914_v29  ;;  %v5939_v4 = vld [vmem:[%s9350_s13 + $0x330] sm:$0xff]  ;;  %v5999_v29 = vld [vmem:[%s9350_s13 + $0x4f8] sm:$0xff] }
 0xa17   : > { %4503 = vmatprep.subr.mxu0 %v4367_v5  ;;  %4789 = vmatprep.subr.mxu1 %v5913_v32  ;;  %v5938_v5 = vld [vmem:[%s9350_s13 + $0x328] sm:$0xff]  ;;  %v5998_v32 = vld [vmem:[%s9350_s13 + $0x4f0] sm:$0xff] }
 0xa18   : > { %4504 = vmatpush1.msra.mxu0 %v4366_v53  ;;  %4790 = vmatpush1.msra.mxu1 %v5912_v6  ;;  %v5937_v53 = vld [vmem:[%s9350_s13 + $0x320] sm:$0xff]  ;;  %v5997_v6 = vld [vmem:[%s9350_s13 + $0x4e8] sm:$0xff] }
 0xa19   : > { %4505 = vmatprep.subr.mxu0 %v4365_v41  ;;  %4791 = vmatprep.subr.mxu1 %v5911_v33  ;;  %v5936_v41 = vld [vmem:[%s9350_s13 + $0x318] sm:$0xff]  ;;  %v5996_v33 = vld [vmem:[%s9350_s13 + $0x4e0] sm:$0xff] }
 0xa1a   : > { %4506 = vmatpush1.msra.mxu0 %v4364_v3  ;;  %4792 = vmatpush1.msra.mxu1 %v5910_v20  ;;  %v5935_v3 = vld [vmem:[%s9350_s13 + $0x310] sm:$0xff]  ;;  %v5995_v20 = vld [vmem:[%s9350_s13 + $0x4d8] sm:$0xff] }
 0xa1b   : > { %4507 = vmatprep.subr.mxu0 %v4363_v54  ;;  %4793 = vmatprep.subr.mxu1 %v5909_v23  ;;  %v5934_v54 = vld [vmem:[%s9350_s13 + $0x308] sm:$0xff]  ;;  %v5994_v23 = vld [vmem:[%s9350_s13 + $0x4d0] sm:$0xff] }
 0xa1c   : > { %4508 = vmatpush1.msra.mxu0 %v4362_v43  ;;  %4541 = vmatprep.mubr.f32.mxu0 %v9453_v24  ;;  %v5933_v43 = vld [vmem:[%s9350_s13 + $0x300] sm:$0xff] }
 0xa1d   : > { %4794 = vmatpush1.msra.mxu1 %v5908_v10  ;;  %4827 = vmatprep.mubr.f32.mxu1 %v9453_v24  ;;  %v5993_v10 = vld [vmem:[%s9350_s13 + $0x4c8] sm:$0xff] }
 0xa1e   : > { %5869 = vmatmul.mubr.msk.f32.vlgmr.msra.gmra.mxu0 %vm4357_vm15, %v4361_v59  ;;  %4681 = vmatprep.subr.mxu0 %v5906_v51  ;;  %v5932_v51 = vld [vmem:[%s9350_s13 + $0x2f8] sm:$0xff]  ;;  %v5931_v59 = vld [vmem:[%s9350_s13 + $0x2f0] sm:$0xff] }
 0xa1f   : > { %5926 = vmatmul.mubr.msk.f32.vlgmr.msra.gmra.mxu1 %vm4357_vm15, %v4740_v35  ;;  %4969 = vmatprep.subr.mxu1 %v5963_v0  ;;  %v5992_v0 = vld [vmem:[%s9350_s13 + $0x4c0] sm:$0xff]  ;;  %v5990_v35 = vld [vmem:[%s9350_s13 + $0x4b0] sm:$0xff] }
 0xa20   : > { %4682 = vmatpush1.msra.mxu0 %v5905_v36  ;;  %4970 = vmatpush1.msra.mxu1 %v5962_v47  ;;  %v5991_v36 = vld [vmem:[%s9350_s13 + $0x4b8] sm:$0xff]  ;;  %v5930_v47 = vld [vmem:[%s9350_s13 + $0x2e8] sm:$0xff] }
 0xa21   : > { %4683 = vmatprep.subr.mxu0 %v5904_v44  ;;  %4971 = vmatprep.subr.mxu1 %v5961_v56  ;;  %v5929_v44 = vld [vmem:[%s9350_s13 + $0x2e0] sm:$0xff]  ;;  %v5989_v56 = vld [vmem:[%s9350_s13 + $0x4a8] sm:$0xff] }
 0xa22   : > { %4684 = vmatpush1.msra.mxu0 %v5903_v34  ;;  %4972 = vmatpush1.msra.mxu1 %v5960_v2  ;;  %v5928_v34 = vld [vmem:[%s9350_s13 + $0x2d8] sm:$0xff]  ;;  %v5988_v2 = vld [vmem:[%s9350_s13 + $0x4a0] sm:$0xff] }
 0xa23   : > { %4685 = vmatprep.subr.mxu0 %v5902_v46  ;;  %4973 = vmatprep.subr.mxu1 %v5959_v22  ;;  %v5927_v46 = vld [vmem:[%s9350_s13 + $0x2d0] sm:$0xff]  ;;  %v5987_v22 = vld [vmem:[%s9350_s13 + $0x498] sm:$0xff] }
 0xa24   : > { %4686 = vmatpush1.msra.mxu0 %v5901_v45  ;;  %4974 = vmatpush1.msra.mxu1 %v5958_v19  ;;  %v5982_v45 = vld [vmem:[%s9350_s13 + $0x478] sm:$0xff]  ;;  %v5981_v19 = vld [vmem:[%s9350_s13 + $0x470] sm:$0xff] }
 0xa25   : > { %4687 = vmatprep.subr.mxu0 %v5900_v15  ;;  %4975 = vmatprep.subr.mxu1 %v5957_v62  ;;  %v4836_v15 = vld [vmem:[#allocation4 + $0x5] sm:$0x1] }
 0xa26   : > { %4688 = vmatpush1.msra.mxu0 %v5899_v63  ;;  %4976 = vmatpush1.msra.mxu1 %v5956_v30  ;;  %v5980_v62 = vld [vmem:[%s9350_s13 + $0x468] sm:$0xff]  ;;  %v5986_v63 = vld [vmem:[%s9350_s13 + $0x490] sm:$0xff]  ;;  %v5979_v30 = vld [vmem:[%s9350_s13 + $0x460] sm:$0xff] }
 0xa27   : > { %4689 = vmatprep.subr.mxu0 %v5898_v14  ;;  %4977 = vmatprep.subr.mxu1 %v5955_v52  ;;  %v5985_v14 = vld [vmem:[%s9350_s13 + $0x488] sm:$0xff]  ;;  %v5978_v52 = vld [vmem:[%s9350_s13 + $0x458] sm:$0xff] }
 0xa28   : > { %4690 = vmatpush1.msra.mxu0 %v5897_v57  ;;  %4978 = vmatpush1.msra.mxu1 %v5954_v1  ;;  %v5984_v57 = vld [vmem:[%s9350_s13 + $0x480] sm:$0xff]  ;;  %v5977_v1 = vld [vmem:[%s9350_s13 + $0x450] sm:$0xff] }
 0xa29   : > { %4691 = vmatprep.subr.mxu0 %v5896_v13  ;;  %4979 = vmatprep.subr.mxu1 %v5953_v7  ;;  %v5976_v13 = vld [vmem:[%s9350_s13 + $0x448] sm:$0xff]  ;;  %v5124_v7 = vld [vmem:[#allocation4 + $0x8] sm:$0x1] }
 0xa2a   : > { %4692 = vmatpush1.msra.mxu0 %v5895_v49  ;;  %4980 = vmatpush1.msra.mxu1 %v5952_v55  ;;  %v5975_v49 = vld [vmem:[%s9350_s13 + $0x440] sm:$0xff]  ;;  %v5974_v55 = vld [vmem:[%s9350_s13 + $0x438] sm:$0xff] }
 0xa2b   : > { %4693 = vmatprep.subr.mxu0 %v5894_v28  ;;  %4981 = vmatprep.subr.mxu1 %v5951_v31  ;;  %v5973_v28 = vld [vmem:[%s9350_s13 + $0x430] sm:$0xff]  ;;  %v5972_v31 = vld [vmem:[%s9350_s13 + $0x428] sm:$0xff] }
 0xa2c   : > { %4694 = vmatpush1.msra.mxu0 %v5893_v21  ;;  %4982 = vmatpush1.msra.mxu1 %v5950_v48  ;;  %v5971_v21 = vld [vmem:[%s9350_s13 + $0x420] sm:$0xff]  ;;  %v5970_v48 = vld [vmem:[%s9350_s13 + $0x418] sm:$0xff] }
 0xa2d   : > { %4695 = vmatprep.subr.mxu0 %v5892_v9  ;;  %4983 = vmatprep.subr.mxu1 %v5949_v38  ;;  %v5969_v9 = vld [vmem:[%s9350_s13 + $0x410] sm:$0xff]  ;;  %v5968_v38 = vld [vmem:[%s9350_s13 + $0x408] sm:$0xff] }
 0xa2e   : > { %4696 = vmatpush1.msra.mxu0 %v5891_v16  ;;  %4984 = vmatpush1.msra.mxu1 %v5948_v8  ;;  %v5967_v16 = vld [vmem:[%s9350_s13 + $0x400] sm:$0xff]  ;;  %v5966_v8 = vld [vmem:[%s9350_s13 + $0x3f8] sm:$0xff] }
 0xa2f   : > { %4697 = vmatprep.subr.mxu0 %v5890_v37  ;;  %4985 = vmatprep.subr.mxu1 %v5947_v61  ;;  %v5965_v37 = vld [vmem:[%s9350_s13 + $0x3f0] sm:$0xff]  ;;  %v5028_v61 = vld [vmem:[#allocation4 + $0x7] sm:$0x1] }
 0xa30   : > { %4698 = vmatpush1.msra.mxu0 %v5889_v11  ;;  %4731 = vmatprep.mubr.f32.mxu0 %v9453_v24  ;;  %v5251_v11 = vld [vmem:[%s9352_s15 + $0x78] sm:$0xff] }
 0xa31   : > { %4986 = vmatpush1.msra.mxu1 %v5946_v60  ;;  %5019 = vmatprep.mubr.f32.mxu1 %v9453_v24  ;;  %v5250_v60 = vld [vmem:[%s9352_s15 + $0x70] sm:$0xff] }
 0xa32   : > { %5907 = vmatmul.mubr.msk.f32.vlgmr.msra.gmra.mxu0 %vm4357_vm15, %v4644_v12  ;;  %4873 = vmatprep.subr.mxu0 %v5944_v17  ;;  %v5249_v17 = vld [vmem:[%s9352_s15 + $0x68] sm:$0xff]  ;;  %v5247_v12 = vld [vmem:[%s9352_s15 + $0x58] sm:$0xff] }
 0xa33   : > { %5964 = vmatmul.mubr.msk.f32.vlgmr.msra.gmra.mxu1 %vm4357_vm15, %v4932_v39  ;;  %4874 = vmatpush1.msra.mxu0 %v5943_v25  ;;  %v5248_v25 = vld [vmem:[%s9352_s15 + $0x60] sm:$0xff]  ;;  %v5245_v39 = vld [vmem:[%s9352_s15 + $0x48] sm:$0xff] }
 0xa34   : > { %4875 = vmatprep.subr.mxu0 %v5942_v42  ;;  %4923 = vmatprep.mubr.f32.mxu0 %v9453_v24  ;;  %v5246_v42 = vld [vmem:[%s9352_s15 + $0x50] sm:$0xff] }
 0xa35   : > { %4876 = vmatpush1.msra.mxu0 %v5941_v40  ;;  %5161 = vmatprep.subr.mxu1 %v6001_v50  ;;  %v5244_v40 = vld [vmem:[%s9352_s15 + $0x40] sm:$0xff]  ;;  %v5243_v50 = vld [vmem:[%s9352_s15 + $0x38] sm:$0xff] }
 0xa36   : > { %4877 = vmatprep.subr.mxu0 %v5940_v26  ;;  %5162 = vmatpush1.msra.mxu1 %v6000_v27  ;;  %v5242_v26 = vld [vmem:[%s9352_s15 + $0x30] sm:$0xff]  ;;  %v5241_v27 = vld [vmem:[%s9352_s15 + $0x28] sm:$0xff] }
 0xa37   : > { %4878 = vmatpush1.msra.mxu0 %v5939_v4  ;;  %5163 = vmatprep.subr.mxu1 %v5999_v29  ;;  %v5240_v4 = vld [vmem:[%s9352_s15 + $0x20] sm:$0xff]  ;;  %v5239_v29 = vld [vmem:[%s9352_s15 + $0x18] sm:$0xff] }
 0xa38   : > { %4879 = vmatprep.subr.mxu0 %v5938_v5  ;;  %5164 = vmatpush1.msra.mxu1 %v5998_v32  ;;  %v5238_v5 = vld [vmem:[%s9352_s15 + $0x10] sm:$0xff]  ;;  %v5237_v32 = vld [vmem:[%s9352_s15 + $0x8] sm:$0xff] }
 0xa39   : > { %4880 = vmatpush1.msra.mxu0 %v5937_v53  ;;  %5165 = vmatprep.subr.mxu1 %v5997_v6  ;;  %v5236_v53 = vld [vmem:[%s9352_s15] sm:$0xff]  ;;  %v5265_v6 = vld [vmem:[%s9352_s15 + $0xe8] sm:$0xff] }
 0xa3a   : > { %4881 = vmatprep.subr.mxu0 %v5936_v41  ;;  %5166 = vmatpush1.msra.mxu1 %v5996_v33  ;;  %v5264_v41 = vld [vmem:[%s9352_s15 + $0xe0] sm:$0xff]  ;;  %v5263_v33 = vld [vmem:[%s9352_s15 + $0xd8] sm:$0xff] }
 0xa3b   : > { %4882 = vmatpush1.msra.mxu0 %v5935_v3  ;;  %5167 = vmatprep.subr.mxu1 %v5995_v20  ;;  %v5262_v3 = vld [vmem:[%s9352_s15 + $0xd0] sm:$0xff]  ;;  %v5261_v20 = vld [vmem:[%s9352_s15 + $0xc8] sm:$0xff] }
 0xa3c   : > { %4883 = vmatprep.subr.mxu0 %v5934_v54  ;;  %5168 = vmatpush1.msra.mxu1 %v5994_v23  ;;  %v5260_v54 = vld [vmem:[%s9352_s15 + $0xc0] sm:$0xff]  ;;  %v5259_v23 = vld [vmem:[%s9352_s15 + $0xb8] sm:$0xff] }
 0xa3d   : > { %4884 = vmatpush1.msra.mxu0 %v5933_v43  ;;  %5169 = vmatprep.subr.mxu1 %v5993_v10  ;;  %v5258_v43 = vld [vmem:[%s9352_s15 + $0xb0] sm:$0xff]  ;;  %v5257_v10 = vld [vmem:[%s9352_s15 + $0xa8] sm:$0xff] }
 0xa3e   : > { %4885 = vmatprep.subr.mxu0 %v5932_v51  ;;  %5170 = vmatpush1.msra.mxu1 %v5992_v0  ;;  %v5256_v51 = vld [vmem:[%s9352_s15 + $0xa0] sm:$0xff]  ;;  %v5255_v0 = vld [vmem:[%s9352_s15 + $0x98] sm:$0xff] }
 0xa3f   : > { %4886 = vmatpush1.msra.mxu0 %v5931_v59  ;;  %5171 = vmatprep.subr.mxu1 %v5991_v36  ;;  %v5254_v59 = vld [vmem:[%s9352_s15 + $0x90] sm:$0xff]  ;;  %v5253_v36 = vld [vmem:[%s9352_s15 + $0x88] sm:$0xff] }
 0xa40   : > { %4887 = vmatprep.subr.mxu0 %v5930_v47  ;;  %5172 = vmatpush1.msra.mxu1 %v5990_v35  ;;  %v5252_v47 = vld [vmem:[%s9352_s15 + $0x80] sm:$0xff] }
 0xa41   : > { %4888 = vmatpush1.msra.mxu0 %v5929_v44  ;;  %5173 = vmatprep.subr.mxu1 %v5989_v56 }
 0xa42   : > { %4889 = vmatprep.subr.mxu0 %v5928_v34  ;;  %5174 = vmatpush1.msra.mxu1 %v5988_v2 }
 0xa43   : > { %4890 = vmatpush1.msra.mxu0 %v5927_v46  ;;  %5175 = vmatprep.subr.mxu1 %v5987_v22 }
 0xa44   : > { %5945 = vmatmul.mubr.msk.f32.vlgmr.msra.gmra.mxu0 %vm4357_vm15, %v4836_v15  ;;  %5065 = vmatprep.subr.mxu0 %v5982_v45 }
 0xa45   : > { %5066 = vmatpush1.msra.mxu0 %v5981_v19  ;;  %5115 = vmatprep.mubr.f32.mxu0 %v9453_v24 }
 0xa46   : > { %5067 = vmatprep.subr.mxu0 %v5980_v62  ;;  %5176 = vmatpush1.msra.mxu1 %v5986_v63 }
 0xa47   : > { %5068 = vmatpush1.msra.mxu0 %v5979_v30  ;;  %5177 = vmatprep.subr.mxu1 %v5985_v14 }
 0xa48   : > { %5069 = vmatprep.subr.mxu0 %v5978_v52  ;;  %5178 = vmatpush1.msra.mxu1 %v5984_v57 }
 0xa49   : > { %5070 = vmatpush1.msra.mxu0 %v5977_v1  ;;  %5211 = vmatprep.mubr.f32.mxu1 %v9453_v24 }
 0xa4a   : > { %5071 = vmatprep.subr.mxu0 %v5976_v13  ;;  %6002 = vmatmul.mubr.msk.f32.vlgmr.msra.gmra.mxu1 %vm4357_vm15, %v5124_v7 }
 0xa4b   : > { %5072 = vmatpush1.msra.mxu0 %v5975_v49 }
 0xa4c   : > { %5073 = vmatprep.subr.mxu0 %v5974_v55 }
 0xa4d   : > { %5074 = vmatpush1.msra.mxu0 %v5973_v28 }
 0xa4e   : > { %5075 = vmatprep.subr.mxu0 %v5972_v31 }
 0xa4f   : > { %5076 = vmatpush1.msra.mxu0 %v5971_v21 }
 0xa50   : > { %5077 = vmatprep.subr.mxu0 %v5970_v48  ;;  %v5220_v48 = vld [vmem:[%s9351_s14] sm:$0x3] }
 0xa51   : > { %5078 = vmatpush1.msra.mxu0 %v5969_v9 }
 0xa52   : > { %5079 = vmatprep.subr.mxu0 %v5968_v38 }
 0xa53   : > { %5080 = vmatpush1.msra.mxu0 %v5967_v16 }
 0xa54   : > { %5081 = vmatprep.subr.mxu0 %v5966_v8 }
 0xa55   : > { %5082 = vmatpush1.msra.mxu0 %v5965_v37 }
 0xa56   : > { %5983 = vmatmul.mubr.msk.f32.vlgmr.msra.gmra.mxu0 %vm4357_vm15, %v5028_v61  ;;  %5271 = vmatprep.subr.mxu0 %v9453_v24  ;;  %v5225_v61 = vrot.slane %v5220_v48, %v6996_v58 }
 0xa57   : > { %5272 = vmatpush1.msra.mxu0 %v5251_v11 }
 0xa58   : > { %5273 = vmatprep.subr.mxu0 %v9453_v24 }
 0xa59   : > { %5274 = vmatpush1.msra.mxu0 %v5250_v60 }
 0xa5a   : > { %5275 = vmatprep.subr.mxu0 %v9453_v24 }
 0xa5b   : > { %5276 = vmatpush1.msra.mxu0 %v5249_v17  ;;  %v5229_v17 = vrot.slane %v5220_v48, %v7005_v18 }
 0xa5c   : > { %5277 = vmatprep.subr.mxu0 %v9453_v24 }
 0xa5d   : > { %5278 = vmatpush1.msra.mxu0 %v5248_v25 }
 0xa5e   : > { %5279 = vmatprep.subr.mxu0 %v9453_v24 }
 0xa5f   : > { %5280 = vmatpush1.msra.mxu0 %v5247_v12 }
 0xa60   : > { %5281 = vmatprep.subr.mxu0 %v9453_v24 }
 0xa61   : > { %5282 = vmatpush1.msra.mxu0 %v5246_v42 }
 0xa62   : > { %5283 = vmatprep.subr.mxu0 %v9453_v24 }
 0xa63   : > { %5284 = vmatpush1.msra.mxu0 %v5245_v39 }
 0xa64   : > { %5285 = vmatprep.subr.mxu0 %v9453_v24 }
 0xa65   : > { %5286 = vmatpush1.msra.mxu0 %v5244_v40 }
 0xa66   : > { %5287 = vmatprep.subr.mxu0 %v9453_v24 }
 0xa67   : > { %5288 = vmatpush1.msra.mxu0 %v5243_v50 }
 0xa68   : > { %5289 = vmatprep.subr.mxu0 %v9453_v24 }
 0xa69   : > { %5290 = vmatpush1.msra.mxu0 %v5242_v26  ;;  %v5266_v26 = vld [vmem:[%s9454_s18] sm:$0x1] }
 0xa6a   : > { %5291 = vmatprep.subr.mxu0 %v9453_v24 }
 0xa6b   : > { %5292 = vmatpush1.msra.mxu0 %v5241_v27 }
 0xa6c   : > { %5293 = vmatprep.subr.mxu0 %v9453_v24 }
 0xa6d   : > { %5294 = vmatpush1.msra.mxu0 %v5240_v4 }
 0xa6e   : > { %5295 = vmatprep.subr.mxu0 %v9453_v24 }
 0xa6f   : > { %5296 = vmatpush1.msra.mxu0 %v5239_v29 }
 0xa70   : > { %5297 = vmatprep.subr.mxu0 %v9453_v24 }
 0xa71   : > { %5298 = vmatpush1.msra.mxu0 %v5238_v5 }
 0xa72   : > { %5299 = vmatprep.subr.mxu0 %v9453_v24 }
 0xa73   : > { %5300 = vmatpush1.msra.mxu0 %v5237_v32 }
 0xa74   : > { %5301 = vmatprep.subr.mxu0 %v9453_v24 }
 0xa75   : > { %5302 = vmatpush1.msra.mxu0 %v5236_v53 }
 0xa76   : > { %5307 = vmatprep.subr.mxu0 %v9453_v24 }
 0xa77   : > { %5308 = vmatpush2.msra.mxu0 %v5265_v6 }
 0xa78   : > { %5309 = vmatprep.subr.mxu0 %v9453_v24 }
 0xa79   : > { %5310 = vmatpush2.msra.mxu0 %v5264_v41 }
 0xa7a   : > { %5311 = vmatprep.subr.mxu0 %v9453_v24 }
 0xa7b   : > { %5312 = vmatpush2.msra.mxu0 %v5263_v33 }
 0xa7c   : > { %5313 = vmatprep.subr.mxu0 %v9453_v24 }
 0xa7d   : > { %5314 = vmatpush2.msra.mxu0 %v5262_v3 }
 0xa7e   : > { %5315 = vmatprep.subr.mxu0 %v9453_v24 }
 0xa7f   : > { %5316 = vmatpush2.msra.mxu0 %v5261_v20 }
 0xa80   : > { %5317 = vmatprep.subr.mxu0 %v9453_v24 }
 0xa81   : > { %5318 = vmatpush2.msra.mxu0 %v5260_v54 }
 0xa82   : > { %5319 = vmatprep.subr.mxu0 %v9453_v24 }
 0xa83   : > { %5320 = vmatpush2.msra.mxu0 %v5259_v23 }
 0xa84   : > { %5321 = vmatprep.subr.mxu0 %v9453_v24 }
 0xa85   : > { %5322 = vmatpush2.msra.mxu0 %v5258_v43 }
 0xa86   : > { %5323 = vmatprep.subr.mxu0 %v9453_v24 }
 0xa87   : > { %5324 = vmatpush2.msra.mxu0 %v5257_v10 }
 0xa88   : > { %5325 = vmatprep.subr.mxu0 %v9453_v24 }
 0xa89   : > { %5326 = vmatpush2.msra.mxu0 %v5256_v51 }
 0xa8a   : > { %5327 = vmatprep.subr.mxu0 %v9453_v24 }
 0xa8b   : > { %5328 = vmatpush2.msra.mxu0 %v5255_v0 }
 0xa8c   : > { %5329 = vmatprep.subr.mxu0 %v9453_v24 }
 0xa8d   : > { %5330 = vmatpush2.msra.mxu0 %v5254_v59 }
 0xa8e   : > { %5331 = vmatprep.subr.mxu0 %v9453_v24 }
 0xa8f   : > { %5332 = vmatpush2.msra.mxu0 %v5253_v36 }
 0xa90   : > { %5333 = vmatprep.subr.mxu0 %v9453_v24 }
 0xa91   : > { %5334 = vmatpush2.msra.mxu0 %v5252_v47 }
 0xacb   : > { %v4469_v35 = vpop.f32.mrf.mxu0  ;;  %v4637_v34 = vpop.f32.mrf.mxu1 }
 0xacd   : > { %v4471_v44 = vpop.f32.mrf.mxu0  ;;  %v4639_v19 = vpop.f32.mrf.mxu1 }
 0xade   : > { %v4543_v56 = vpop.f32.mrf.mxu0 }
 0xadf   : > { %v4544_v46 = vadd.f32 %v4543_v56, %v4469_v35  ;;  %v4829_v62 = vpop.f32.mrf.mxu1 }
 0xae0   : > { %v4545_v2 = vpop.f32.mrf.mxu0 }
 0xae1   : > { %v4546_v45 = vadd.f32 %v4545_v2, %v4471_v44  ;;  %v4642_v15 = vadd.f32 %v4637_v34, %v4544_v46  ;;  %v4831_v1 = vpop.f32.mrf.mxu1 }
 0xae3   : > { %v4643_v14 = vadd.f32 %v4639_v19, %v4546_v45 }
 0xaf2   : > { %v4733_v22 = vpop.f32.mrf.mxu0 }
 0xaf3   : > { %v4738_v30 = vadd.f32 %v4733_v22, %v4642_v15  ;;  %v5021_v24 = vpop.f32.mrf.mxu1 }
 0xaf4   : > { %v4735_v63 = vpop.f32.mrf.mxu0 }
 0xaf5   : > { %v4739_v57 = vadd.f32 %v4735_v63, %v4643_v14  ;;  %v4834_v13 = vadd.f32 %v4829_v62, %v4738_v30  ;;  %v5023_v31 = vpop.f32.mrf.mxu1 }
 0xaf7   : > { %v4835_v55 = vadd.f32 %v4831_v1, %v4739_v57 }
 0xb04   : > { %v4925_v52 = vpop.f32.mrf.mxu0 }
 0xb05   : > { %v4930_v49 = vadd.f32 %v4925_v52, %v4834_v13 }
 0xb06   : > { %v4927_v7 = vpop.f32.mrf.mxu0 }
 0xb07   : > { %v4931_v28 = vadd.f32 %v4927_v7, %v4835_v55  ;;  %v5026_v21 = vadd.f32 %v5021_v24, %v4930_v49 }
 0xb09   : > { %v5027_v8 = vadd.f32 %v5023_v31, %v4931_v28 }
 0xb0a   : > { %v5213_v38 = vpop.f32.mrf.mxu1 }
 0xb0c   : > { %v5215_v25 = vpop.f32.mrf.mxu1 }
 0xb16   : > { %v5117_v9 = vpop.f32.mrf.mxu0 }
 0xb17   : > { %v5122_v16 = vadd.f32 %v5117_v9, %v5026_v21 }
 0xb18   : > { %v5119_v37 = vpop.f32.mrf.mxu0 }
 0xb19   : > { %v5123_v11 = vadd.f32 %v5119_v37, %v5027_v8  ;;  %v5218_v60 = vadd.f32 %v5213_v38, %v5122_v16 }
 0xb1b   : > { %v5219_v12 = vadd.f32 %v5215_v25, %v5123_v11  ;;  %v5232_v42 = vadd.f32 %v5225_v61, %v5218_v60 }
 0xb1d   : > { %v5233_v39 = vadd.f32 %v5229_v17, %v5219_v12  ;;  %v5234_v50 = vmax.f32 %v5232_v42, 0.0 }
 0xb1f   : > { %v5235_v40 = vmax.f32 %v5233_v39, 0.0 }
 0xb21   : > { %6003 = vmatprep.mubr.msk.f32.mxu0 %vm5267_vm1, %v5235_v40 }
 0xb22   : > { %5336 = vmatmul.mubr.f32.vlgmr.msra.gmra.mxu0 %v5234_v50 }
 0xbe2   : > { %v5337_v58 = vpop.f32.mrf.mxu0 }
 0xbe3   : > { %v5338_v18 = vadd.f32 %v5337_v58, %v5266_v26 }
 0xbe4   : > { %v5339_v27 = vpop.f32.mrf.mxu0 }
 0xbe5   : > { %5342 = vst.msk [vmem:[%s540_s17] sm:$0x1] %vm5341_vm2, %v5338_v18 }
 0xbe6   : > { %6062 = shalt.err (!%p6059_p3)
}
 0xbe7   : > { %s6063_s18 = scalar_lea.hbm %s9302_s19, 16  ;;  %s6067_s17 = scalar_lea.hbm %s9455_s22, 32 }
 0xbe8   : > { %p6064_p4 = scmp.ne.s32.totalorder %s9302_s19, %s6063_s18  ;;  %p6068_p9 = scmp.lt.s32.totalorder %s9302_s19, %s9455_s22 }
 0xbe9   : > { %p6069_p10 = scmp.lt.s32.totalorder %s6067_s17, %s6063_s18 }
 0xbea   : > { %p6065_p7 = pnand %p6064_p4, %p6242_p5 }
 0xbeb   : > { %p6070_p11 = por %p6069_p10, %p6068_p9 }
 0xbec   : > { %p6066_p8 = pneg %p6065_p7 }
 0xbee   : > { %p6071_p12 = pnand %p6070_p11, %p6066_p8 }
 0xbf0   : > { %6074 = shalt.err (!%p6071_p12)
}
 0xbf1   : > { %6008 = dma.vmem_to_hbm [thread:$0]  (%p6242_p5), %s5357_s0, 16, %s9302_s19, %s5344_s29  }
 0xbf2 PF: > { %s9456_s24 = sld [smem:[#allocation10_spill]] }
 0xbf3   : > { %s9457_s28 = sld [smem:[#allocation8_spill]] }
 0xbf8   : > { %p6014_p13 = scmp.ge.s32.totalorder %s9456_s24, 2 }
 0xbf9   : > { %s5368_s27 = sand.u32 1, %s9457_s28  }
 0xbfa   : > { %p6011_p0 = pnand %p6014_p13, %p6246_p6  ;;  %s5369_s30 = scalar_lea.sflag [#allocation6], %s5368_s27 }
 0xbfc   : > { %p6012_p1 = pneg %p6011_p0 }
 0xbfe   : > { %6092 = dma.done.wait (%p6012_p1), %s5369_s30, 16  }
 0xbff   : > { %6094 = vsyncadd (%p6012_p1), %s5369_s30, 4294967280  ;;  %s9459_s27 = sld [smem:[#allocation11_spill]]  ;;  %s9462_s24 = smov %s6101_s25 }
 0xc00   : > { %s9460_s18 = sld [smem:[#allocation9_spill]] }
 0xc01   : > { %s9461_s26 = sld [smem:[#allocation12_spill]] }
 0xc05   : > { %p27_p2 = scmp.ge.s32.totalorder %s9459_s27, 4  }
 0xc06   : > { %s9463_s25 = smov %s9460_s18 }
 0xc07   :  { %29 = sbr.rel (!%p27_p2) target bundleno = 8 (0x8), region = 143 }
 0xc0c   :  { %5373 = vsyncpa [#allocation6], 1 }
 0xc0d   :  { %5375 = vsyncpa [#allocation6 + $0x1], 1 }

</bundles_post_ra>
